<compile_context>
chip_gen: v7x
topology: tpu7x:2x2x1
jax: 0.10.0
libtpu: 0.0.40
codegen_flags: <defaults>
</compile_context>

<pallas_src>
import jax
import jax.numpy as jnp
from jax import lax
from jax.experimental import pallas as pl
from jax.experimental.pallas import tpu as pltpu


def linear_kernel(x_ref, w_ref, b_ref, o_ref):
    # x_ref: (M, K)  full X, resident across grid steps.
    # w_ref: (tn, K) tile of the PyTorch-layout weight (N, K).
    # b_ref: (1, tn) bias tile for this output slice.
    # o_ref: (M, tn) output tile.
    acc = lax.dot_general(
        x_ref[...],
        w_ref[...],
        dimension_numbers=(((1,), (1,)), ((), ())),  # contract K with K
        preferred_element_type=jnp.float32,
    )  # (M, tn)
    o_ref[...] = (acc + b_ref[...]).astype(o_ref.dtype)


def linear_pallas(x, weight, bias, *, tn=1536):
    """x: (..., K); weight: (N, K) PyTorch-style; bias: (N,). Returns (..., N)."""
    N, K = weight.shape
    lead = x.shape[:-1]
    M = 1
    for d in lead:
        M *= d
    x2 = x.reshape(M, K)
    b2 = bias.reshape(1, N)

    assert N % tn == 0, "output features must be divisible by tile size"
    assert tn % 128 == 0 and K % 128 == 0
    grid = (N // tn,)

    cost = pl.CostEstimate(
        flops=2 * M * K * N,
        transcendentals=0,
        bytes_accessed=(
            x2.size * x2.dtype.itemsize
            + weight.size * weight.dtype.itemsize
            + b2.size * b2.dtype.itemsize
            + M * N * x.dtype.itemsize
        ),
    )

    out = pl.pallas_call(
        linear_kernel,
        out_shape=jax.ShapeDtypeStruct((M, N), x.dtype),
        grid_spec=pltpu.PrefetchScalarGridSpec(
            num_scalar_prefetch=0,
            grid=grid,
            in_specs=[
                pl.BlockSpec((M, K), lambda j: (0, 0)),    # full X, resident
                pl.BlockSpec((tn, K), lambda j: (j, 0)),   # weight row tile (N,K layout)
                pl.BlockSpec((1, tn), lambda j: (0, j)),   # bias tile
            ],
            out_specs=pl.BlockSpec((M, tn), lambda j: (0, j)),
        ),
        compiler_params=pltpu.CompilerParams(
            dimension_semantics=("parallel",),
        ),
        cost_estimate=cost,
    )(x2, weight, b2)

    return out.reshape(*lead, N)


def init_params(key, in_features=768, out_features=3072, dtype=jnp.float32):
    # Deterministic init mimicking nn.Linear default: U(-1/sqrt(fan_in), 1/sqrt(fan_in))
    kw, kb = jax.random.split(key)
    bound = 1.0 / jnp.sqrt(jnp.asarray(in_features, dtype))
    weight = jax.random.uniform(
        kw, (out_features, in_features), dtype, minval=-bound, maxval=bound
    )
    bias = jax.random.uniform(
        kb, (out_features,), dtype, minval=-bound, maxval=bound
    )
    return weight, bias


if __name__ == "__main__":
    key = jax.random.PRNGKey(0)
    kx, kp = jax.random.split(key)

    # Input shape implied by the module's forward: [1, 7, 7, 768]
    x = jax.random.normal(kx, (1, 7, 7, 768), dtype=jnp.float32)
    weight, bias = init_params(kp)

    y = linear_pallas(x, weight, bias)
    y = jax.block_until_ready(y)

    # Reference check against plain-JAX linear (PyTorch semantics: y = x @ W^T + b)
    y_ref = jnp.einsum("nhwk,ok->nhwo", x, weight) + bias
    assert y.shape == (1, 7, 7, 3072), y.shape
    assert jnp.allclose(y, y_ref, atol=1e-4, rtol=1e-4)

    print("KERNEL_OK")
</pallas_src>

<mosaic_0001>
module attributes {stable_mosaic.version = 11 : i64} {
  func.func @linear_kernel(%arg0: i32, %arg1: memref<49x768xf32, #tpu.memory_space<vmem>>, %arg2: memref<1536x768xf32, #tpu.memory_space<vmem>>, %arg3: memref<1x1536xf32, #tpu.memory_space<vmem>>, %arg4: memref<49x1536xf32, #tpu.memory_space<vmem>>) attributes {dimension_semantics = [#tpu.dimension_semantics<parallel>], iteration_bounds = array<i64: 2>, scalar_prefetch = 0 : i64, scratch_operands = 0 : i64, tpu.core_type = #tpu.core_type<tc>, window_params = [{pipeline_mode = #tpu.pipeline_mode<synchronous>, transform_indices = @transform_0, window_bounds = array<i64: 49, 768>}, {transform_indices = @transform_1, window_bounds = array<i64: 1536, 768>}, {transform_indices = @transform_2, window_bounds = array<i64: 1, 1536>}, {transform_indices = @transform_3, window_bounds = array<i64: 49, 1536>}]} {
    %c0 = arith.constant 0 : index
    %c0_0 = arith.constant 0 : index
    %0 = vector.load %arg1[%c0, %c0_0] : memref<49x768xf32, #tpu.memory_space<vmem>>, vector<49x768xf32>
    %c0_1 = arith.constant 0 : index
    %c0_2 = arith.constant 0 : index
    %1 = vector.load %arg2[%c0_1, %c0_2] : memref<1536x768xf32, #tpu.memory_space<vmem>>, vector<1536x768xf32>
    %cst = arith.constant dense<0.000000e+00> : vector<49x1536xf32>
    %2 = tpu.matmul %0, %1, %cst {dimension_numbers = #tpu.dot_dimension_numbers<[1], [1], [0], [0], [0, 0, 1, 0], [], []>} : vector<49x768xf32>, vector<1536x768xf32>, vector<49x1536xf32> -> vector<49x1536xf32>
    %c0_3 = arith.constant 0 : index
    %c0_4 = arith.constant 0 : index
    %3 = vector.load %arg3[%c0_3, %c0_4] : memref<1x1536xf32, #tpu.memory_space<vmem>>, vector<1x1536xf32>
    %4 = vector.broadcast %3 : vector<1x1536xf32> to vector<49x1536xf32>
    %5 = arith.addf %2, %4 : vector<49x1536xf32>
    %c0_5 = arith.constant 0 : index
    %c0_6 = arith.constant 0 : index
    %6 = vector.load %arg4[%c0_5, %c0_6] : memref<49x1536xf32, #tpu.memory_space<vmem>>, vector<49x1536xf32>
    tpu.vector_store %arg4[%c0_5, %c0_6], %5 {strides = array<i32>} : memref<49x1536xf32, #tpu.memory_space<vmem>>, vector<49x1536xf32>,
    return
  }
  func.func @transform_0(%arg0: i32) -> (i32, i32) {
    %c0_i32 = arith.constant 0 : i32
    %c0_i32_0 = arith.constant 0 : i32
    %c0_i32_1 = arith.constant 0 : i32
    return %c0_i32, %c0_i32_0 : i32, i32
  }
  func.func @transform_1(%arg0: i32) -> (i32, i32) {
    %c0_i32 = arith.constant 0 : i32
    %c0_i32_0 = arith.constant 0 : i32
    return %arg0, %c0_i32 : i32, i32
  }
  func.func @transform_2(%arg0: i32) -> (i32, i32) {
    %c0_i32 = arith.constant 0 : i32
    %c0_i32_0 = arith.constant 0 : i32
    return %c0_i32, %arg0 : i32, i32
  }
  func.func @transform_3(%arg0: i32) -> (i32, i32) {
    %c0_i32 = arith.constant 0 : i32
    %c0_i32_0 = arith.constant 0 : i32
    return %c0_i32, %arg0 : i32, i32
  }
}

</mosaic_0001>

<bundles_post_ra>
// kernel: tpu_custom_call.1
= control target key start
LH: loop header
LB: loop body
LE: loop exit
PB: predicated region body
PF: predicated region fallthrough
CT: control target
= control target key end

     0   :  { %8 = vsyncpa [#allocation3], 0  ;;  %s7018_s0 = inlined_call_operand.hbm [shape: f32[49,768], index: 0, kind: input, shape index: {}]   ;;  %s7019_s1 = inlined_call_operand.hbm [shape: f32[3072,768], index: 1, kind: input, shape index: {}]   ;;  %s7020_s2 = inlined_call_operand.hbm [shape: f32[1,3072], index: 2, kind: input, shape index: {}]   ;;  %s7021_s3 = inlined_call_operand.hbm [shape: f32[49,3072], index: 3, kind: output, shape index: {}]  }
   0x1   :  { %9 = vsyncpa [#allocation6], 0 }
   0x2   :  { %11 = vsyncpa [#allocation6 + $0x1], 0 }
   0x3   :  { %12 = vsyncpa [#allocation4], 0 }
   0x4   :  { %14 = vsyncpa [#allocation4 + $0x1], 0  ;;  %s5395_s12 = smov 0   ;;  %s5397_s13 = smov 0  }
   0x5   :  { %s5399_s14 = smov 0   ;;  %s5401_s15 = smov 0  }
   0x6 LB: > { %s5416_s16 = sadd.s32 1, %s5364_s15   ;;  %s48_s17 = sadd.s32 1, %s5360_s14  ;;  %s5364_s15 = sphi %s5401_s15, %s7052_s15   ;;  %s5360_s14 = sphi %s5399_s14, %s7051_s14   ;;  %s5356_s13 = sphi %s5397_s13, %s7050_s13   ;;  %s5352_s12 = sphi %s5395_s12, %s7049_s12  }
   0x7   : > { %s45_s18 = ssub.s32 %s5364_s15, %s5416_s16  ;;  %p55_p0 = scmp.ne.s32.totalorder %s5360_s14, %s5356_s13 }
   0x8   : > { %p46_p1 = scmp.eq.s32.totalorder %s45_s18, 0  ;;  %p56_p2 = scmp.eq.s32.totalorder %s5364_s15, 0 }
   0x9   : > { %p5079_p5 = scmp.lt.s32.totalorder %s5364_s15, 2  ;;  %s150_s20 = sand.u32 1, %s5364_s15  }
   0xa   : > { %s5425_s19 = scalar_select %p46_p1, %s5360_s14, %s48_s17  }
   0xb   : > { %p57_p3 = por %p56_p2, %p55_p0  ;;  %s152_s21 = sand.u32 1, %s5360_s14  }
   0xc   : > { %s5047_s22 = smul.u32 9216, %s152_s21  ;;  %s5448_s30 = scalar_lea.sflag [#allocation6], %s150_s20 }
   0xd   : > { %p5436_p6 = pnand %p5079_p5, %p57_p3  ;;  %s5080_s24 = smul.u32 147456, %s5364_s15 }
   0xe   : > { %s154_s28 = scalar_lea.vmem [#allocation5], %s5047_s22  ;;  %s5211_s7 = scalar_lea.hbm %s7019_s1, 294912 }
   0xf   : > { %s7031_s23 = scalar_select %p5436_p6, 1, 0 }
  0x10   : > { %s5444_s27 = scalar_lea.hbm %s7019_s1, %s5080_s24  ;;  %s162_s29 = sshll.u32 %s154_s28, 4  ;;  %s5446_s29 = int_to_ptr.vmem [resolvable:$true] %s162_s29 }
  0x11   : > { %s5206_s4 = scalar_lea.hbm %s5444_s27, 147456  ;;  %p7025_p8 = pneg %p5436_p6 }
  0x12   : > { %p5207_p7 = scmp.ne.s32.totalorder %s5444_s27, %s5206_s4  ;;  %p5212_p11 = scmp.lt.u32.totalorder %s5444_s27, %s7019_s1 }
  0x13   : > { %p5213_p12 = scmp.lt.u32.totalorder %s5211_s7, %s5206_s4  ;;  %p5215_p1 = scmp.lt.u32.totalorder %s5206_s4, %s5444_s27 }
  0x14   : > { %p5209_p9 = pnand %p7025_p8, %p5207_p7 }
  0x15   : > { %p5214_p13 = por %p5213_p12, %p5212_p11 }
  0x16   : > { %p5210_p10 = pneg %p5209_p9 }
  0x17   : > { %p5216_p2 = por %p5215_p1, %p5214_p13 }
  0x19   : > { %p5217_p3 = pnand %p5216_p2, %p5210_p10 }
  0x1b   : > { %5220 = shalt.err (!%p5217_p3)
}
  0x1c   : > { %s5221_s10 = scalar_lea.vmem %s5446_s29, 147456  ;;  %s5366_s11 = smov [#allocation5]  }
  0x1d   : > { %p5222_p5 = scmp.ne.s32.totalorder %s5446_s29, %s5221_s10  ;;  %s5226_s17 = sshll.u32 %s5366_s11, 4  ;;  %s5227_s17 = int_to_ptr.vmem [resolvable:$false] %s5226_s17 }
  0x1e   : > { %s5228_s18 = scalar_lea.vmem %s5227_s17, 294912  ;;  %p5229_p4 = scmp.lt.s32.totalorder %s5446_s29, %s5227_s17 }
  0x1f   : > { %p5224_p7 = pnand %p5222_p5, %p7025_p8  ;;  %p5230_p11 = scmp.lt.s32.totalorder %s5228_s18, %s5221_s10 }
  0x21   : > { %p5225_p9 = pneg %p5224_p7  ;;  %p5231_p12 = por %p5230_p11, %p5229_p4 }
  0x23   : > { %p5232_p13 = pnand %p5231_p12, %p5225_p9 }
  0x25   : > { %5235 = shalt.err (!%p5232_p13)
}
  0x26   : > { %s7022_s20 = smov 768   ;;  %s7023_s22 = smov 48  }
  0x27   : > { %5070 = dma.hbm_to_vmem [thread:$0]  (!%p5436_p6), %s5444_s27, 147456, %s5446_s29, %s5448_s30, %s7022_s20, %s7022_s20, %s7023_s22  }
  0x28   : > { %s5480_s24 = sadd.s32 4294967295, %s5364_s15   ;;  %s3630_s25 = sadd.s32 4294967294, %s5364_s15  }
  0x29   : > { %p61_p4 = scmp.ne.s32.totalorder %s5356_s13, %s5352_s12  ;;  %p7024_p10 = scmp.eq.s32.totalorder %s5480_s24, 0 }
  0x2a   : > { %p111_p1 = scmp.eq.s32.totalorder %s5480_s24, 1  ;;  %p117_p2 = scmp.eq.s32.totalorder %s3630_s25, 1 }
  0x2b   : > { %p5489_p3 = por %p7024_p10, %p61_p4  ;;  %p3631_p5 = scmp.ge.s32.totalorder %s5364_s15, 1 }
  0x2c   : > { %p5497_p7 = por %p111_p1, %p55_p0  ;;  %p5501_p9 = por %p117_p2, %p61_p4 }
  0x2d   : > { %s7032_s26 = scalar_select %p5489_p3, 1, 0 }
  0x2e   : > { %s7033_s27 = scalar_select %p5497_p7, 1, 0 }
  0x2f   : > { %s7034_s28 = scalar_select %p5501_p9, 1, 0 }
  0x30   : > { %p124_p11 = scmp.lt.s32.totalorder %s5364_s15, 3  ;;  %s155_s29 = smul.u32 192, %s5364_s15 }
  0x31   : > { %s5369_s5 = smov [#allocation2]   ;;  %s5049_s7 = smul.u32 12, %s152_s21 }
  0x32   : > { %p5507_p12 = pnand %p3631_p5, %p124_p11  ;;  %s136_s6 = sshll.u32 %s5369_s5, 4  ;;  %s137_s6 = int_to_ptr.vmem [resolvable:$true] %s136_s6 }
  0x33   : > { %s176_s9 = scalar_lea.vmem [#allocation7], %s5049_s7  ;;  %s5524_s18 = scalar_lea.hbm %s7020_s2, %s155_s29 }
  0x34   : > { %s7035_s4 = scalar_select %p5507_p12, 1, 0 }
  0x35   : > { %p5063_p0 = pneg %p5507_p12  ;;  %s184_s10 = sshll.u32 %s176_s9, 4  ;;  %s5526_s10 = int_to_ptr.vmem [resolvable:$true] %s184_s10 }
  0x36   : > { %s5236_s5 = scalar_lea.hbm %s7018_s0, 5376 }
  0x37   : > { %p5517_p13 = pnand %p5063_p0, %p7024_p10  ;;  %p5237_p4 = scmp.ne.s32.totalorder %s7018_s0, %s5236_s5 }
  0x38   : > { %p5243_p11 = scmp.lt.u32.totalorder %s5236_s5, %s7018_s0 }
  0x39   : > { %p5238_p1 = pneg %p5517_p13 }
  0x3b   : > { %p5239_p2 = pnand %p5238_p1, %p5237_p4 }
  0x3d   : > { %p5240_p5 = pneg %p5239_p2 }
  0x3f   : > { %p5245_p0 = pnand %p5243_p11, %p5240_p5 }
  0x41   : > { %5248 = shalt.err (!%p5245_p0)
}
  0x42   : > { %s5249_s29 = scalar_lea.vmem %s137_s6, 5376  ;;  %p5257_p7 = scmp.lt.s32.totalorder %s137_s6, %s137_s6 }
  0x43   : > { %p5250_p10 = scmp.ne.s32.totalorder %s137_s6, %s5249_s29  ;;  %p5258_p3 = scmp.lt.s32.totalorder %s5249_s29, %s5249_s29 }
  0x45   : > { %p5252_p8 = pnand %p5250_p10, %p5238_p1  ;;  %p5259_p12 = por %p5258_p3, %p5257_p7 }
  0x47   : > { %p5253_p9 = pneg %p5252_p8 }
  0x49   : > { %p5260_p6 = pnand %p5259_p12, %p5253_p9 }
  0x4b   : > { %5263 = shalt.err (!%p5260_p6)
}
  0x4c   : > { %s7037_s20 = smov 48   ;;  %s7038_s22 = smov 768  }
  0x4d   : > { %5066 = dma.hbm_to_vmem [thread:$0]  (!%p5517_p13), %s7018_s0, 5376, %s137_s6, [#allocation3], %s7038_s22, %s7038_s22, %s7037_s20  }
  0x4e   : > { %s5264_s25 = scalar_lea.hbm %s5524_s18, 192  ;;  %p7039_p10 = scmp.ne.s32.totalorder %s7031_s23, 0 }
  0x4f   : > { %p5265_p8 = scmp.ne.s32.totalorder %s5524_s18, %s5264_s25  ;;  %s5269_s5 = scalar_lea.hbm %s7020_s2, 384 }
  0x50   : > { %p7040_p3 = pneg %p7039_p10  ;;  %p5270_p9 = scmp.lt.u32.totalorder %s5524_s18, %s7020_s2 }
  0x51   : > { %p5271_p12 = scmp.lt.u32.totalorder %s5269_s5, %s5264_s25  ;;  %p5273_p1 = scmp.lt.u32.totalorder %s5264_s25, %s5524_s18 }
  0x52   : > { %p5267_p7 = pnand %p5265_p8, %p7040_p3 }
  0x53   : > { %p5272_p4 = por %p5271_p12, %p5270_p9 }
  0x54   : > { %p5268_p6 = pneg %p5267_p7 }
  0x55   : > { %p5274_p2 = por %p5273_p1, %p5272_p4 }
  0x57   : > { %p5275_p5 = pnand %p5274_p2, %p5268_p6 }
  0x59   : > { %5278 = shalt.err (!%p5275_p5)
}
  0x5a   : > { %s5279_s6 = scalar_lea.vmem %s5526_s10, 192  ;;  %p7041_p11 = pmov %p7040_p3 }
  0x5b   : > { %p5280_p13 = scmp.ne.s32.totalorder %s5526_s10, %s5279_s6  ;;  %s5370_s29 = smov [#allocation7]  }
  0x5c   : > { %s5284_s20 = sshll.u32 %s5370_s29, 4  ;;  %s5285_s20 = int_to_ptr.vmem [resolvable:$false] %s5284_s20 }
  0x5d   : > { %p5282_p0 = pnand %p5280_p13, %p7041_p11  ;;  %s5286_s22 = scalar_lea.vmem %s5285_s20, 384 }
  0x5e   : > { %p5287_p3 = scmp.lt.s32.totalorder %s5526_s10, %s5285_s20  ;;  %p5288_p7 = scmp.lt.s32.totalorder %s5286_s22, %s5279_s6 }
  0x5f   : > { %p5283_p8 = pneg %p5282_p0 }
  0x60   : > { %p5289_p9 = por %p5288_p7, %p5287_p3 }
  0x62   : > { %p5290_p12 = pnand %p5289_p9, %p5283_p8 }
  0x64   : > { %5293 = shalt.err (!%p5290_p12)
}
  0x65   : > { %5073 = dma.hbm_to_vmem [thread:$0]  (!%p7039_p10), %s5524_s18, 192, %s5526_s10, %s5448_s30  }
  0x66   : > { %p7042_p6 = scmp.ne.s32.totalorder %s7035_s4, 0 }
  0x67   : > { %p7043_p4 = scmp.eq.s32.totalorder (!%p7042_p6), %s5480_s24, 0 }
  0x68   : > { %193 = sbr.rel (%p7042_p6) target bundleno = 1529 (0x5f9), region = 32 }
  0x6f   : > { %5339 = dma.done.wait (%p7043_p4), [#allocation3], 5376   ;;  %p7044_p1 = pmov %p7043_p4 }
  0x70   : > { %s199_s11 = sand.u32 1, %s5480_s24   ;;  %s5579_s17 = sand.u32 1, %s5356_s13  }
  0x71   : > { %5341 = vsyncadd (%p7044_p1), [#allocation3], 4294961920  ;;  %s5050_s23 = smul.u32 9216, %s5579_s17  ;;  %s200_s25 = scalar_lea.sflag [#allocation6], %s199_s11 }
  0x72   : > { %p7045_p10 = scmp.ne.s32.totalorder %s7032_s26, 0 }
  0x73   : > { %s5582_s21 = scalar_lea.vmem [#allocation5], %s5050_s23 }
  0x74   : > { %5343 = dma.done.wait (%p7045_p10), %s200_s25, 147648  }
  0x75   : > { %5345 = vsyncadd (%p7045_p10), %s200_s25, 4294819648  ;;  %v286_v0 = vld [vmem:[%s5582_s21 + $0x8] sm:$0xff]  ;;  %v292_v1 = vld [vmem:[%s5582_s21 + $0x38] sm:$0xff]  ;;  %s5051_s30 = smul.u32 12, %s5579_s17  ;;  %s3512_s9 = scalar_lea.sflag [#allocation4], %s5579_s17 }
  0x76   : > { %v478_v2 = vld [vmem:[%s5582_s21 + $0x608] sm:$0xff]  ;;  %v3643_v3 = vpack.c.bf16 %v292_v1, %v286_v0  ;;  %v484_v4 = vld [vmem:[%s5582_s21 + $0x638] sm:$0xff]  ;;  %v285_v5 = vld [vmem:[%s5582_s21] sm:$0xff]  ;;  %s5052_s4 = smul.u32 672, %s5579_s17  ;;  %p7046_p5 = scmp.ne.s32.totalorder %s7033_s27, 0 }
  0x77   : > { %v291_v6 = vld [vmem:[%s5582_s21 + $0x30] sm:$0xff]  ;;  %v3835_v7 = vpack.c.bf16 %v484_v4, %v478_v2  ;;  %v477_v9 = vld [vmem:[%s5582_s21 + $0x600] sm:$0xff]  ;;  %v298_v11 = vld [vmem:[%s5582_s21 + $0x68] sm:$0xff]  ;;  %s6196_s26 = scalar_lea.vmem [#allocation7], %s5051_s30  ;;  %s3642_s18 = smul.u32 1536, %s5480_s24 }
  0x78   : > { %v3645_v8 = vpack.c.bf16 %v291_v6, %v285_v5  ;;  %v483_v10 = vld [vmem:[%s5582_s21 + $0x630] sm:$0xff]  ;;  %3644 = vmatprep.subr.bf16.mxu0 %v3643_v3  ;;  %v304_v13 = vld [vmem:[%s5582_s21 + $0x98] sm:$0xff]  ;;  %v490_v14 = vld [vmem:[%s5582_s21 + $0x668] sm:$0xff]  ;;  %s6230_s10 = scalar_lea.vmem [#allocation8], %s5052_s4  ;;  %s5371_s29 = smov [#allocation8]  }
  0x79   : > { %v3837_v12 = vpack.c.bf16 %v483_v10, %v477_v9  ;;  %v496_v15 = vld [vmem:[%s5582_s21 + $0x698] sm:$0xff]  ;;  %3836 = vmatprep.subr.bf16.mxu1 %v3835_v7  ;;  %v3647_v16 = vpack.c.bf16 %v304_v13, %v298_v11  ;;  %v297_v18 = vld [vmem:[%s5582_s21 + $0x60] sm:$0xff]  ;;  %v303_v19 = vld [vmem:[%s5582_s21 + $0x90] sm:$0xff]  ;;  %s3525_s8 = sshll.u32 %s6230_s10, 4  ;;  %s6965_s7 = scalar_lea.hbm %s7021_s3, %s3642_s18  ;;  %s6969_s8 = int_to_ptr.vmem [resolvable:$true] %s3525_s8 }
  0x7a   : > { %3646 = vmatpush1.bf16.xpose.msra.mxu0 %v3645_v8  ;;  %v3839_v17 = vpack.c.bf16 %v496_v15, %v490_v14  ;;  %v489_v20 = vld [vmem:[%s5582_s21 + $0x660] sm:$0xff]  ;;  %v495_v21 = vld [vmem:[%s5582_s21 + $0x690] sm:$0xff]  ;;  %v310_v22 = vld [vmem:[%s5582_s21 + $0xc8] sm:$0xff]  ;;  %v3649_v26 = vpack.c.bf16 %v303_v19, %v297_v18  ;;  %s5294_s6 = scalar_lea.vmem %s6969_s8, 10752  ;;  %s5298_s20 = sshll.u32 %s5371_s29, 4  ;;  %s5299_s20 = int_to_ptr.vmem [resolvable:$false] %s5298_s20 }
  0x7b   : > { %3838 = vmatpush1.bf16.xpose.msra.mxu1 %v3837_v12  ;;  %3648 = vmatprep.subr.bf16.mxu0 %v3647_v16  ;;  %v316_v23 = vld [vmem:[%s5582_s21 + $0xf8] sm:$0xff]  ;;  %v502_v24 = vld [vmem:[%s5582_s21 + $0x6c8] sm:$0xff]  ;;  %v3841_v27 = vpack.c.bf16 %v495_v21, %v489_v20  ;;  %v309_v30 = vld [vmem:[%s5582_s21 + $0xc0] sm:$0xff]  ;;  %p5295_p2 = scmp.ne.s32.totalorder %s6969_s8, %s5294_s6  ;;  %s5300_s22 = scalar_lea.vmem %s5299_s20, 21504 }
  0x7c   : > { %3840 = vmatprep.subr.bf16.mxu1 %v3839_v17  ;;  %v508_v25 = vld [vmem:[%s5582_s21 + $0x6f8] sm:$0xff]  ;;  %v3651_v28 = vpack.c.bf16 %v316_v23, %v310_v22  ;;  %v315_v31 = vld [vmem:[%s5582_s21 + $0xf0] sm:$0xff]  ;;  %v501_v32 = vld [vmem:[%s5582_s21 + $0x6c0] sm:$0xff]  ;;  %p5301_p0 = scmp.lt.s32.totalorder %s6969_s8, %s5299_s20  ;;  %p5302_p8 = scmp.lt.s32.totalorder %s5300_s22, %s5294_s6 }
  0x7d   : > { %v3843_v29 = vpack.c.bf16 %v508_v25, %v502_v24  ;;  %v507_v33 = vld [vmem:[%s5582_s21 + $0x6f0] sm:$0xff]  ;;  %v322_v34 = vld [vmem:[%s5582_s21 + $0x128] sm:$0xff]  ;;  %v328_v35 = vld [vmem:[%s5582_s21 + $0x158] sm:$0xff]  ;;  %v3653_v38 = vpack.c.bf16 %v315_v31, %v309_v30  ;;  %p5296_p13 = pnand %p5295_p2, %p7046_p5 }
  0x7e   : > { %v514_v36 = vld [vmem:[%s5582_s21 + $0x728] sm:$0xff]  ;;  %v520_v37 = vld [vmem:[%s5582_s21 + $0x758] sm:$0xff]  ;;  %v3845_v39 = vpack.c.bf16 %v507_v33, %v501_v32  ;;  %v3655_v40 = vpack.c.bf16 %v328_v35, %v322_v34  ;;  %v321_v42 = vld [vmem:[%s5582_s21 + $0x120] sm:$0xff]  ;;  %p5303_p3 = por %p5302_p8, %p5301_p0 }
  0x7f   : > { %v3847_v41 = vpack.c.bf16 %v520_v37, %v514_v36  ;;  %v327_v43 = vld [vmem:[%s5582_s21 + $0x150] sm:$0xff]  ;;  %v513_v44 = vld [vmem:[%s5582_s21 + $0x720] sm:$0xff]  ;;  %v334_v46 = vld [vmem:[%s5582_s21 + $0x188] sm:$0xff]  ;;  %p5297_p11 = pneg %p5296_p13 }
  0x80   : > { %v519_v45 = vld [vmem:[%s5582_s21 + $0x750] sm:$0xff]  ;;  %v340_v47 = vld [vmem:[%s5582_s21 + $0x1b8] sm:$0xff]  ;;  %v526_v48 = vld [vmem:[%s5582_s21 + $0x788] sm:$0xff]  ;;  %v3657_v50 = vpack.c.bf16 %v327_v43, %v321_v42 }
  0x81   : > { %v532_v49 = vld [vmem:[%s5582_s21 + $0x7b8] sm:$0xff]  ;;  %v3849_v51 = vpack.c.bf16 %v519_v45, %v513_v44  ;;  %v3659_v52 = vpack.c.bf16 %v340_v47, %v334_v46  ;;  %v333_v54 = vld [vmem:[%s5582_s21 + $0x180] sm:$0xff]  ;;  %v339_v55 = vld [vmem:[%s5582_s21 + $0x1b0] sm:$0xff]  ;;  %p5304_p7 = pnand %p5303_p3, %p5297_p11 }
  0x82   : > { %3650 = vmatpush1.bf16.xpose.msra.mxu0 %v3649_v26  ;;  %v3851_v53 = vpack.c.bf16 %v532_v49, %v526_v48  ;;  %v525_v56 = vld [vmem:[%s5582_s21 + $0x780] sm:$0xff]  ;;  %v531_v57 = vld [vmem:[%s5582_s21 + $0x7b0] sm:$0xff]  ;;  %v346_v58 = vld [vmem:[%s5582_s21 + $0x1e8] sm:$0xff]  ;;  %v3661_v62 = vpack.c.bf16 %v339_v55, %v333_v54 }
  0x83   : > { %3842 = vmatpush1.bf16.xpose.msra.mxu1 %v3841_v27  ;;  %3652 = vmatprep.subr.bf16.mxu0 %v3651_v28  ;;  %v352_v59 = vld [vmem:[%s5582_s21 + $0x218] sm:$0xff]  ;;  %v538_v60 = vld [vmem:[%s5582_s21 + $0x7e8] sm:$0xff]  ;;  %v3853_v63 = vpack.c.bf16 %v531_v57, %v525_v56  ;;  %v345_v2 = vld [vmem:[%s5582_s21 + $0x1e0] sm:$0xff] }
  0x84   : > { %3844 = vmatprep.subr.bf16.mxu1 %v3843_v29  ;;  %v544_v61 = vld [vmem:[%s5582_s21 + $0x818] sm:$0xff]  ;;  %v3663_v0 = vpack.c.bf16 %v352_v59, %v346_v58  ;;  %v351_v3 = vld [vmem:[%s5582_s21 + $0x210] sm:$0xff]  ;;  %v537_v4 = vld [vmem:[%s5582_s21 + $0x7e0] sm:$0xff] }
  0x85   : > { %v3855_v1 = vpack.c.bf16 %v544_v61, %v538_v60  ;;  %v543_v5 = vld [vmem:[%s5582_s21 + $0x810] sm:$0xff]  ;;  %v358_v6 = vld [vmem:[%s5582_s21 + $0x248] sm:$0xff]  ;;  %v364_v7 = vld [vmem:[%s5582_s21 + $0x278] sm:$0xff]  ;;  %v3665_v10 = vpack.c.bf16 %v351_v3, %v345_v2 }
  0x86   : > { %v550_v8 = vld [vmem:[%s5582_s21 + $0x848] sm:$0xff]  ;;  %v556_v9 = vld [vmem:[%s5582_s21 + $0x878] sm:$0xff]  ;;  %v3857_v11 = vpack.c.bf16 %v543_v5, %v537_v4  ;;  %v3667_v12 = vpack.c.bf16 %v364_v7, %v358_v6  ;;  %v357_v15 = vld [vmem:[%s5582_s21 + $0x240] sm:$0xff] }
  0x87   : > { %v3859_v13 = vpack.c.bf16 %v556_v9, %v550_v8  ;;  %v244_v14 = vld [vmem:[#allocation2 + $0x8] sm:$0xff]  ;;  %v363_v16 = vld [vmem:[%s5582_s21 + $0x270] sm:$0xff]  ;;  %v549_v17 = vld [vmem:[%s5582_s21 + $0x840] sm:$0xff] }
  0x88   : > { %1565 = vmatprep.mubr.f32.mxu0 %v244_v14  ;;  %1886 = vmatprep.mubr.f32.mxu1 %v244_v14  ;;  %v555_v18 = vld [vmem:[%s5582_s21 + $0x870] sm:$0xff]  ;;  %v370_v19 = vld [vmem:[%s5582_s21 + $0x2a8] sm:$0xff]  ;;  %v376_v20 = vld [vmem:[%s5582_s21 + $0x2d8] sm:$0xff]  ;;  %v3669_v23 = vpack.c.bf16 %v363_v16, %v357_v15 }
  0x89   : > { %v562_v21 = vld [vmem:[%s5582_s21 + $0x8a8] sm:$0xff]  ;;  %v568_v22 = vld [vmem:[%s5582_s21 + $0x8d8] sm:$0xff]  ;;  %v3861_v24 = vpack.c.bf16 %v555_v18, %v549_v17  ;;  %v3671_v25 = vpack.c.bf16 %v376_v20, %v370_v19  ;;  %v369_v27 = vld [vmem:[%s5582_s21 + $0x2a0] sm:$0xff] }
  0x8a   : > { %3654 = vmatpush1.bf16.xpose.msra.mxu0 %v3653_v38  ;;  %v3863_v26 = vpack.c.bf16 %v568_v22, %v562_v21  ;;  %v375_v28 = vld [vmem:[%s5582_s21 + $0x2d0] sm:$0xff]  ;;  %v561_v29 = vld [vmem:[%s5582_s21 + $0x8a0] sm:$0xff]  ;;  %v382_v31 = vld [vmem:[%s5582_s21 + $0x308] sm:$0xff] }
  0x8b   : > { %3846 = vmatpush1.bf16.xpose.msra.mxu1 %v3845_v39  ;;  %3656 = vmatprep.subr.bf16.mxu0 %v3655_v40  ;;  %v567_v30 = vld [vmem:[%s5582_s21 + $0x8d0] sm:$0xff]  ;;  %v388_v32 = vld [vmem:[%s5582_s21 + $0x338] sm:$0xff]  ;;  %v574_v33 = vld [vmem:[%s5582_s21 + $0x908] sm:$0xff]  ;;  %v3673_v35 = vpack.c.bf16 %v375_v28, %v369_v27 }
  0x8c   : > { %3848 = vmatprep.subr.bf16.mxu1 %v3847_v41  ;;  %v580_v34 = vld [vmem:[%s5582_s21 + $0x938] sm:$0xff]  ;;  %v3865_v36 = vpack.c.bf16 %v567_v30, %v561_v29  ;;  %v3675_v37 = vpack.c.bf16 %v388_v32, %v382_v31  ;;  %v381_v39 = vld [vmem:[%s5582_s21 + $0x300] sm:$0xff]  ;;  %v387_v40 = vld [vmem:[%s5582_s21 + $0x330] sm:$0xff] }
  0x8d   : > { %v3867_v38 = vpack.c.bf16 %v580_v34, %v574_v33  ;;  %v573_v41 = vld [vmem:[%s5582_s21 + $0x900] sm:$0xff]  ;;  %v579_v42 = vld [vmem:[%s5582_s21 + $0x930] sm:$0xff]  ;;  %v394_v43 = vld [vmem:[%s5582_s21 + $0x368] sm:$0xff]  ;;  %v3677_v47 = vpack.c.bf16 %v387_v40, %v381_v39 }
  0x8e   : > { %v400_v44 = vld [vmem:[%s5582_s21 + $0x398] sm:$0xff]  ;;  %v586_v45 = vld [vmem:[%s5582_s21 + $0x968] sm:$0xff]  ;;  %v3869_v48 = vpack.c.bf16 %v579_v42, %v573_v41  ;;  %v591_v54 = vld [vmem:[%s5582_s21 + $0x990] sm:$0xff] }
  0x8f   : > { %v592_v46 = vld [vmem:[%s5582_s21 + $0x998] sm:$0xff]  ;;  %v3679_v49 = vpack.c.bf16 %v400_v44, %v394_v43  ;;  %v406_v55 = vld [vmem:[%s5582_s21 + $0x3c8] sm:$0xff]  ;;  %v603_v2 = vld [vmem:[%s5582_s21 + $0x9f0] sm:$0xff] }
  0x90   : > { %v412_v56 = vld [vmem:[%s5582_s21 + $0x3f8] sm:$0xff]  ;;  %v598_v57 = vld [vmem:[%s5582_s21 + $0x9c8] sm:$0xff]  ;;  %v615_v14 = vld [vmem:[%s5582_s21 + $0xa50] sm:$0xff] }
  0x91   : > { %v604_v58 = vld [vmem:[%s5582_s21 + $0x9f8] sm:$0xff]  ;;  %v3683_v61 = vpack.c.bf16 %v412_v56, %v406_v55  ;;  %v418_v3 = vld [vmem:[%s5582_s21 + $0x428] sm:$0xff] }
  0x92   : > { %3658 = vmatpush1.bf16.xpose.msra.mxu0 %v3657_v50  ;;  %v3871_v50 = vpack.c.bf16 %v592_v46, %v586_v45  ;;  %v424_v4 = vld [vmem:[%s5582_s21 + $0x458] sm:$0xff]  ;;  %v610_v5 = vld [vmem:[%s5582_s21 + $0xa28] sm:$0xff] }
  0x93   : > { %3850 = vmatpush1.bf16.xpose.msra.mxu1 %v3849_v51  ;;  %3660 = vmatprep.subr.bf16.mxu0 %v3659_v52  ;;  %v393_v51 = vld [vmem:[%s5582_s21 + $0x360] sm:$0xff]  ;;  %v399_v52 = vld [vmem:[%s5582_s21 + $0x390] sm:$0xff]  ;;  %v616_v6 = vld [vmem:[%s5582_s21 + $0xa58] sm:$0xff]  ;;  %v3687_v9 = vpack.c.bf16 %v424_v4, %v418_v3 }
  0x94   : > { %3852 = vmatprep.subr.bf16.mxu1 %v3851_v53  ;;  %v585_v53 = vld [vmem:[%s5582_s21 + $0x960] sm:$0xff]  ;;  %v3681_v59 = vpack.c.bf16 %v399_v52, %v393_v51  ;;  %v430_v15 = vld [vmem:[%s5582_s21 + $0x488] sm:$0xff]  ;;  %v436_v16 = vld [vmem:[%s5582_s21 + $0x4b8] sm:$0xff] }
  0x95   : > { %v3873_v60 = vpack.c.bf16 %v591_v54, %v585_v53  ;;  %v622_v17 = vld [vmem:[%s5582_s21 + $0xa88] sm:$0xff]  ;;  %v628_v18 = vld [vmem:[%s5582_s21 + $0xab8] sm:$0xff]  ;;  %v3691_v21 = vpack.c.bf16 %v436_v16, %v430_v15  ;;  %v243_v15 = vld [vmem:[#allocation2] sm:$0xff] }
  0x96   : > { %v3883_v22 = vpack.c.bf16 %v628_v18, %v622_v17  ;;  %v442_v27 = vld [vmem:[%s5582_s21 + $0x4e8] sm:$0xff]  ;;  %v448_v28 = vld [vmem:[%s5582_s21 + $0x518] sm:$0xff] }
  0x97   : > { %v634_v29 = vld [vmem:[%s5582_s21 + $0xae8] sm:$0xff]  ;;  %v640_v30 = vld [vmem:[%s5582_s21 + $0xb18] sm:$0xff]  ;;  %v3695_v33 = vpack.c.bf16 %v448_v28, %v442_v27 }
  0x98   : > { %v3887_v34 = vpack.c.bf16 %v640_v30, %v634_v29  ;;  %v454_v39 = vld [vmem:[%s5582_s21 + $0x548] sm:$0xff]  ;;  %v460_v40 = vld [vmem:[%s5582_s21 + $0x578] sm:$0xff] }
  0x99   : > { %v646_v41 = vld [vmem:[%s5582_s21 + $0xb48] sm:$0xff]  ;;  %v652_v42 = vld [vmem:[%s5582_s21 + $0xb78] sm:$0xff]  ;;  %v3699_v45 = vpack.c.bf16 %v460_v40, %v454_v39  ;;  %v317_v39 = vld [vmem:[%s5582_s21 + $0x100] sm:$0xff] }
  0x9a   : > { %3662 = vmatpush1.bf16.xpose.msra.mxu0 %v3661_v62  ;;  %v3875_v62 = vpack.c.bf16 %v604_v58, %v598_v57  ;;  %v3891_v46 = vpack.c.bf16 %v652_v42, %v646_v41  ;;  %v466_v51 = vld [vmem:[%s5582_s21 + $0x5a8] sm:$0xff]  ;;  %v472_v52 = vld [vmem:[%s5582_s21 + $0x5d8] sm:$0xff]  ;;  %v503_v40 = vld [vmem:[%s5582_s21 + $0x6d0] sm:$0xff] }
  0x9b   : > { %3854 = vmatpush1.bf16.xpose.msra.mxu1 %v3853_v63  ;;  %3664 = vmatprep.subr.bf16.mxu0 %v3663_v0  ;;  %v405_v63 = vld [vmem:[%s5582_s21 + $0x3c0] sm:$0xff]  ;;  %v411_v0 = vld [vmem:[%s5582_s21 + $0x3f0] sm:$0xff]  ;;  %v658_v53 = vld [vmem:[%s5582_s21 + $0xba8] sm:$0xff]  ;;  %v3703_v57 = vpack.c.bf16 %v472_v52, %v466_v51 }
  0x9c   : > { %3856 = vmatprep.subr.bf16.mxu1 %v3855_v1  ;;  %v597_v1 = vld [vmem:[%s5582_s21 + $0x9c0] sm:$0xff]  ;;  %v3685_v7 = vpack.c.bf16 %v411_v0, %v405_v63  ;;  %v664_v54 = vld [vmem:[%s5582_s21 + $0xbd8] sm:$0xff]  ;;  %v294_v0 = vld [vmem:[%s5582_s21 + $0x48] sm:$0xff] }
  0x9d   : > { %v3877_v8 = vpack.c.bf16 %v603_v2, %v597_v1  ;;  %v3895_v58 = vpack.c.bf16 %v664_v54, %v658_v53  ;;  %v288_v63 = vld [vmem:[%s5582_s21 + $0x18] sm:$0xff]  ;;  %v486_v2 = vld [vmem:[%s5582_s21 + $0x648] sm:$0xff]  ;;  %v509_v42 = vld [vmem:[%s5582_s21 + $0x700] sm:$0xff] }
  0x9e   : > { %v480_v1 = vld [vmem:[%s5582_s21 + $0x618] sm:$0xff]  ;;  %v318_v28 = vld [vmem:[%s5582_s21 + $0x108] sm:$0xff]  ;;  %v323_v53 = vld [vmem:[%s5582_s21 + $0x130] sm:$0xff] }
  0x9f   : > { %v312_v27 = vld [vmem:[%s5582_s21 + $0xd8] sm:$0xff]  ;;  %v510_v30 = vld [vmem:[%s5582_s21 + $0x708] sm:$0xff]  ;;  %v273_v54 = vld [vmem:[#allocation2 + $0xf0] sm:$0xff] }
  0xa0   : > { %v504_v29 = vld [vmem:[%s5582_s21 + $0x6d8] sm:$0xff]  ;;  %v274_v52 = vld [vmem:[#allocation2 + $0xf8] sm:$0xff] }
  0xa1   : > { %v268_v41 = vld [vmem:[#allocation2 + $0xc8] sm:$0xff] }
  0xa2   : > { %3666 = vmatpush1.bf16.xpose.msra.mxu0 %v3665_v10  ;;  %v3879_v10 = vpack.c.bf16 %v616_v6, %v610_v5  ;;  %v3707_v5 = vpack.c.bf16 %v294_v0, %v288_v63  ;;  %v3899_v6 = vpack.c.bf16 %v486_v2, %v480_v1  ;;  %v279_v0 = vld [vmem:[#allocation2 + $0x120] sm:$0x1] }
  0xa3   : > { %3858 = vmatpush1.bf16.xpose.msra.mxu1 %v3857_v11  ;;  %3668 = vmatprep.subr.bf16.mxu0 %v3667_v12  ;;  %v417_v11 = vld [vmem:[%s5582_s21 + $0x420] sm:$0xff]  ;;  %v423_v12 = vld [vmem:[%s5582_s21 + $0x450] sm:$0xff] }
  0xa4   : > { %3860 = vmatprep.subr.bf16.mxu1 %v3859_v13  ;;  %v609_v13 = vld [vmem:[%s5582_s21 + $0xa20] sm:$0xff]  ;;  %v3689_v19 = vpack.c.bf16 %v423_v12, %v417_v11  ;;  %v300_v11 = vld [vmem:[%s5582_s21 + $0x78] sm:$0xff]  ;;  %v306_v12 = vld [vmem:[%s5582_s21 + $0xa8] sm:$0xff] }
  0xa5   : > { %v3881_v20 = vpack.c.bf16 %v615_v14, %v609_v13  ;;  %v492_v13 = vld [vmem:[%s5582_s21 + $0x678] sm:$0xff]  ;;  %v498_v14 = vld [vmem:[%s5582_s21 + $0x6a8] sm:$0xff]  ;;  %v3711_v18 = vpack.c.bf16 %v306_v12, %v300_v11 }
  0xa6   : > { %v540_v11 = vld [vmem:[%s5582_s21 + $0x7f8] sm:$0xff]  ;;  %v546_v12 = vld [vmem:[%s5582_s21 + $0x828] sm:$0xff] }
  0xaa   : > { %3670 = vmatpush1.bf16.xpose.msra.mxu0 %v3669_v23  ;;  %v429_v23 = vld [vmem:[%s5582_s21 + $0x480] sm:$0xff] }
  0xab   : > { %3862 = vmatpush1.bf16.xpose.msra.mxu1 %v3861_v24  ;;  %3672 = vmatprep.subr.bf16.mxu0 %v3671_v25  ;;  %v435_v24 = vld [vmem:[%s5582_s21 + $0x4b0] sm:$0xff]  ;;  %v621_v25 = vld [vmem:[%s5582_s21 + $0xa80] sm:$0xff] }
  0xac   : > { %3864 = vmatprep.subr.bf16.mxu1 %v3863_v26  ;;  %v627_v26 = vld [vmem:[%s5582_s21 + $0xab0] sm:$0xff]  ;;  %v3693_v31 = vpack.c.bf16 %v435_v24, %v429_v23  ;;  %v305_v23 = vld [vmem:[%s5582_s21 + $0xa0] sm:$0xff] }
  0xad   : > { %v3885_v32 = vpack.c.bf16 %v627_v26, %v621_v25  ;;  %v491_v24 = vld [vmem:[%s5582_s21 + $0x670] sm:$0xff]  ;;  %v256_v25 = vld [vmem:[#allocation2 + $0x68] sm:$0xff]  ;;  %v497_v26 = vld [vmem:[%s5582_s21 + $0x6a0] sm:$0xff] }
  0xb2   : > { %3674 = vmatpush1.bf16.xpose.msra.mxu0 %v3673_v35  ;;  %v441_v35 = vld [vmem:[%s5582_s21 + $0x4e0] sm:$0xff] }
  0xb3   : > { %3866 = vmatpush1.bf16.xpose.msra.mxu1 %v3865_v36  ;;  %3676 = vmatprep.subr.bf16.mxu0 %v3675_v37  ;;  %v447_v36 = vld [vmem:[%s5582_s21 + $0x510] sm:$0xff]  ;;  %v633_v37 = vld [vmem:[%s5582_s21 + $0xae0] sm:$0xff] }
  0xb4   : > { %3868 = vmatprep.subr.bf16.mxu1 %v3867_v38  ;;  %v639_v38 = vld [vmem:[%s5582_s21 + $0xb10] sm:$0xff]  ;;  %v3697_v43 = vpack.c.bf16 %v447_v36, %v441_v35  ;;  %v3907_v35 = vpack.c.bf16 %v510_v30, %v504_v29  ;;  %v262_v36 = vld [vmem:[#allocation2 + $0x98] sm:$0xff]  ;;  %v365_v30 = vld [vmem:[%s5582_s21 + $0x280] sm:$0xff] }
  0xb5   : > { %v3889_v44 = vpack.c.bf16 %v639_v38, %v633_v37  ;;  %v311_v37 = vld [vmem:[%s5582_s21 + $0xd0] sm:$0xff]  ;;  %v261_v38 = vld [vmem:[#allocation2 + $0x90] sm:$0xff] }
  0xb6   : > { %v359_v29 = vld [vmem:[%s5582_s21 + $0x250] sm:$0xff] }
  0xba   : > { %3678 = vmatpush1.bf16.xpose.msra.mxu0 %v3677_v47  ;;  %v453_v47 = vld [vmem:[%s5582_s21 + $0x540] sm:$0xff] }
  0xbb   : > { %3870 = vmatpush1.bf16.xpose.msra.mxu1 %v3869_v48  ;;  %3680 = vmatprep.subr.bf16.mxu0 %v3679_v49  ;;  %v459_v48 = vld [vmem:[%s5582_s21 + $0x570] sm:$0xff]  ;;  %v645_v49 = vld [vmem:[%s5582_s21 + $0xb40] sm:$0xff] }
  0xbc   : > { %3872 = vmatprep.subr.bf16.mxu1 %v3871_v50  ;;  %v651_v50 = vld [vmem:[%s5582_s21 + $0xb70] sm:$0xff]  ;;  %v3701_v55 = vpack.c.bf16 %v459_v48, %v453_v47  ;;  %v3717_v47 = vpack.c.bf16 %v317_v39, %v311_v37  ;;  %v3733_v37 = vpack.c.bf16 %v365_v30, %v359_v29  ;;  %v432_v29 = vld [vmem:[%s5582_s21 + $0x498] sm:$0xff]  ;;  %v438_v30 = vld [vmem:[%s5582_s21 + $0x4c8] sm:$0xff] }
  0xbd   : > { %v3893_v56 = vpack.c.bf16 %v651_v50, %v645_v49  ;;  %v267_v48 = vld [vmem:[#allocation2 + $0xc0] sm:$0xff]  ;;  %v3909_v49 = vpack.c.bf16 %v509_v42, %v503_v40  ;;  %v377_v42 = vld [vmem:[%s5582_s21 + $0x2e0] sm:$0xff] }
  0xc2   : > { %3682 = vmatpush1.bf16.xpose.msra.mxu0 %v3681_v59  ;;  %v465_v59 = vld [vmem:[%s5582_s21 + $0x5a0] sm:$0xff] }
  0xc3   : > { %3874 = vmatpush1.bf16.xpose.msra.mxu1 %v3873_v60  ;;  %3684 = vmatprep.subr.bf16.mxu0 %v3683_v61  ;;  %v471_v60 = vld [vmem:[%s5582_s21 + $0x5d0] sm:$0xff]  ;;  %v657_v61 = vld [vmem:[%s5582_s21 + $0xba0] sm:$0xff] }
  0xc4   : > { %3876 = vmatprep.subr.bf16.mxu1 %v3875_v62  ;;  %v663_v62 = vld [vmem:[%s5582_s21 + $0xbd0] sm:$0xff]  ;;  %v3705_v3 = vpack.c.bf16 %v471_v60, %v465_v59  ;;  %v336_v59 = vld [vmem:[%s5582_s21 + $0x198] sm:$0xff]  ;;  %v342_v60 = vld [vmem:[%s5582_s21 + $0x1c8] sm:$0xff] }
  0xc5   : > { %v3897_v4 = vpack.c.bf16 %v663_v62, %v657_v61  ;;  %v528_v61 = vld [vmem:[%s5582_s21 + $0x798] sm:$0xff]  ;;  %v534_v62 = vld [vmem:[%s5582_s21 + $0x7c8] sm:$0xff]  ;;  %v3723_v2 = vpack.c.bf16 %v342_v60, %v336_v59 }
  0xc6   : > { %v588_v59 = vld [vmem:[%s5582_s21 + $0x978] sm:$0xff]  ;;  %v594_v60 = vld [vmem:[%s5582_s21 + $0x9a8] sm:$0xff] }
  0xca   : > { %3686 = vmatpush1.bf16.xpose.msra.mxu0 %v3685_v7  ;;  %v287_v7 = vld [vmem:[%s5582_s21 + $0x10] sm:$0xff] }
  0xcb   : > { %3878 = vmatpush1.bf16.xpose.msra.mxu1 %v3877_v8  ;;  %3688 = vmatprep.subr.bf16.mxu0 %v3687_v9  ;;  %v293_v8 = vld [vmem:[%s5582_s21 + $0x40] sm:$0xff]  ;;  %v479_v9 = vld [vmem:[%s5582_s21 + $0x610] sm:$0xff] }
  0xcc   : > { %3880 = vmatprep.subr.bf16.mxu1 %v3879_v10  ;;  %v485_v10 = vld [vmem:[%s5582_s21 + $0x640] sm:$0xff]  ;;  %v3709_v16 = vpack.c.bf16 %v293_v8, %v287_v7  ;;  %v527_v7 = vld [vmem:[%s5582_s21 + $0x790] sm:$0xff] }
  0xcd   : > { %v3901_v17 = vpack.c.bf16 %v485_v10, %v479_v9  ;;  %v533_v8 = vld [vmem:[%s5582_s21 + $0x7c0] sm:$0xff]  ;;  %v348_v9 = vld [vmem:[%s5582_s21 + $0x1f8] sm:$0xff]  ;;  %v354_v10 = vld [vmem:[%s5582_s21 + $0x228] sm:$0xff] }
  0xd2   : > { %3690 = vmatpush1.bf16.xpose.msra.mxu0 %v3689_v19  ;;  %v3903_v19 = vpack.c.bf16 %v498_v14, %v492_v13  ;;  %v3917_v14 = vpack.c.bf16 %v533_v8, %v527_v7  ;;  %v600_v7 = vld [vmem:[%s5582_s21 + $0x9d8] sm:$0xff]  ;;  %v606_v8 = vld [vmem:[%s5582_s21 + $0xa08] sm:$0xff] }
  0xd3   : > { %3882 = vmatpush1.bf16.xpose.msra.mxu1 %v3881_v20  ;;  %3692 = vmatprep.subr.bf16.mxu0 %v3691_v21  ;;  %v250_v20 = vld [vmem:[#allocation2 + $0x38] sm:$0xff]  ;;  %v299_v21 = vld [vmem:[%s5582_s21 + $0x70] sm:$0xff] }
  0xd4   : > { %3884 = vmatprep.subr.bf16.mxu1 %v3883_v22  ;;  %v249_v22 = vld [vmem:[#allocation2 + $0x30] sm:$0xff] }
  0xda   : > { %3694 = vmatpush1.bf16.xpose.msra.mxu0 %v3693_v31  ;;  %v3713_v31 = vpack.c.bf16 %v305_v23, %v299_v21  ;;  %v360_v21 = vld [vmem:[%s5582_s21 + $0x258] sm:$0xff] }
  0xdb   : > { %3886 = vmatpush1.bf16.xpose.msra.mxu1 %v3885_v32  ;;  %3696 = vmatprep.subr.bf16.mxu0 %v3695_v33  ;;  %v255_v32 = vld [vmem:[#allocation2 + $0x60] sm:$0xff]  ;;  %v3905_v33 = vpack.c.bf16 %v497_v26, %v491_v24  ;;  %v552_v23 = vld [vmem:[%s5582_s21 + $0x858] sm:$0xff]  ;;  %v558_v24 = vld [vmem:[%s5582_s21 + $0x888] sm:$0xff] }
  0xdc   : > { %3888 = vmatprep.subr.bf16.mxu1 %v3887_v34  ;;  %v3715_v34 = vpack.c.bf16 %v318_v28, %v312_v27  ;;  %v3923_v28 = vpack.c.bf16 %v558_v24, %v552_v23 }
  0xe2   : > { %3698 = vmatpush1.bf16.xpose.msra.mxu0 %v3697_v43  ;;  %v324_v43 = vld [vmem:[%s5582_s21 + $0x138] sm:$0xff] }
  0xe3   : > { %3890 = vmatpush1.bf16.xpose.msra.mxu1 %v3889_v44  ;;  %3700 = vmatprep.subr.bf16.mxu0 %v3699_v45  ;;  %v330_v44 = vld [vmem:[%s5582_s21 + $0x168] sm:$0xff]  ;;  %v516_v45 = vld [vmem:[%s5582_s21 + $0x738] sm:$0xff] }
  0xe4   : > { %3892 = vmatprep.subr.bf16.mxu1 %v3891_v46  ;;  %v522_v46 = vld [vmem:[%s5582_s21 + $0x768] sm:$0xff]  ;;  %v3719_v50 = vpack.c.bf16 %v330_v44, %v324_v43  ;;  %v563_v43 = vld [vmem:[%s5582_s21 + $0x8b0] sm:$0xff]  ;;  %v569_v44 = vld [vmem:[%s5582_s21 + $0x8e0] sm:$0xff] }
  0xe5   : > { %v3911_v51 = vpack.c.bf16 %v522_v46, %v516_v45  ;;  %v384_v45 = vld [vmem:[%s5582_s21 + $0x318] sm:$0xff]  ;;  %v390_v46 = vld [vmem:[%s5582_s21 + $0x348] sm:$0xff] }
  0xea   : > { %3702 = vmatpush1.bf16.xpose.msra.mxu0 %v3701_v55  ;;  %v329_v55 = vld [vmem:[%s5582_s21 + $0x160] sm:$0xff] }
  0xeb   : > { %3894 = vmatpush1.bf16.xpose.msra.mxu1 %v3893_v56  ;;  %3704 = vmatprep.subr.bf16.mxu0 %v3703_v57  ;;  %v515_v56 = vld [vmem:[%s5582_s21 + $0x730] sm:$0xff]  ;;  %v280_v57 = vld [vmem:[#allocation2 + $0x128] sm:$0x1]  ;;  %v3721_v63 = vpack.c.bf16 %v329_v55, %v323_v53 }
  0xec   : > { %3896 = vmatprep.subr.bf16.mxu1 %v3895_v58  ;;  %v521_v58 = vld [vmem:[%s5582_s21 + $0x760] sm:$0xff]  ;;  %v383_v53 = vld [vmem:[%s5582_s21 + $0x310] sm:$0xff] }
  0xed   : > { %v3913_v1 = vpack.c.bf16 %v521_v58, %v515_v56  ;;  %v575_v55 = vld [vmem:[%s5582_s21 + $0x910] sm:$0xff]  ;;  %v581_v56 = vld [vmem:[%s5582_s21 + $0x940] sm:$0xff]  ;;  %v402_v58 = vld [vmem:[%s5582_s21 + $0x3a8] sm:$0xff] }
  0xf2   : > { %3706 = vmatpush1.bf16.xpose.msra.mxu0 %v3705_v3  ;;  %v3915_v3 = vpack.c.bf16 %v534_v62, %v528_v61  ;;  %v3933_v62 = vpack.c.bf16 %v581_v56, %v575_v55  ;;  %v648_v55 = vld [vmem:[%s5582_s21 + $0xb58] sm:$0xff]  ;;  %v654_v56 = vld [vmem:[%s5582_s21 + $0xb88] sm:$0xff] }
  0xf3   : > { %3898 = vmatpush1.bf16.xpose.msra.mxu1 %v3897_v4  ;;  %3708 = vmatprep.subr.bf16.mxu0 %v3707_v5  ;;  %v246_v4 = vld [vmem:[#allocation2 + $0x18] sm:$0xff]  ;;  %v335_v5 = vld [vmem:[%s5582_s21 + $0x190] sm:$0xff] }
  0xf4   : > { %3900 = vmatprep.subr.bf16.mxu1 %v3899_v6  ;;  %v341_v6 = vld [vmem:[%s5582_s21 + $0x1c0] sm:$0xff] }
  0xf5   : > { %v3725_v13 = vpack.c.bf16 %v341_v6, %v335_v5  ;;  %v408_v5 = vld [vmem:[%s5582_s21 + $0x3d8] sm:$0xff]  ;;  %v414_v6 = vld [vmem:[%s5582_s21 + $0x408] sm:$0xff] }
  0xf9   : > { %1566 = vmatmul.mubr.f32.vlgmr.msra.gmra.mrb[0].mxu0 %v243_v15 }
  0xfa   : > { %3710 = vmatpush1.bf16.xpose.msra.mxu0 %v3709_v16  ;;  %1887 = vmatmul.mubr.f32.vlgmr.msra.gmra.mrb[0].mxu1 %v243_v15  ;;  %v3727_v15 = vpack.c.bf16 %v354_v10, %v348_v9  ;;  %v3919_v16 = vpack.c.bf16 %v546_v12, %v540_v11  ;;  %v3747_v11 = vpack.c.bf16 %v414_v6, %v408_v5 }
  0xfb   : > { %3902 = vmatpush1.bf16.xpose.msra.mxu1 %v3901_v17  ;;  %3712 = vmatprep.subr.bf16.mxu0 %v3711_v18  ;;  %v347_v17 = vld [vmem:[%s5582_s21 + $0x1f0] sm:$0xff]  ;;  %v353_v18 = vld [vmem:[%s5582_s21 + $0x220] sm:$0xff]  ;;  %v3939_v12 = vpack.c.bf16 %v606_v8, %v600_v7 }
  0xfc   : > { %3904 = vmatprep.subr.bf16.mxu1 %v3903_v19  ;;  %1571 = vmatprep.mubr.f32.mxu0 %v250_v20  ;;  %v539_v19 = vld [vmem:[%s5582_s21 + $0x7f0] sm:$0xff] }
  0xfd   : > { %1892 = vmatprep.mubr.f32.mxu1 %v250_v20  ;;  %1572 = vmatmul.mubr.f32.gmra.mrb[2].mxu0 %v249_v22  ;;  %v545_v20 = vld [vmem:[%s5582_s21 + $0x820] sm:$0xff] }
  0xfe   : > { %1893 = vmatmul.mubr.f32.gmra.mrb[2].mxu1 %v249_v22  ;;  %1577 = vmatprep.mubr.f32.mxu0 %v256_v25  ;;  %v366_v22 = vld [vmem:[%s5582_s21 + $0x288] sm:$0xff]  ;;  %v3921_v26 = vpack.c.bf16 %v545_v20, %v539_v19  ;;  %v612_v19 = vld [vmem:[%s5582_s21 + $0xa38] sm:$0xff] }
  0xff   : > { %1898 = vmatprep.mubr.f32.mxu1 %v256_v25  ;;  %v3729_v25 = vpack.c.bf16 %v353_v18, %v347_v17  ;;  %v3731_v27 = vpack.c.bf16 %v366_v22, %v360_v21  ;;  %v420_v17 = vld [vmem:[%s5582_s21 + $0x438] sm:$0xff]  ;;  %v426_v18 = vld [vmem:[%s5582_s21 + $0x468] sm:$0xff] }
 0x100   : > { %v618_v20 = vld [vmem:[%s5582_s21 + $0xa68] sm:$0xff]  ;;  %v3751_v23 = vpack.c.bf16 %v426_v18, %v420_v17 }
 0x101   : > { %1578 = vmatmul.mubr.f32.gmra.mrb[4].mxu0 %v255_v32  ;;  %v3943_v24 = vpack.c.bf16 %v618_v20, %v612_v19 }
 0x102   : > { %3714 = vmatpush1.bf16.xpose.msra.mxu0 %v3713_v31  ;;  %1899 = vmatmul.mubr.f32.gmra.mrb[4].mxu1 %v255_v32  ;;  %v551_v31 = vld [vmem:[%s5582_s21 + $0x850] sm:$0xff]  ;;  %v557_v32 = vld [vmem:[%s5582_s21 + $0x880] sm:$0xff] }
 0x103   : > { %3906 = vmatpush1.bf16.xpose.msra.mxu1 %v3905_v33  ;;  %3716 = vmatprep.subr.bf16.mxu0 %v3715_v34  ;;  %v372_v33 = vld [vmem:[%s5582_s21 + $0x2b8] sm:$0xff]  ;;  %v378_v34 = vld [vmem:[%s5582_s21 + $0x2e8] sm:$0xff] }
 0x104   : > { %3908 = vmatprep.subr.bf16.mxu1 %v3907_v35  ;;  %1583 = vmatprep.mubr.f32.mxu0 %v262_v36  ;;  %v564_v35 = vld [vmem:[%s5582_s21 + $0x8b8] sm:$0xff]  ;;  %v3735_v39 = vpack.c.bf16 %v378_v34, %v372_v33 }
 0x105   : > { %1904 = vmatprep.mubr.f32.mxu1 %v262_v36  ;;  %1584 = vmatmul.mubr.f32.gmra.mrb[6].mxu0 %v261_v38  ;;  %v570_v36 = vld [vmem:[%s5582_s21 + $0x8e8] sm:$0xff] }
 0x106   : > { %1905 = vmatmul.mubr.f32.gmra.mrb[6].mxu1 %v261_v38  ;;  %1589 = vmatprep.mubr.f32.mxu0 %v268_v41  ;;  %v3925_v38 = vpack.c.bf16 %v557_v32, %v551_v31  ;;  %v3927_v40 = vpack.c.bf16 %v570_v36, %v564_v35  ;;  %v624_v31 = vld [vmem:[%s5582_s21 + $0xa98] sm:$0xff]  ;;  %v630_v32 = vld [vmem:[%s5582_s21 + $0xac8] sm:$0xff]  ;;  %v3755_v35 = vpack.c.bf16 %v438_v30, %v432_v29  ;;  %v245_v29 = vld [vmem:[#allocation2 + $0x10] sm:$0xff] }
 0x107   : > { %1910 = vmatprep.mubr.f32.mxu1 %v268_v41  ;;  %v371_v41 = vld [vmem:[%s5582_s21 + $0x2b0] sm:$0xff]  ;;  %v3947_v36 = vpack.c.bf16 %v630_v32, %v624_v31 }
 0x109   : > { %1590 = vmatmul.mubr.f32.gmra.mrb[8].mxu0 %v267_v48 }
 0x10a   : > { %3718 = vmatpush1.bf16.xpose.msra.mxu0 %v3717_v47  ;;  %1911 = vmatmul.mubr.f32.gmra.mrb[8].mxu1 %v267_v48  ;;  %v576_v47 = vld [vmem:[%s5582_s21 + $0x918] sm:$0xff]  ;;  %v582_v48 = vld [vmem:[%s5582_s21 + $0x948] sm:$0xff] }
 0x10b   : > { %3910 = vmatpush1.bf16.xpose.msra.mxu1 %v3909_v49  ;;  %3720 = vmatprep.subr.bf16.mxu0 %v3719_v50  ;;  %v3737_v49 = vpack.c.bf16 %v377_v42, %v371_v41  ;;  %v3929_v50 = vpack.c.bf16 %v569_v44, %v563_v43  ;;  %v444_v41 = vld [vmem:[%s5582_s21 + $0x4f8] sm:$0xff]  ;;  %v450_v42 = vld [vmem:[%s5582_s21 + $0x528] sm:$0xff] }
 0x10c   : > { %3912 = vmatprep.subr.bf16.mxu1 %v3911_v51  ;;  %1595 = vmatprep.mubr.f32.mxu0 %v274_v52  ;;  %v3739_v51 = vpack.c.bf16 %v390_v46, %v384_v45  ;;  %v636_v43 = vld [vmem:[%s5582_s21 + $0xaf8] sm:$0xff]  ;;  %v642_v44 = vld [vmem:[%s5582_s21 + $0xb28] sm:$0xff] }
 0x10d   : > { %1916 = vmatprep.mubr.f32.mxu1 %v274_v52  ;;  %1596 = vmatmul.mubr.f32.gmra.mrb[10].mxu0 %v273_v54  ;;  %v3931_v52 = vpack.c.bf16 %v582_v48, %v576_v47  ;;  %v3759_v47 = vpack.c.bf16 %v450_v42, %v444_v41  ;;  %v3951_v48 = vpack.c.bf16 %v642_v44, %v636_v43  ;;  %v314_v41 = vld [vmem:[%s5582_s21 + $0xe8] sm:$0xff]  ;;  %v320_v42 = vld [vmem:[%s5582_s21 + $0x118] sm:$0xff] }
 0x10e   : > { %1917 = vmatmul.mubr.f32.gmra.mrb[10].mxu1 %v273_v54  ;;  %1601 = vmatprep.mubr.f32.mxu0 %v280_v57  ;;  %v389_v54 = vld [vmem:[%s5582_s21 + $0x340] sm:$0xff]  ;;  %v506_v43 = vld [vmem:[%s5582_s21 + $0x6e8] sm:$0xff]  ;;  %v512_v44 = vld [vmem:[%s5582_s21 + $0x718] sm:$0xff] }
 0x10f   : > { %1922 = vmatprep.mubr.f32.mxu1 %v280_v57  ;;  %v396_v57 = vld [vmem:[%s5582_s21 + $0x378] sm:$0xff]  ;;  %v3741_v61 = vpack.c.bf16 %v389_v54, %v383_v53  ;;  %v462_v54 = vld [vmem:[%s5582_s21 + $0x588] sm:$0xff] }
 0x110   : > { %v456_v53 = vld [vmem:[%s5582_s21 + $0x558] sm:$0xff] }
 0x111   : > { %1602 = vmatmul.mubr.f32.gmra.mrb[12].mxu0 %v279_v0 }
 0x112   : > { %3722 = vmatpush1.bf16.xpose.msra.mxu0 %v3721_v63  ;;  %1923 = vmatmul.mubr.f32.gmra.mrb[12].mxu1 %v279_v0  ;;  %v3743_v63 = vpack.c.bf16 %v402_v58, %v396_v57  ;;  %v3935_v0 = vpack.c.bf16 %v594_v60, %v588_v59  ;;  %v3763_v59 = vpack.c.bf16 %v462_v54, %v456_v53  ;;  %v319_v53 = vld [vmem:[%s5582_s21 + $0x110] sm:$0xff]  ;;  %v505_v54 = vld [vmem:[%s5582_s21 + $0x6e0] sm:$0xff] }
 0x113   : > { %3914 = vmatpush1.bf16.xpose.msra.mxu1 %v3913_v1  ;;  %3724 = vmatprep.subr.bf16.mxu0 %v3723_v2  ;;  %v395_v1 = vld [vmem:[%s5582_s21 + $0x370] sm:$0xff]  ;;  %v401_v2 = vld [vmem:[%s5582_s21 + $0x3a0] sm:$0xff]  ;;  %v3955_v60 = vpack.c.bf16 %v654_v56, %v648_v55  ;;  %v270_v55 = vld [vmem:[#allocation2 + $0xd8] sm:$0xff] }
 0x114   : > { %3916 = vmatprep.subr.bf16.mxu1 %v3915_v3  ;;  %1672 = vmatprep.mubr.f32.mxu0 %v246_v4  ;;  %v587_v3 = vld [vmem:[%s5582_s21 + $0x970] sm:$0xff]  ;;  %v3745_v9 = vpack.c.bf16 %v401_v2, %v395_v1  ;;  %v468_v1 = vld [vmem:[%s5582_s21 + $0x5b8] sm:$0xff]  ;;  %v474_v2 = vld [vmem:[%s5582_s21 + $0x5e8] sm:$0xff] }
 0x115   : > { %1993 = vmatprep.mubr.f32.mxu1 %v246_v4  ;;  %v593_v4 = vld [vmem:[%s5582_s21 + $0x9a0] sm:$0xff]  ;;  %v3767_v7 = vpack.c.bf16 %v474_v2, %v468_v1  ;;  %v511_v56 = vld [vmem:[%s5582_s21 + $0x710] sm:$0xff]  ;;  %v276_v2 = vld [vmem:[#allocation2 + $0x108] sm:$0xff] }
 0x116   : > { %v3937_v10 = vpack.c.bf16 %v593_v4, %v587_v3  ;;  %v660_v3 = vld [vmem:[%s5582_s21 + $0xbb8] sm:$0xff]  ;;  %v666_v4 = vld [vmem:[%s5582_s21 + $0xbe8] sm:$0xff] }
 0x117   : > { %v3959_v8 = vpack.c.bf16 %v666_v4, %v660_v3  ;;  %v325_v3 = vld [vmem:[%s5582_s21 + $0x140] sm:$0xff]  ;;  %v275_v4 = vld [vmem:[#allocation2 + $0x100] sm:$0xff] }
 0x11a   : > { %3726 = vmatpush1.bf16.xpose.msra.mxu0 %v3725_v13  ;;  %v407_v13 = vld [vmem:[%s5582_s21 + $0x3d0] sm:$0xff] }
 0x11b   : > { %3918 = vmatpush1.bf16.xpose.msra.mxu1 %v3917_v14  ;;  %3728 = vmatprep.subr.bf16.mxu0 %v3727_v15  ;;  %v413_v14 = vld [vmem:[%s5582_s21 + $0x400] sm:$0xff]  ;;  %v599_v15 = vld [vmem:[%s5582_s21 + $0x9d0] sm:$0xff] }
 0x11c   : > { %3920 = vmatprep.subr.bf16.mxu1 %v3919_v16  ;;  %v605_v16 = vld [vmem:[%s5582_s21 + $0xa00] sm:$0xff]  ;;  %v3749_v21 = vpack.c.bf16 %v413_v14, %v407_v13  ;;  %v290_v13 = vld [vmem:[%s5582_s21 + $0x28] sm:$0xff]  ;;  %v296_v14 = vld [vmem:[%s5582_s21 + $0x58] sm:$0xff] }
 0x11d   : > { %v3941_v22 = vpack.c.bf16 %v605_v16, %v599_v15  ;;  %v482_v15 = vld [vmem:[%s5582_s21 + $0x628] sm:$0xff]  ;;  %v488_v16 = vld [vmem:[%s5582_s21 + $0x658] sm:$0xff]  ;;  %v3771_v19 = vpack.c.bf16 %v296_v14, %v290_v13  ;;  %v281_v14 = vld [vmem:[#allocation2 + $0x130] sm:$0x1] }
 0x11e   : > { %v3963_v20 = vpack.c.bf16 %v488_v16, %v482_v15 }
 0x122   : > { %3730 = vmatpush1.bf16.xpose.msra.mxu0 %v3729_v25  ;;  %v419_v25 = vld [vmem:[%s5582_s21 + $0x430] sm:$0xff] }
 0x123   : > { %3922 = vmatpush1.bf16.xpose.msra.mxu1 %v3921_v26  ;;  %3732 = vmatprep.subr.bf16.mxu0 %v3731_v27  ;;  %v425_v26 = vld [vmem:[%s5582_s21 + $0x460] sm:$0xff]  ;;  %v611_v27 = vld [vmem:[%s5582_s21 + $0xa30] sm:$0xff] }
 0x124   : > { %3924 = vmatprep.subr.bf16.mxu1 %v3923_v28  ;;  %v617_v28 = vld [vmem:[%s5582_s21 + $0xa60] sm:$0xff]  ;;  %v3753_v33 = vpack.c.bf16 %v425_v26, %v419_v25  ;;  %v302_v25 = vld [vmem:[%s5582_s21 + $0x88] sm:$0xff]  ;;  %v308_v26 = vld [vmem:[%s5582_s21 + $0xb8] sm:$0xff] }
 0x125   : > { %v3945_v34 = vpack.c.bf16 %v617_v28, %v611_v27  ;;  %v494_v27 = vld [vmem:[%s5582_s21 + $0x688] sm:$0xff]  ;;  %v500_v28 = vld [vmem:[%s5582_s21 + $0x6b8] sm:$0xff]  ;;  %v3775_v32 = vpack.c.bf16 %v308_v26, %v302_v25 }
 0x126   : > { %v542_v25 = vld [vmem:[%s5582_s21 + $0x808] sm:$0xff]  ;;  %v548_v26 = vld [vmem:[%s5582_s21 + $0x838] sm:$0xff] }
 0x12a   : > { %3734 = vmatpush1.bf16.xpose.msra.mxu0 %v3733_v37  ;;  %v431_v37 = vld [vmem:[%s5582_s21 + $0x490] sm:$0xff] }
 0x12b   : > { %3926 = vmatpush1.bf16.xpose.msra.mxu1 %v3925_v38  ;;  %3736 = vmatprep.subr.bf16.mxu0 %v3735_v39  ;;  %v437_v38 = vld [vmem:[%s5582_s21 + $0x4c0] sm:$0xff]  ;;  %v623_v39 = vld [vmem:[%s5582_s21 + $0xa90] sm:$0xff] }
 0x12c   : > { %3928 = vmatprep.subr.bf16.mxu1 %v3927_v40  ;;  %v629_v40 = vld [vmem:[%s5582_s21 + $0xac0] sm:$0xff]  ;;  %v3757_v45 = vpack.c.bf16 %v437_v38, %v431_v37  ;;  %v307_v37 = vld [vmem:[%s5582_s21 + $0xb0] sm:$0xff] }
 0x12d   : > { %v3949_v46 = vpack.c.bf16 %v629_v40, %v623_v39  ;;  %v493_v38 = vld [vmem:[%s5582_s21 + $0x680] sm:$0xff]  ;;  %v258_v39 = vld [vmem:[#allocation2 + $0x78] sm:$0xff]  ;;  %v499_v40 = vld [vmem:[%s5582_s21 + $0x6b0] sm:$0xff] }
 0x132   : > { %3738 = vmatpush1.bf16.xpose.msra.mxu0 %v3737_v49  ;;  %v443_v49 = vld [vmem:[%s5582_s21 + $0x4f0] sm:$0xff] }
 0x133   : > { %3930 = vmatpush1.bf16.xpose.msra.mxu1 %v3929_v50  ;;  %3740 = vmatprep.subr.bf16.mxu0 %v3739_v51  ;;  %v449_v50 = vld [vmem:[%s5582_s21 + $0x520] sm:$0xff]  ;;  %v635_v51 = vld [vmem:[%s5582_s21 + $0xaf0] sm:$0xff] }
 0x134   : > { %3932 = vmatprep.subr.bf16.mxu1 %v3931_v52  ;;  %v641_v52 = vld [vmem:[%s5582_s21 + $0xb20] sm:$0xff]  ;;  %v3761_v57 = vpack.c.bf16 %v449_v50, %v443_v49  ;;  %v3971_v49 = vpack.c.bf16 %v512_v44, %v506_v43  ;;  %v264_v50 = vld [vmem:[#allocation2 + $0xa8] sm:$0xff]  ;;  %v367_v44 = vld [vmem:[%s5582_s21 + $0x290] sm:$0xff] }
 0x135   : > { %v3953_v58 = vpack.c.bf16 %v641_v52, %v635_v51  ;;  %v313_v51 = vld [vmem:[%s5582_s21 + $0xe0] sm:$0xff]  ;;  %v263_v52 = vld [vmem:[#allocation2 + $0xa0] sm:$0xff] }
 0x136   : > { %v361_v43 = vld [vmem:[%s5582_s21 + $0x260] sm:$0xff] }
 0x13a   : > { %3742 = vmatpush1.bf16.xpose.msra.mxu0 %v3741_v61  ;;  %v455_v61 = vld [vmem:[%s5582_s21 + $0x550] sm:$0xff] }
 0x13b   : > { %3934 = vmatpush1.bf16.xpose.msra.mxu1 %v3933_v62  ;;  %3744 = vmatprep.subr.bf16.mxu0 %v3743_v63  ;;  %v461_v62 = vld [vmem:[%s5582_s21 + $0x580] sm:$0xff]  ;;  %v647_v63 = vld [vmem:[%s5582_s21 + $0xb50] sm:$0xff] }
 0x13c   : > { %3936 = vmatprep.subr.bf16.mxu1 %v3935_v0  ;;  %v653_v0 = vld [vmem:[%s5582_s21 + $0xb80] sm:$0xff]  ;;  %v3765_v5 = vpack.c.bf16 %v461_v62, %v455_v61  ;;  %v3781_v61 = vpack.c.bf16 %v319_v53, %v313_v51  ;;  %v3797_v51 = vpack.c.bf16 %v367_v44, %v361_v43  ;;  %v434_v43 = vld [vmem:[%s5582_s21 + $0x4a8] sm:$0xff]  ;;  %v440_v44 = vld [vmem:[%s5582_s21 + $0x4d8] sm:$0xff] }
 0x13d   : > { %v3957_v6 = vpack.c.bf16 %v653_v0, %v647_v63  ;;  %v269_v62 = vld [vmem:[#allocation2 + $0xd0] sm:$0xff]  ;;  %v3973_v63 = vpack.c.bf16 %v511_v56, %v505_v54  ;;  %v379_v56 = vld [vmem:[%s5582_s21 + $0x2f0] sm:$0xff] }
 0x142   : > { %3746 = vmatpush1.bf16.xpose.msra.mxu0 %v3745_v9  ;;  %v467_v9 = vld [vmem:[%s5582_s21 + $0x5b0] sm:$0xff] }
 0x143   : > { %3938 = vmatpush1.bf16.xpose.msra.mxu1 %v3937_v10  ;;  %3748 = vmatprep.subr.bf16.mxu0 %v3747_v11  ;;  %v473_v10 = vld [vmem:[%s5582_s21 + $0x5e0] sm:$0xff]  ;;  %v659_v11 = vld [vmem:[%s5582_s21 + $0xbb0] sm:$0xff] }
 0x144   : > { %3940 = vmatprep.subr.bf16.mxu1 %v3939_v12  ;;  %v665_v12 = vld [vmem:[%s5582_s21 + $0xbe0] sm:$0xff]  ;;  %v3769_v17 = vpack.c.bf16 %v473_v10, %v467_v9  ;;  %v338_v9 = vld [vmem:[%s5582_s21 + $0x1a8] sm:$0xff]  ;;  %v344_v10 = vld [vmem:[%s5582_s21 + $0x1d8] sm:$0xff] }
 0x145   : > { %v3961_v18 = vpack.c.bf16 %v665_v12, %v659_v11  ;;  %v530_v11 = vld [vmem:[%s5582_s21 + $0x7a8] sm:$0xff]  ;;  %v536_v12 = vld [vmem:[%s5582_s21 + $0x7d8] sm:$0xff]  ;;  %v3787_v16 = vpack.c.bf16 %v344_v10, %v338_v9 }
 0x146   : > { %v590_v9 = vld [vmem:[%s5582_s21 + $0x988] sm:$0xff]  ;;  %v596_v10 = vld [vmem:[%s5582_s21 + $0x9b8] sm:$0xff] }
 0x14a   : > { %3750 = vmatpush1.bf16.xpose.msra.mxu0 %v3749_v21  ;;  %v289_v21 = vld [vmem:[%s5582_s21 + $0x20] sm:$0xff] }
 0x14b   : > { %3942 = vmatpush1.bf16.xpose.msra.mxu1 %v3941_v22  ;;  %3752 = vmatprep.subr.bf16.mxu0 %v3751_v23  ;;  %v295_v22 = vld [vmem:[%s5582_s21 + $0x50] sm:$0xff]  ;;  %v481_v23 = vld [vmem:[%s5582_s21 + $0x620] sm:$0xff] }
 0x14c   : > { %3944 = vmatprep.subr.bf16.mxu1 %v3943_v24  ;;  %v487_v24 = vld [vmem:[%s5582_s21 + $0x650] sm:$0xff]  ;;  %v3773_v30 = vpack.c.bf16 %v295_v22, %v289_v21  ;;  %v529_v21 = vld [vmem:[%s5582_s21 + $0x7a0] sm:$0xff] }
 0x14d   : > { %v3965_v31 = vpack.c.bf16 %v487_v24, %v481_v23  ;;  %v535_v22 = vld [vmem:[%s5582_s21 + $0x7d0] sm:$0xff]  ;;  %v350_v23 = vld [vmem:[%s5582_s21 + $0x208] sm:$0xff]  ;;  %v356_v24 = vld [vmem:[%s5582_s21 + $0x238] sm:$0xff] }
 0x152   : > { %3754 = vmatpush1.bf16.xpose.msra.mxu0 %v3753_v33  ;;  %v3967_v33 = vpack.c.bf16 %v500_v28, %v494_v27  ;;  %v3981_v28 = vpack.c.bf16 %v535_v22, %v529_v21  ;;  %v602_v21 = vld [vmem:[%s5582_s21 + $0x9e8] sm:$0xff]  ;;  %v608_v22 = vld [vmem:[%s5582_s21 + $0xa18] sm:$0xff] }
 0x153   : > { %3946 = vmatpush1.bf16.xpose.msra.mxu1 %v3945_v34  ;;  %3756 = vmatprep.subr.bf16.mxu0 %v3755_v35  ;;  %v252_v34 = vld [vmem:[#allocation2 + $0x48] sm:$0xff]  ;;  %v301_v35 = vld [vmem:[%s5582_s21 + $0x80] sm:$0xff] }
 0x154   : > { %3948 = vmatprep.subr.bf16.mxu1 %v3947_v36  ;;  %v251_v36 = vld [vmem:[#allocation2 + $0x40] sm:$0xff] }
 0x15a   : > { %3758 = vmatpush1.bf16.xpose.msra.mxu0 %v3757_v45  ;;  %v3777_v45 = vpack.c.bf16 %v307_v37, %v301_v35  ;;  %v362_v35 = vld [vmem:[%s5582_s21 + $0x268] sm:$0xff] }
 0x15b   : > { %3950 = vmatpush1.bf16.xpose.msra.mxu1 %v3949_v46  ;;  %3760 = vmatprep.subr.bf16.mxu0 %v3759_v47  ;;  %v257_v46 = vld [vmem:[#allocation2 + $0x70] sm:$0xff]  ;;  %v3969_v47 = vpack.c.bf16 %v499_v40, %v493_v38  ;;  %v554_v37 = vld [vmem:[%s5582_s21 + $0x868] sm:$0xff]  ;;  %v560_v38 = vld [vmem:[%s5582_s21 + $0x898] sm:$0xff] }
 0x15c   : > { %3952 = vmatprep.subr.bf16.mxu1 %v3951_v48  ;;  %v3779_v48 = vpack.c.bf16 %v320_v42, %v314_v41  ;;  %v3987_v42 = vpack.c.bf16 %v560_v38, %v554_v37 }
 0x162   : > { %3762 = vmatpush1.bf16.xpose.msra.mxu0 %v3761_v57  ;;  %v326_v57 = vld [vmem:[%s5582_s21 + $0x148] sm:$0xff] }
 0x163   : > { %3954 = vmatpush1.bf16.xpose.msra.mxu1 %v3953_v58  ;;  %3764 = vmatprep.subr.bf16.mxu0 %v3763_v59  ;;  %v332_v58 = vld [vmem:[%s5582_s21 + $0x178] sm:$0xff]  ;;  %v518_v59 = vld [vmem:[%s5582_s21 + $0x748] sm:$0xff] }
 0x164   : > { %3956 = vmatprep.subr.bf16.mxu1 %v3955_v60  ;;  %v524_v60 = vld [vmem:[%s5582_s21 + $0x778] sm:$0xff]  ;;  %v3783_v0 = vpack.c.bf16 %v332_v58, %v326_v57  ;;  %v565_v57 = vld [vmem:[%s5582_s21 + $0x8c0] sm:$0xff]  ;;  %v571_v58 = vld [vmem:[%s5582_s21 + $0x8f0] sm:$0xff] }
 0x165   : > { %v3975_v1 = vpack.c.bf16 %v524_v60, %v518_v59  ;;  %v386_v59 = vld [vmem:[%s5582_s21 + $0x328] sm:$0xff]  ;;  %v392_v60 = vld [vmem:[%s5582_s21 + $0x358] sm:$0xff] }
 0x16a   : > { %3766 = vmatpush1.bf16.xpose.msra.mxu0 %v3765_v5  ;;  %v331_v5 = vld [vmem:[%s5582_s21 + $0x170] sm:$0xff] }
 0x16b   : > { %3958 = vmatpush1.bf16.xpose.msra.mxu1 %v3957_v6  ;;  %3768 = vmatprep.subr.bf16.mxu0 %v3767_v7  ;;  %v517_v6 = vld [vmem:[%s5582_s21 + $0x740] sm:$0xff]  ;;  %v282_v7 = vld [vmem:[#allocation2 + $0x138] sm:$0x1]  ;;  %v3785_v13 = vpack.c.bf16 %v331_v5, %v325_v3 }
 0x16c   : > { %3960 = vmatprep.subr.bf16.mxu1 %v3959_v8  ;;  %v523_v8 = vld [vmem:[%s5582_s21 + $0x770] sm:$0xff]  ;;  %v385_v3 = vld [vmem:[%s5582_s21 + $0x320] sm:$0xff] }
 0x16d   : > { %v3977_v15 = vpack.c.bf16 %v523_v8, %v517_v6  ;;  %v577_v5 = vld [vmem:[%s5582_s21 + $0x920] sm:$0xff]  ;;  %v583_v6 = vld [vmem:[%s5582_s21 + $0x950] sm:$0xff]  ;;  %v404_v8 = vld [vmem:[%s5582_s21 + $0x3b8] sm:$0xff] }
 0x172   : > { %3770 = vmatpush1.bf16.xpose.msra.mxu0 %v3769_v17  ;;  %v3979_v17 = vpack.c.bf16 %v536_v12, %v530_v11  ;;  %v3997_v12 = vpack.c.bf16 %v583_v6, %v577_v5  ;;  %v650_v5 = vld [vmem:[%s5582_s21 + $0xb68] sm:$0xff]  ;;  %v656_v6 = vld [vmem:[%s5582_s21 + $0xb98] sm:$0xff] }
 0x173   : > { %3962 = vmatpush1.bf16.xpose.msra.mxu1 %v3961_v18  ;;  %3772 = vmatprep.subr.bf16.mxu0 %v3771_v19  ;;  %v248_v18 = vld [vmem:[#allocation2 + $0x28] sm:$0xff]  ;;  %v337_v19 = vld [vmem:[%s5582_s21 + $0x1a0] sm:$0xff] }
 0x174   : > { %3964 = vmatprep.subr.bf16.mxu1 %v3963_v20  ;;  %v343_v20 = vld [vmem:[%s5582_s21 + $0x1d0] sm:$0xff] }
 0x175   : > { %v3789_v27 = vpack.c.bf16 %v343_v20, %v337_v19  ;;  %v410_v19 = vld [vmem:[%s5582_s21 + $0x3e8] sm:$0xff]  ;;  %v416_v20 = vld [vmem:[%s5582_s21 + $0x418] sm:$0xff] }
 0x179   : > { %1673 = vmatmul.mubr.f32.vlgmr.msra.gmra.mrb[0].mxu0 %v245_v29 }
 0x17a   : > { %3774 = vmatpush1.bf16.xpose.msra.mxu0 %v3773_v30  ;;  %1994 = vmatmul.mubr.f32.vlgmr.msra.gmra.mrb[0].mxu1 %v245_v29  ;;  %v3791_v29 = vpack.c.bf16 %v356_v24, %v350_v23  ;;  %v3983_v30 = vpack.c.bf16 %v548_v26, %v542_v25  ;;  %v3811_v25 = vpack.c.bf16 %v416_v20, %v410_v19 }
 0x17b   : > { %3966 = vmatpush1.bf16.xpose.msra.mxu1 %v3965_v31  ;;  %3776 = vmatprep.subr.bf16.mxu0 %v3775_v32  ;;  %v349_v31 = vld [vmem:[%s5582_s21 + $0x200] sm:$0xff]  ;;  %v355_v32 = vld [vmem:[%s5582_s21 + $0x230] sm:$0xff]  ;;  %v4003_v26 = vpack.c.bf16 %v608_v22, %v602_v21 }
 0x17c   : > { %3968 = vmatprep.subr.bf16.mxu1 %v3967_v33  ;;  %1678 = vmatprep.mubr.f32.mxu0 %v252_v34  ;;  %v541_v33 = vld [vmem:[%s5582_s21 + $0x800] sm:$0xff] }
 0x17d   : > { %1999 = vmatprep.mubr.f32.mxu1 %v252_v34  ;;  %1679 = vmatmul.mubr.f32.gmra.mrb[2].mxu0 %v251_v36  ;;  %v547_v34 = vld [vmem:[%s5582_s21 + $0x830] sm:$0xff] }
 0x17e   : > { %2000 = vmatmul.mubr.f32.gmra.mrb[2].mxu1 %v251_v36  ;;  %1684 = vmatprep.mubr.f32.mxu0 %v258_v39  ;;  %v368_v36 = vld [vmem:[%s5582_s21 + $0x298] sm:$0xff]  ;;  %v3985_v40 = vpack.c.bf16 %v547_v34, %v541_v33  ;;  %v614_v33 = vld [vmem:[%s5582_s21 + $0xa48] sm:$0xff] }
 0x17f   : > { %2005 = vmatprep.mubr.f32.mxu1 %v258_v39  ;;  %v3793_v39 = vpack.c.bf16 %v355_v32, %v349_v31  ;;  %v3795_v41 = vpack.c.bf16 %v368_v36, %v362_v35  ;;  %v422_v31 = vld [vmem:[%s5582_s21 + $0x448] sm:$0xff]  ;;  %v428_v32 = vld [vmem:[%s5582_s21 + $0x478] sm:$0xff] }
 0x180   : > { %v620_v34 = vld [vmem:[%s5582_s21 + $0xa78] sm:$0xff]  ;;  %v3815_v37 = vpack.c.bf16 %v428_v32, %v422_v31 }
 0x181   : > { %1685 = vmatmul.mubr.f32.gmra.mrb[4].mxu0 %v257_v46  ;;  %v4007_v38 = vpack.c.bf16 %v620_v34, %v614_v33 }
 0x182   : > { %3778 = vmatpush1.bf16.xpose.msra.mxu0 %v3777_v45  ;;  %2006 = vmatmul.mubr.f32.gmra.mrb[4].mxu1 %v257_v46  ;;  %v553_v45 = vld [vmem:[%s5582_s21 + $0x860] sm:$0xff]  ;;  %v559_v46 = vld [vmem:[%s5582_s21 + $0x890] sm:$0xff] }
 0x183   : > { %3970 = vmatpush1.bf16.xpose.msra.mxu1 %v3969_v47  ;;  %3780 = vmatprep.subr.bf16.mxu0 %v3779_v48  ;;  %v374_v47 = vld [vmem:[%s5582_s21 + $0x2c8] sm:$0xff]  ;;  %v380_v48 = vld [vmem:[%s5582_s21 + $0x2f8] sm:$0xff] }
 0x184   : > { %3972 = vmatprep.subr.bf16.mxu1 %v3971_v49  ;;  %1690 = vmatprep.mubr.f32.mxu0 %v264_v50  ;;  %v566_v49 = vld [vmem:[%s5582_s21 + $0x8c8] sm:$0xff]  ;;  %v3799_v53 = vpack.c.bf16 %v380_v48, %v374_v47 }
 0x185   : > { %2011 = vmatprep.mubr.f32.mxu1 %v264_v50  ;;  %1691 = vmatmul.mubr.f32.gmra.mrb[6].mxu0 %v263_v52  ;;  %v572_v50 = vld [vmem:[%s5582_s21 + $0x8f8] sm:$0xff] }
 0x186   : > { %2012 = vmatmul.mubr.f32.gmra.mrb[6].mxu1 %v263_v52  ;;  %1696 = vmatprep.mubr.f32.mxu0 %v270_v55  ;;  %v3989_v52 = vpack.c.bf16 %v559_v46, %v553_v45  ;;  %v3991_v54 = vpack.c.bf16 %v572_v50, %v566_v49  ;;  %v626_v45 = vld [vmem:[%s5582_s21 + $0xaa8] sm:$0xff]  ;;  %v632_v46 = vld [vmem:[%s5582_s21 + $0xad8] sm:$0xff]  ;;  %v3819_v49 = vpack.c.bf16 %v440_v44, %v434_v43 }
 0x187   : > { %2017 = vmatprep.mubr.f32.mxu1 %v270_v55  ;;  %v373_v55 = vld [vmem:[%s5582_s21 + $0x2c0] sm:$0xff]  ;;  %v4011_v50 = vpack.c.bf16 %v632_v46, %v626_v45  ;;  %v874_v43 = vld [vmem:[%s5582_s21 + $0x1268] sm:$0xff]  ;;  %v880_v44 = vld [vmem:[%s5582_s21 + $0x1298] sm:$0xff] }
 0x188   : > { %v254_v46 = vld [vmem:[#allocation2 + $0x58] sm:$0xff] }
 0x189   : > { %1697 = vmatmul.mubr.f32.gmra.mrb[8].mxu0 %v269_v62 }
 0x18a   : > { %3782 = vmatpush1.bf16.xpose.msra.mxu0 %v3781_v61  ;;  %2018 = vmatmul.mubr.f32.gmra.mrb[8].mxu1 %v269_v62  ;;  %v578_v61 = vld [vmem:[%s5582_s21 + $0x928] sm:$0xff]  ;;  %v584_v62 = vld [vmem:[%s5582_s21 + $0x958] sm:$0xff] }
 0x18b   : > { %3974 = vmatpush1.bf16.xpose.msra.mxu1 %v3973_v63  ;;  %3784 = vmatprep.subr.bf16.mxu0 %v3783_v0  ;;  %v3801_v63 = vpack.c.bf16 %v379_v56, %v373_v55  ;;  %v3993_v0 = vpack.c.bf16 %v571_v58, %v565_v57  ;;  %v446_v55 = vld [vmem:[%s5582_s21 + $0x508] sm:$0xff]  ;;  %v452_v56 = vld [vmem:[%s5582_s21 + $0x538] sm:$0xff] }
 0x18c   : > { %3976 = vmatprep.subr.bf16.mxu1 %v3975_v1  ;;  %1702 = vmatprep.mubr.f32.mxu0 %v276_v2  ;;  %v3803_v1 = vpack.c.bf16 %v392_v60, %v386_v59  ;;  %v638_v57 = vld [vmem:[%s5582_s21 + $0xb08] sm:$0xff]  ;;  %v644_v58 = vld [vmem:[%s5582_s21 + $0xb38] sm:$0xff] }
 0x18d   : > { %2023 = vmatprep.mubr.f32.mxu1 %v276_v2  ;;  %1703 = vmatmul.mubr.f32.gmra.mrb[10].mxu0 %v275_v4  ;;  %v3995_v2 = vpack.c.bf16 %v584_v62, %v578_v61  ;;  %v3823_v61 = vpack.c.bf16 %v452_v56, %v446_v55  ;;  %v4015_v62 = vpack.c.bf16 %v644_v58, %v638_v57  ;;  %v694_v55 = vld [vmem:[%s5582_s21 + $0xcc8] sm:$0xff]  ;;  %v700_v56 = vld [vmem:[%s5582_s21 + $0xcf8] sm:$0xff]  ;;  %v259_v57 = vld [vmem:[#allocation2 + $0x80] sm:$0xff] }
 0x18e   : > { %2024 = vmatmul.mubr.f32.gmra.mrb[10].mxu1 %v275_v4  ;;  %1708 = vmatprep.mubr.f32.mxu0 %v282_v7  ;;  %v391_v4 = vld [vmem:[%s5582_s21 + $0x350] sm:$0xff] }
 0x18f   : > { %2029 = vmatprep.mubr.f32.mxu1 %v282_v7  ;;  %v398_v7 = vld [vmem:[%s5582_s21 + $0x388] sm:$0xff]  ;;  %v3805_v11 = vpack.c.bf16 %v391_v4, %v385_v3  ;;  %v464_v4 = vld [vmem:[%s5582_s21 + $0x598] sm:$0xff] }
 0x190   : > { %v458_v3 = vld [vmem:[%s5582_s21 + $0x568] sm:$0xff] }
 0x191   : > { %1709 = vmatmul.mubr.f32.gmra.mrb[12].mxu0 %v281_v14 }
 0x192   : > { %3786 = vmatpush1.bf16.xpose.msra.mxu0 %v3785_v13  ;;  %2030 = vmatmul.mubr.f32.gmra.mrb[12].mxu1 %v281_v14  ;;  %v3807_v13 = vpack.c.bf16 %v404_v8, %v398_v7  ;;  %v3999_v14 = vpack.c.bf16 %v596_v10, %v590_v9  ;;  %v3827_v9 = vpack.c.bf16 %v464_v4, %v458_v3  ;;  %v693_v3 = vld [vmem:[%s5582_s21 + $0xcc0] sm:$0xff]  ;;  %v699_v4 = vld [vmem:[%s5582_s21 + $0xcf0] sm:$0xff] }
 0x193   : > { %3978 = vmatpush1.bf16.xpose.msra.mxu1 %v3977_v15  ;;  %3788 = vmatprep.subr.bf16.mxu0 %v3787_v16  ;;  %v397_v15 = vld [vmem:[%s5582_s21 + $0x380] sm:$0xff]  ;;  %v403_v16 = vld [vmem:[%s5582_s21 + $0x3b0] sm:$0xff]  ;;  %v4019_v10 = vpack.c.bf16 %v656_v6, %v650_v5 }
 0x194   : > { %3980 = vmatprep.subr.bf16.mxu1 %v3979_v17  ;;  %1779 = vmatprep.mubr.f32.mxu0 %v248_v18  ;;  %v589_v17 = vld [vmem:[%s5582_s21 + $0x980] sm:$0xff]  ;;  %v3809_v23 = vpack.c.bf16 %v403_v16, %v397_v15  ;;  %v470_v15 = vld [vmem:[%s5582_s21 + $0x5c8] sm:$0xff]  ;;  %v476_v16 = vld [vmem:[%s5582_s21 + $0x5f8] sm:$0xff] }
 0x195   : > { %2100 = vmatprep.mubr.f32.mxu1 %v248_v18  ;;  %v595_v18 = vld [vmem:[%s5582_s21 + $0x9b0] sm:$0xff]  ;;  %v3831_v21 = vpack.c.bf16 %v476_v16, %v470_v15  ;;  %v885_v5 = vld [vmem:[%s5582_s21 + $0x12c0] sm:$0xff] }
 0x196   : > { %v4001_v24 = vpack.c.bf16 %v595_v18, %v589_v17  ;;  %v662_v17 = vld [vmem:[%s5582_s21 + $0xbc8] sm:$0xff]  ;;  %v668_v18 = vld [vmem:[%s5582_s21 + $0xbf8] sm:$0xff]  ;;  %v891_v6 = vld [vmem:[%s5582_s21 + $0x12f0] sm:$0xff] }
 0x197   : > { %v4023_v22 = vpack.c.bf16 %v668_v18, %v662_v17  ;;  %v277_v17 = vld [vmem:[#allocation2 + $0x110] sm:$0xff]  ;;  %v284_v18 = vld [vmem:[#allocation2 + $0x148] sm:$0x1] }
 0x19a   : > { %3790 = vmatpush1.bf16.xpose.msra.mxu0 %v3789_v27  ;;  %v409_v27 = vld [vmem:[%s5582_s21 + $0x3e0] sm:$0xff] }
 0x19b   : > { %3982 = vmatpush1.bf16.xpose.msra.mxu1 %v3981_v28  ;;  %3792 = vmatprep.subr.bf16.mxu0 %v3791_v29  ;;  %v415_v28 = vld [vmem:[%s5582_s21 + $0x410] sm:$0xff]  ;;  %v601_v29 = vld [vmem:[%s5582_s21 + $0x9e0] sm:$0xff] }
 0x19c   : > { %3984 = vmatprep.subr.bf16.mxu1 %v3983_v30  ;;  %v607_v30 = vld [vmem:[%s5582_s21 + $0xa10] sm:$0xff]  ;;  %v3813_v35 = vpack.c.bf16 %v415_v28, %v409_v27  ;;  %v670_v27 = vld [vmem:[%s5582_s21 + $0xc08] sm:$0xff]  ;;  %v676_v28 = vld [vmem:[%s5582_s21 + $0xc38] sm:$0xff] }
 0x19d   : > { %v4005_v36 = vpack.c.bf16 %v607_v30, %v601_v29  ;;  %v862_v29 = vld [vmem:[%s5582_s21 + $0x1208] sm:$0xff]  ;;  %v868_v30 = vld [vmem:[%s5582_s21 + $0x1238] sm:$0xff]  ;;  %v4027_v33 = vpack.c.bf16 %v676_v28, %v670_v27  ;;  %v283_v27 = vld [vmem:[#allocation2 + $0x140] sm:$0x1] }
 0x19e   : > { %v4219_v34 = vpack.c.bf16 %v868_v30, %v862_v29 }
 0x1a2   : > { %3794 = vmatpush1.bf16.xpose.msra.mxu0 %v3793_v39  ;;  %v421_v39 = vld [vmem:[%s5582_s21 + $0x440] sm:$0xff] }
 0x1a3   : > { %3986 = vmatpush1.bf16.xpose.msra.mxu1 %v3985_v40  ;;  %3796 = vmatprep.subr.bf16.mxu0 %v3795_v41  ;;  %v427_v40 = vld [vmem:[%s5582_s21 + $0x470] sm:$0xff]  ;;  %v613_v41 = vld [vmem:[%s5582_s21 + $0xa40] sm:$0xff] }
 0x1a4   : > { %3988 = vmatprep.subr.bf16.mxu1 %v3987_v42  ;;  %v619_v42 = vld [vmem:[%s5582_s21 + $0xa70] sm:$0xff]  ;;  %v3817_v47 = vpack.c.bf16 %v427_v40, %v421_v39  ;;  %v682_v39 = vld [vmem:[%s5582_s21 + $0xc68] sm:$0xff]  ;;  %v688_v40 = vld [vmem:[%s5582_s21 + $0xc98] sm:$0xff] }
 0x1a5   : > { %v4009_v48 = vpack.c.bf16 %v619_v42, %v613_v41  ;;  %v247_v41 = vld [vmem:[#allocation2 + $0x20] sm:$0xff] }
 0x1aa   : > { %3798 = vmatpush1.bf16.xpose.msra.mxu0 %v3797_v51  ;;  %v433_v51 = vld [vmem:[%s5582_s21 + $0x4a0] sm:$0xff] }
 0x1ab   : > { %3990 = vmatpush1.bf16.xpose.msra.mxu1 %v3989_v52  ;;  %3800 = vmatprep.subr.bf16.mxu0 %v3799_v53  ;;  %v439_v52 = vld [vmem:[%s5582_s21 + $0x4d0] sm:$0xff]  ;;  %v625_v53 = vld [vmem:[%s5582_s21 + $0xaa0] sm:$0xff] }
 0x1ac   : > { %3992 = vmatprep.subr.bf16.mxu1 %v3991_v54  ;;  %v631_v54 = vld [vmem:[%s5582_s21 + $0xad0] sm:$0xff]  ;;  %v3821_v59 = vpack.c.bf16 %v439_v52, %v433_v51  ;;  %v681_v51 = vld [vmem:[%s5582_s21 + $0xc60] sm:$0xff] }
 0x1ad   : > { %v4013_v60 = vpack.c.bf16 %v631_v54, %v625_v53  ;;  %v687_v52 = vld [vmem:[%s5582_s21 + $0xc90] sm:$0xff]  ;;  %v873_v53 = vld [vmem:[%s5582_s21 + $0x1260] sm:$0xff] }
 0x1ae   : > { %v879_v54 = vld [vmem:[%s5582_s21 + $0x1290] sm:$0xff]  ;;  %v4033_v58 = vpack.c.bf16 %v687_v52, %v681_v51  ;;  %v934_v51 = vld [vmem:[%s5582_s21 + $0x1448] sm:$0xff]  ;;  %v940_v52 = vld [vmem:[%s5582_s21 + $0x1478] sm:$0xff] }
 0x1b2   : > { %3802 = vmatpush1.bf16.xpose.msra.mxu0 %v3801_v63  ;;  %v445_v63 = vld [vmem:[%s5582_s21 + $0x500] sm:$0xff] }
 0x1b3   : > { %3994 = vmatpush1.bf16.xpose.msra.mxu1 %v3993_v0  ;;  %3804 = vmatprep.subr.bf16.mxu0 %v3803_v1  ;;  %v451_v0 = vld [vmem:[%s5582_s21 + $0x530] sm:$0xff]  ;;  %v637_v1 = vld [vmem:[%s5582_s21 + $0xb00] sm:$0xff] }
 0x1b4   : > { %3996 = vmatprep.subr.bf16.mxu1 %v3995_v2  ;;  %v643_v2 = vld [vmem:[%s5582_s21 + $0xb30] sm:$0xff]  ;;  %v3825_v7 = vpack.c.bf16 %v451_v0, %v445_v63  ;;  %v4035_v63 = vpack.c.bf16 %v700_v56, %v694_v55  ;;  %v4243_v56 = vpack.c.bf16 %v940_v52, %v934_v51 }
 0x1b5   : > { %v4017_v8 = vpack.c.bf16 %v643_v2, %v637_v1  ;;  %v265_v1 = vld [vmem:[#allocation2 + $0xb0] sm:$0xff]  ;;  %v272_v2 = vld [vmem:[#allocation2 + $0xe8] sm:$0xff] }
 0x1ba   : > { %3806 = vmatpush1.bf16.xpose.msra.mxu0 %v3805_v11  ;;  %v457_v11 = vld [vmem:[%s5582_s21 + $0x560] sm:$0xff] }
 0x1bb   : > { %3998 = vmatpush1.bf16.xpose.msra.mxu1 %v3997_v12  ;;  %3808 = vmatprep.subr.bf16.mxu0 %v3807_v13  ;;  %v463_v12 = vld [vmem:[%s5582_s21 + $0x590] sm:$0xff]  ;;  %v649_v13 = vld [vmem:[%s5582_s21 + $0xb60] sm:$0xff] }
 0x1bc   : > { %4000 = vmatprep.subr.bf16.mxu1 %v3999_v14  ;;  %v655_v14 = vld [vmem:[%s5582_s21 + $0xb90] sm:$0xff]  ;;  %v3829_v19 = vpack.c.bf16 %v463_v12, %v457_v11  ;;  %v898_v11 = vld [vmem:[%s5582_s21 + $0x1328] sm:$0xff]  ;;  %v904_v12 = vld [vmem:[%s5582_s21 + $0x1358] sm:$0xff] }
 0x1bd   : > { %v4021_v20 = vpack.c.bf16 %v655_v14, %v649_v13  ;;  %v4229_v13 = vpack.c.bf16 %v891_v6, %v885_v5  ;;  %v278_v14 = vld [vmem:[#allocation2 + $0x118] sm:$0xff]  ;;  %v4231_v16 = vpack.c.bf16 %v904_v12, %v898_v11  ;;  %v753_v5 = vld [vmem:[%s5582_s21 + $0xea0] sm:$0xff]  ;;  %v759_v6 = vld [vmem:[%s5582_s21 + $0xed0] sm:$0xff] }
 0x1be   : > { %v958_v11 = vld [vmem:[%s5582_s21 + $0x1508] sm:$0xff]  ;;  %v964_v12 = vld [vmem:[%s5582_s21 + $0x1538] sm:$0xff] }
 0x1c2   : > { %3810 = vmatpush1.bf16.xpose.msra.mxu0 %v3809_v23  ;;  %v469_v23 = vld [vmem:[%s5582_s21 + $0x5c0] sm:$0xff] }
 0x1c3   : > { %4002 = vmatpush1.bf16.xpose.msra.mxu1 %v4001_v24  ;;  %3812 = vmatprep.subr.bf16.mxu0 %v3811_v25  ;;  %v475_v24 = vld [vmem:[%s5582_s21 + $0x5f0] sm:$0xff]  ;;  %v661_v25 = vld [vmem:[%s5582_s21 + $0xbc0] sm:$0xff] }
 0x1c4   : > { %4004 = vmatprep.subr.bf16.mxu1 %v4003_v26  ;;  %v667_v26 = vld [vmem:[%s5582_s21 + $0xbf0] sm:$0xff]  ;;  %v3833_v31 = vpack.c.bf16 %v475_v24, %v469_v23  ;;  %v718_v23 = vld [vmem:[%s5582_s21 + $0xd88] sm:$0xff]  ;;  %v724_v24 = vld [vmem:[%s5582_s21 + $0xdb8] sm:$0xff] }
 0x1c5   : > { %v4025_v32 = vpack.c.bf16 %v667_v26, %v661_v25  ;;  %v910_v25 = vld [vmem:[%s5582_s21 + $0x1388] sm:$0xff]  ;;  %v916_v26 = vld [vmem:[%s5582_s21 + $0x13b8] sm:$0xff]  ;;  %v4043_v30 = vpack.c.bf16 %v724_v24, %v718_v23 }
 0x1c6   : > { %v970_v23 = vld [vmem:[%s5582_s21 + $0x1568] sm:$0xff]  ;;  %v976_v24 = vld [vmem:[%s5582_s21 + $0x1598] sm:$0xff] }
 0x1ca   : > { %3814 = vmatpush1.bf16.xpose.msra.mxu0 %v3813_v35  ;;  %v669_v35 = vld [vmem:[%s5582_s21 + $0xc00] sm:$0xff] }
 0x1cb   : > { %4006 = vmatpush1.bf16.xpose.msra.mxu1 %v4005_v36  ;;  %3816 = vmatprep.subr.bf16.mxu0 %v3815_v37  ;;  %v675_v36 = vld [vmem:[%s5582_s21 + $0xc30] sm:$0xff]  ;;  %v861_v37 = vld [vmem:[%s5582_s21 + $0x1200] sm:$0xff] }
 0x1cc   : > { %4008 = vmatprep.subr.bf16.mxu1 %v4007_v38  ;;  %v867_v38 = vld [vmem:[%s5582_s21 + $0x1230] sm:$0xff]  ;;  %v4029_v42 = vpack.c.bf16 %v675_v36, %v669_v35  ;;  %v730_v36 = vld [vmem:[%s5582_s21 + $0xde8] sm:$0xff] }
 0x1cd   : > { %v4221_v45 = vpack.c.bf16 %v867_v38, %v861_v37  ;;  %v915_v35 = vld [vmem:[%s5582_s21 + $0x13b0] sm:$0xff]  ;;  %v736_v37 = vld [vmem:[%s5582_s21 + $0xe18] sm:$0xff] }
 0x1ce   : > { %v5121_v38 = vld [vmem:[#allocation2 + $0x8] sm:$0xff] }
 0x1d2   : > { %3818 = vmatpush1.bf16.xpose.msra.mxu0 %v3817_v47  ;;  %v4031_v47 = vpack.c.bf16 %v688_v40, %v682_v39  ;;  %v922_v39 = vld [vmem:[%s5582_s21 + $0x13e8] sm:$0xff]  ;;  %v928_v40 = vld [vmem:[%s5582_s21 + $0x1418] sm:$0xff] }
 0x1d3   : > { %4010 = vmatpush1.bf16.xpose.msra.mxu1 %v4009_v48  ;;  %3820 = vmatprep.subr.bf16.mxu0 %v3819_v49  ;;  %v4223_v48 = vpack.c.bf16 %v880_v44, %v874_v43  ;;  %v253_v49 = vld [vmem:[#allocation2 + $0x50] sm:$0xff]  ;;  %v4047_v43 = vpack.c.bf16 %v736_v37, %v730_v36  ;;  %v4239_v44 = vpack.c.bf16 %v928_v40, %v922_v39  ;;  %v988_v36 = vld [vmem:[%s5582_s21 + $0x15f8] sm:$0xff] }
 0x1d4   : > { %4012 = vmatprep.subr.bf16.mxu1 %v4011_v50  ;;  %v260_v50 = vld [vmem:[#allocation2 + $0x88] sm:$0xff] }
 0x1da   : > { %3822 = vmatpush1.bf16.xpose.msra.mxu0 %v3821_v59  ;;  %v886_v59 = vld [vmem:[%s5582_s21 + $0x12c8] sm:$0xff] }
 0x1db   : > { %4014 = vmatpush1.bf16.xpose.msra.mxu1 %v4013_v60  ;;  %3824 = vmatprep.subr.bf16.mxu0 %v3823_v61  ;;  %v892_v60 = vld [vmem:[%s5582_s21 + $0x12f8] sm:$0xff]  ;;  %v4225_v61 = vpack.c.bf16 %v879_v54, %v873_v53 }
 0x1dc   : > { %4016 = vmatprep.subr.bf16.mxu1 %v4015_v62  ;;  %v266_v62 = vld [vmem:[#allocation2 + $0xb8] sm:$0xff]  ;;  %v4227_v0 = vpack.c.bf16 %v892_v60, %v886_v59  ;;  %v933_v59 = vld [vmem:[%s5582_s21 + $0x1440] sm:$0xff]  ;;  %v939_v60 = vld [vmem:[%s5582_s21 + $0x1470] sm:$0xff] }
 0x1e2   : > { %3826 = vmatpush1.bf16.xpose.msra.mxu0 %v3825_v7  ;;  %v706_v7 = vld [vmem:[%s5582_s21 + $0xd28] sm:$0xff] }
 0x1e3   : > { %4018 = vmatpush1.bf16.xpose.msra.mxu1 %v4017_v8  ;;  %3828 = vmatprep.subr.bf16.mxu0 %v3827_v9  ;;  %v712_v8 = vld [vmem:[%s5582_s21 + $0xd58] sm:$0xff]  ;;  %v271_v9 = vld [vmem:[#allocation2 + $0xe0] sm:$0xff] }
 0x1e4   : > { %4020 = vmatprep.subr.bf16.mxu1 %v4019_v10  ;;  %v4037_v10 = vpack.c.bf16 %v699_v4, %v693_v3  ;;  %v4039_v15 = vpack.c.bf16 %v712_v8, %v706_v7  ;;  %v945_v7 = vld [vmem:[%s5582_s21 + $0x14a0] sm:$0xff]  ;;  %v951_v8 = vld [vmem:[%s5582_s21 + $0x14d0] sm:$0xff] }
 0x1ea   : > { %3830 = vmatpush1.bf16.xpose.msra.mxu0 %v3829_v19  ;;  %v705_v19 = vld [vmem:[%s5582_s21 + $0xd20] sm:$0xff] }
 0x1eb   : > { %4022 = vmatpush1.bf16.xpose.msra.mxu1 %v4021_v20  ;;  %3832 = vmatprep.subr.bf16.mxu0 %v3831_v21  ;;  %v711_v20 = vld [vmem:[%s5582_s21 + $0xd50] sm:$0xff]  ;;  %v897_v21 = vld [vmem:[%s5582_s21 + $0x1320] sm:$0xff] }
 0x1ec   : > { %4024 = vmatprep.subr.bf16.mxu1 %v4023_v22  ;;  %v903_v22 = vld [vmem:[%s5582_s21 + $0x1350] sm:$0xff]  ;;  %v4041_v28 = vpack.c.bf16 %v711_v20, %v705_v19  ;;  %v957_v19 = vld [vmem:[%s5582_s21 + $0x1500] sm:$0xff] }
 0x1ed   : > { %v4233_v29 = vpack.c.bf16 %v903_v22, %v897_v21  ;;  %v963_v20 = vld [vmem:[%s5582_s21 + $0x1530] sm:$0xff]  ;;  %v778_v21 = vld [vmem:[%s5582_s21 + $0xf68] sm:$0xff]  ;;  %v784_v22 = vld [vmem:[%s5582_s21 + $0xf98] sm:$0xff] }
 0x1f2   : > { %3834 = vmatpush1.bf16.xpose.msra.mxu0 %v3833_v31  ;;  %v4235_v31 = vpack.c.bf16 %v916_v26, %v910_v25  ;;  %v4253_v26 = vpack.c.bf16 %v963_v20, %v957_v19  ;;  %v1030_v19 = vld [vmem:[%s5582_s21 + $0x1748] sm:$0xff]  ;;  %v1036_v20 = vld [vmem:[%s5582_s21 + $0x1778] sm:$0xff] }
 0x1f3   : > { %4026 = vmatpush1.bf16.xpose.msra.mxu1 %v4025_v32  ;;  %4028 = vmatprep.subr.bf16.mxu0 %v4027_v33  ;;  %v717_v32 = vld [vmem:[%s5582_s21 + $0xd80] sm:$0xff]  ;;  %v723_v33 = vld [vmem:[%s5582_s21 + $0xdb0] sm:$0xff] }
 0x1f4   : > { %4220 = vmatprep.subr.bf16.mxu1 %v4219_v34  ;;  %v909_v34 = vld [vmem:[%s5582_s21 + $0x1380] sm:$0xff] }
 0x1f9   : > { %1780 = vmatmul.mubr.f32.vlgmr.msra.gmra.mrb[0].mxu0 %v247_v41 }
 0x1fa   : > { %2101 = vmatmul.mubr.f32.vlgmr.msra.gmra.mrb[0].mxu1 %v247_v41  ;;  %4030 = vmatpush1.bf16.xpose.msra.mxu0 %v4029_v42  ;;  %v4045_v41 = vpack.c.bf16 %v723_v33, %v717_v32  ;;  %v4237_v42 = vpack.c.bf16 %v915_v35, %v909_v34  ;;  %v975_v32 = vld [vmem:[%s5582_s21 + $0x1590] sm:$0xff]  ;;  %v790_v33 = vld [vmem:[%s5582_s21 + $0xfc8] sm:$0xff]  ;;  %v796_v34 = vld [vmem:[%s5582_s21 + $0xff8] sm:$0xff] }
 0x1fb   : > { %4222 = vmatpush1.bf16.xpose.msra.mxu1 %v4221_v45  ;;  %1785 = vmatprep.mubr.f32.mxu0 %v254_v46  ;;  %v729_v45 = vld [vmem:[%s5582_s21 + $0xde0] sm:$0xff]  ;;  %v982_v35 = vld [vmem:[%s5582_s21 + $0x15c8] sm:$0xff]  ;;  %v4067_v39 = vpack.c.bf16 %v796_v34, %v790_v33 }
 0x1fc   : > { %2106 = vmatprep.mubr.f32.mxu1 %v254_v46  ;;  %4032 = vmatprep.subr.bf16.mxu0 %v4031_v47  ;;  %v735_v46 = vld [vmem:[%s5582_s21 + $0xe10] sm:$0xff]  ;;  %v921_v47 = vld [vmem:[%s5582_s21 + $0x13e0] sm:$0xff]  ;;  %v4259_v40 = vpack.c.bf16 %v988_v36, %v982_v35 }
 0x1fd   : > { %1786 = vmatmul.mubr.f32.gmra.mrb[2].mxu0 %v253_v49  ;;  %4224 = vmatprep.subr.bf16.mxu1 %v4223_v48  ;;  %v927_v48 = vld [vmem:[%s5582_s21 + $0x1410] sm:$0xff]  ;;  %v4049_v53 = vpack.c.bf16 %v735_v46, %v729_v45  ;;  %v802_v45 = vld [vmem:[%s5582_s21 + $0x1028] sm:$0xff]  ;;  %v808_v46 = vld [vmem:[%s5582_s21 + $0x1058] sm:$0xff] }
 0x1fe   : > { %2107 = vmatmul.mubr.f32.gmra.mrb[2].mxu1 %v253_v49  ;;  %1791 = vmatprep.mubr.f32.mxu0 %v260_v50  ;;  %v742_v49 = vld [vmem:[%s5582_s21 + $0xe48] sm:$0xff]  ;;  %v4241_v54 = vpack.c.bf16 %v927_v48, %v921_v47  ;;  %v1000_v48 = vld [vmem:[%s5582_s21 + $0x1658] sm:$0xff]  ;;  %v4071_v51 = vpack.c.bf16 %v808_v46, %v802_v45 }
 0x1ff   : > { %2112 = vmatprep.mubr.f32.mxu1 %v260_v50  ;;  %v748_v50 = vld [vmem:[%s5582_s21 + $0xe78] sm:$0xff]  ;;  %v994_v47 = vld [vmem:[%s5582_s21 + $0x1628] sm:$0xff] }
 0x200   : > { %v4051_v55 = vpack.c.bf16 %v748_v50, %v742_v49  ;;  %v4263_v52 = vpack.c.bf16 %v1000_v48, %v994_v47 }
 0x201   : > { %1792 = vmatmul.mubr.f32.gmra.mrb[4].mxu0 %v259_v57 }
 0x202   : > { %2113 = vmatmul.mubr.f32.gmra.mrb[4].mxu1 %v259_v57  ;;  %4034 = vmatpush1.bf16.xpose.msra.mxu0 %v4033_v58  ;;  %v741_v57 = vld [vmem:[%s5582_s21 + $0xe40] sm:$0xff]  ;;  %v747_v58 = vld [vmem:[%s5582_s21 + $0xe70] sm:$0xff] }
 0x203   : > { %4226 = vmatpush1.bf16.xpose.msra.mxu1 %v4225_v61  ;;  %1797 = vmatprep.mubr.f32.mxu0 %v266_v62  ;;  %v754_v61 = vld [vmem:[%s5582_s21 + $0xea8] sm:$0xff] }
 0x204   : > { %2118 = vmatprep.mubr.f32.mxu1 %v266_v62  ;;  %4036 = vmatprep.subr.bf16.mxu0 %v4035_v63  ;;  %v760_v62 = vld [vmem:[%s5582_s21 + $0xed8] sm:$0xff]  ;;  %v946_v63 = vld [vmem:[%s5582_s21 + $0x14a8] sm:$0xff] }
 0x205   : > { %1798 = vmatmul.mubr.f32.gmra.mrb[6].mxu0 %v265_v1  ;;  %4228 = vmatprep.subr.bf16.mxu1 %v4227_v0  ;;  %v952_v0 = vld [vmem:[%s5582_s21 + $0x14d8] sm:$0xff]  ;;  %v4055_v3 = vpack.c.bf16 %v760_v62, %v754_v61 }
 0x206   : > { %2119 = vmatmul.mubr.f32.gmra.mrb[6].mxu1 %v265_v1  ;;  %1803 = vmatprep.mubr.f32.mxu0 %v272_v2  ;;  %v4053_v1 = vpack.c.bf16 %v747_v58, %v741_v57  ;;  %v4247_v4 = vpack.c.bf16 %v952_v0, %v946_v63  ;;  %v814_v57 = vld [vmem:[%s5582_s21 + $0x1088] sm:$0xff]  ;;  %v820_v58 = vld [vmem:[%s5582_s21 + $0x10b8] sm:$0xff] }
 0x207   : > { %2124 = vmatprep.mubr.f32.mxu1 %v272_v2  ;;  %v4245_v2 = vpack.c.bf16 %v939_v60, %v933_v59  ;;  %v1006_v59 = vld [vmem:[%s5582_s21 + $0x1688] sm:$0xff]  ;;  %v1012_v60 = vld [vmem:[%s5582_s21 + $0x16b8] sm:$0xff]  ;;  %v4075_v63 = vpack.c.bf16 %v820_v58, %v814_v57 }
 0x208   : > { %v4267_v0 = vpack.c.bf16 %v1012_v60, %v1006_v59 }
 0x209   : > { %1804 = vmatmul.mubr.f32.gmra.mrb[8].mxu0 %v271_v9 }
 0x20a   : > { %2125 = vmatmul.mubr.f32.gmra.mrb[8].mxu1 %v271_v9  ;;  %4038 = vmatpush1.bf16.xpose.msra.mxu0 %v4037_v10  ;;  %v766_v9 = vld [vmem:[%s5582_s21 + $0xf08] sm:$0xff]  ;;  %v772_v10 = vld [vmem:[%s5582_s21 + $0xf38] sm:$0xff] }
 0x20b   : > { %4230 = vmatpush1.bf16.xpose.msra.mxu1 %v4229_v13  ;;  %1809 = vmatprep.mubr.f32.mxu0 %v278_v14  ;;  %v4057_v13 = vpack.c.bf16 %v759_v6, %v753_v5  ;;  %v826_v5 = vld [vmem:[%s5582_s21 + $0x10e8] sm:$0xff]  ;;  %v832_v6 = vld [vmem:[%s5582_s21 + $0x1118] sm:$0xff] }
 0x20c   : > { %2130 = vmatprep.mubr.f32.mxu1 %v278_v14  ;;  %4040 = vmatprep.subr.bf16.mxu0 %v4039_v15  ;;  %v4249_v14 = vpack.c.bf16 %v951_v8, %v945_v7  ;;  %v4059_v15 = vpack.c.bf16 %v772_v10, %v766_v9  ;;  %v1018_v7 = vld [vmem:[%s5582_s21 + $0x16e8] sm:$0xff]  ;;  %v1024_v8 = vld [vmem:[%s5582_s21 + $0x1718] sm:$0xff] }
 0x20d   : > { %1810 = vmatmul.mubr.f32.gmra.mrb[10].mxu0 %v277_v17  ;;  %4232 = vmatprep.subr.bf16.mxu1 %v4231_v16  ;;  %v4251_v16 = vpack.c.bf16 %v964_v12, %v958_v11  ;;  %v4079_v11 = vpack.c.bf16 %v832_v6, %v826_v5  ;;  %v4271_v12 = vpack.c.bf16 %v1024_v8, %v1018_v7  ;;  %v888_v5 = vld [vmem:[%s5582_s21 + $0x12d8] sm:$0xff]  ;;  %v894_v6 = vld [vmem:[%s5582_s21 + $0x1308] sm:$0xff]  ;;  %v5124_v7 = vld [vmem:[#allocation2 + $0x30] sm:$0xff] }
 0x20e   : > { %2131 = vmatmul.mubr.f32.gmra.mrb[10].mxu1 %v277_v17  ;;  %1815 = vmatprep.mubr.f32.mxu0 %v284_v18  ;;  %v765_v17 = vld [vmem:[%s5582_s21 + $0xf00] sm:$0xff] }
 0x20f   : > { %2136 = vmatprep.mubr.f32.mxu1 %v284_v18  ;;  %v771_v18 = vld [vmem:[%s5582_s21 + $0xf30] sm:$0xff] }
 0x210   : > { %v4061_v25 = vpack.c.bf16 %v771_v18, %v765_v17  ;;  %v838_v17 = vld [vmem:[%s5582_s21 + $0x1148] sm:$0xff]  ;;  %v844_v18 = vld [vmem:[%s5582_s21 + $0x1178] sm:$0xff] }
 0x211   : > { %1816 = vmatmul.mubr.f32.gmra.mrb[12].mxu0 %v283_v27 }
 0x212   : > { %2137 = vmatmul.mubr.f32.gmra.mrb[12].mxu1 %v283_v27  ;;  %4042 = vmatpush1.bf16.xpose.msra.mxu0 %v4041_v28  ;;  %v4063_v27 = vpack.c.bf16 %v784_v22, %v778_v21  ;;  %v4255_v28 = vpack.c.bf16 %v976_v24, %v970_v23  ;;  %v4083_v23 = vpack.c.bf16 %v844_v18, %v838_v17  ;;  %v893_v17 = vld [vmem:[%s5582_s21 + $0x1300] sm:$0xff]  ;;  %v708_v18 = vld [vmem:[%s5582_s21 + $0xd38] sm:$0xff] }
 0x213   : > { %4234 = vmatpush1.bf16.xpose.msra.mxu1 %v4233_v29  ;;  %4044 = vmatprep.subr.bf16.mxu0 %v4043_v30  ;;  %v777_v29 = vld [vmem:[%s5582_s21 + $0xf60] sm:$0xff]  ;;  %v783_v30 = vld [vmem:[%s5582_s21 + $0xf90] sm:$0xff]  ;;  %v4275_v24 = vpack.c.bf16 %v1036_v20, %v1030_v19  ;;  %v714_v19 = vld [vmem:[%s5582_s21 + $0xd68] sm:$0xff] }
 0x214   : > { %4236 = vmatprep.subr.bf16.mxu1 %v4235_v31  ;;  %2207 = vmatprep.mubr.f32.mxu0 %v5121_v38  ;;  %v969_v31 = vld [vmem:[%s5582_s21 + $0x1560] sm:$0xff]  ;;  %v4065_v37 = vpack.c.bf16 %v783_v30, %v777_v29  ;;  %v850_v29 = vld [vmem:[%s5582_s21 + $0x11a8] sm:$0xff]  ;;  %v856_v30 = vld [vmem:[%s5582_s21 + $0x11d8] sm:$0xff] }
 0x215   : > { %2528 = vmatprep.mubr.f32.mxu1 %v5121_v38  ;;  %v4257_v38 = vpack.c.bf16 %v975_v32, %v969_v31  ;;  %v1042_v31 = vld [vmem:[%s5582_s21 + $0x17a8] sm:$0xff]  ;;  %v1048_v32 = vld [vmem:[%s5582_s21 + $0x17d8] sm:$0xff]  ;;  %v4087_v35 = vpack.c.bf16 %v856_v30, %v850_v29  ;;  %v5130_v29 = vld [vmem:[#allocation2 + $0xc0] sm:$0xff] }
 0x216   : > { %v4279_v36 = vpack.c.bf16 %v1048_v32, %v1042_v31  ;;  %v5127_v20 = vld [vmem:[#allocation2 + $0x98] sm:$0xff]  ;;  %v707_v30 = vld [vmem:[%s5582_s21 + $0xd30] sm:$0xff]  ;;  %v713_v31 = vld [vmem:[%s5582_s21 + $0xd60] sm:$0xff] }
 0x217   : > { %v899_v32 = vld [vmem:[%s5582_s21 + $0x1330] sm:$0xff] }
 0x21a   : > { %4046 = vmatpush1.bf16.xpose.msra.mxu0 %v4045_v41  ;;  %v789_v41 = vld [vmem:[%s5582_s21 + $0xfc0] sm:$0xff] }
 0x21b   : > { %4238 = vmatpush1.bf16.xpose.msra.mxu1 %v4237_v42  ;;  %4048 = vmatprep.subr.bf16.mxu0 %v4047_v43  ;;  %v795_v42 = vld [vmem:[%s5582_s21 + $0xff0] sm:$0xff]  ;;  %v981_v43 = vld [vmem:[%s5582_s21 + $0x15c0] sm:$0xff] }
 0x21c   : > { %4240 = vmatprep.subr.bf16.mxu1 %v4239_v44  ;;  %v987_v44 = vld [vmem:[%s5582_s21 + $0x15f0] sm:$0xff]  ;;  %v4069_v49 = vpack.c.bf16 %v795_v42, %v789_v41  ;;  %v672_v41 = vld [vmem:[%s5582_s21 + $0xc18] sm:$0xff]  ;;  %v678_v42 = vld [vmem:[%s5582_s21 + $0xc48] sm:$0xff] }
 0x21d   : > { %v4261_v50 = vpack.c.bf16 %v987_v44, %v981_v43  ;;  %v864_v43 = vld [vmem:[%s5582_s21 + $0x1218] sm:$0xff]  ;;  %v870_v44 = vld [vmem:[%s5582_s21 + $0x1248] sm:$0xff]  ;;  %v4091_v47 = vpack.c.bf16 %v678_v42, %v672_v41 }
 0x21e   : > { %v4283_v48 = vpack.c.bf16 %v870_v44, %v864_v43  ;;  %v5133_v41 = vld [vmem:[#allocation2 + $0x128] sm:$0x1] }
 0x222   : > { %4050 = vmatpush1.bf16.xpose.msra.mxu0 %v4049_v53  ;;  %v801_v53 = vld [vmem:[%s5582_s21 + $0x1020] sm:$0xff] }
 0x223   : > { %4242 = vmatpush1.bf16.xpose.msra.mxu1 %v4241_v54  ;;  %4052 = vmatprep.subr.bf16.mxu0 %v4051_v55  ;;  %v807_v54 = vld [vmem:[%s5582_s21 + $0x1050] sm:$0xff]  ;;  %v993_v55 = vld [vmem:[%s5582_s21 + $0x1620] sm:$0xff] }
 0x224   : > { %4244 = vmatprep.subr.bf16.mxu1 %v4243_v56  ;;  %v999_v56 = vld [vmem:[%s5582_s21 + $0x1650] sm:$0xff]  ;;  %v4073_v61 = vpack.c.bf16 %v807_v54, %v801_v53  ;;  %v684_v53 = vld [vmem:[%s5582_s21 + $0xc78] sm:$0xff]  ;;  %v690_v54 = vld [vmem:[%s5582_s21 + $0xca8] sm:$0xff] }
 0x225   : > { %v4265_v62 = vpack.c.bf16 %v999_v56, %v993_v55  ;;  %v876_v55 = vld [vmem:[%s5582_s21 + $0x1278] sm:$0xff]  ;;  %v882_v56 = vld [vmem:[%s5582_s21 + $0x12a8] sm:$0xff]  ;;  %v4095_v59 = vpack.c.bf16 %v690_v54, %v684_v53 }
 0x226   : > { %v4287_v60 = vpack.c.bf16 %v882_v56, %v876_v55  ;;  %v924_v53 = vld [vmem:[%s5582_s21 + $0x13f8] sm:$0xff]  ;;  %v930_v54 = vld [vmem:[%s5582_s21 + $0x1428] sm:$0xff] }
 0x22a   : > { %4054 = vmatpush1.bf16.xpose.msra.mxu0 %v4053_v1  ;;  %v813_v1 = vld [vmem:[%s5582_s21 + $0x1080] sm:$0xff] }
 0x22b   : > { %4246 = vmatpush1.bf16.xpose.msra.mxu1 %v4245_v2  ;;  %4056 = vmatprep.subr.bf16.mxu0 %v4055_v3  ;;  %v819_v2 = vld [vmem:[%s5582_s21 + $0x10b0] sm:$0xff]  ;;  %v1005_v3 = vld [vmem:[%s5582_s21 + $0x1680] sm:$0xff] }
 0x22c   : > { %4248 = vmatprep.subr.bf16.mxu1 %v4247_v4  ;;  %v1011_v4 = vld [vmem:[%s5582_s21 + $0x16b0] sm:$0xff]  ;;  %v4077_v9 = vpack.c.bf16 %v819_v2, %v813_v1  ;;  %v881_v1 = vld [vmem:[%s5582_s21 + $0x12a0] sm:$0xff]  ;;  %v696_v2 = vld [vmem:[%s5582_s21 + $0xcd8] sm:$0xff] }
 0x22d   : > { %v4269_v10 = vpack.c.bf16 %v1011_v4, %v1005_v3  ;;  %v702_v3 = vld [vmem:[%s5582_s21 + $0xd08] sm:$0xff] }
 0x22e   : > { %v5123_v4 = vld [vmem:[#allocation2 + $0x38] sm:$0xff] }
 0x232   : > { %4058 = vmatpush1.bf16.xpose.msra.mxu0 %v4057_v13  ;;  %v825_v13 = vld [vmem:[%s5582_s21 + $0x10e0] sm:$0xff] }
 0x233   : > { %4250 = vmatpush1.bf16.xpose.msra.mxu1 %v4249_v14  ;;  %4060 = vmatprep.subr.bf16.mxu0 %v4059_v15  ;;  %v831_v14 = vld [vmem:[%s5582_s21 + $0x1110] sm:$0xff]  ;;  %v1017_v15 = vld [vmem:[%s5582_s21 + $0x16e0] sm:$0xff] }
 0x234   : > { %4252 = vmatprep.subr.bf16.mxu1 %v4251_v16  ;;  %v1023_v16 = vld [vmem:[%s5582_s21 + $0x1710] sm:$0xff]  ;;  %v4081_v21 = vpack.c.bf16 %v831_v14, %v825_v13 }
 0x235   : > { %v4273_v22 = vpack.c.bf16 %v1023_v16, %v1017_v15  ;;  %v5126_v13 = vld [vmem:[#allocation2 + $0x60] sm:$0xff]  ;;  %v701_v15 = vld [vmem:[%s5582_s21 + $0xd00] sm:$0xff] }
 0x236   : > { %v695_v14 = vld [vmem:[%s5582_s21 + $0xcd0] sm:$0xff] }
 0x237   : > { %v887_v16 = vld [vmem:[%s5582_s21 + $0x12d0] sm:$0xff] }
 0x23a   : > { %4062 = vmatpush1.bf16.xpose.msra.mxu0 %v4061_v25  ;;  %v837_v25 = vld [vmem:[%s5582_s21 + $0x1140] sm:$0xff] }
 0x23b   : > { %4254 = vmatpush1.bf16.xpose.msra.mxu1 %v4253_v26  ;;  %4064 = vmatprep.subr.bf16.mxu0 %v4063_v27  ;;  %v843_v26 = vld [vmem:[%s5582_s21 + $0x1170] sm:$0xff]  ;;  %v1029_v27 = vld [vmem:[%s5582_s21 + $0x1740] sm:$0xff] }
 0x23c   : > { %4256 = vmatprep.subr.bf16.mxu1 %v4255_v28  ;;  %v1035_v28 = vld [vmem:[%s5582_s21 + $0x1770] sm:$0xff]  ;;  %v4085_v33 = vpack.c.bf16 %v843_v26, %v837_v25  ;;  %v5129_v25 = vld [vmem:[#allocation2 + $0xc8] sm:$0xff]  ;;  %v4293_v26 = vpack.c.bf16 %v893_v17, %v887_v16 }
 0x23d   : > { %v4277_v34 = vpack.c.bf16 %v1035_v28, %v1029_v27  ;;  %v4103_v27 = vpack.c.bf16 %v714_v19, %v708_v18  ;;  %v755_v19 = vld [vmem:[%s5582_s21 + $0xeb0] sm:$0xff] }
 0x242   : > { %4066 = vmatpush1.bf16.xpose.msra.mxu0 %v4065_v37  ;;  %v849_v37 = vld [vmem:[%s5582_s21 + $0x11a0] sm:$0xff] }
 0x243   : > { %4258 = vmatpush1.bf16.xpose.msra.mxu1 %v4257_v38  ;;  %4068 = vmatprep.subr.bf16.mxu0 %v4067_v39  ;;  %v855_v38 = vld [vmem:[%s5582_s21 + $0x11d0] sm:$0xff]  ;;  %v1041_v39 = vld [vmem:[%s5582_s21 + $0x17a0] sm:$0xff] }
 0x244   : > { %4260 = vmatprep.subr.bf16.mxu1 %v4259_v40  ;;  %v1047_v40 = vld [vmem:[%s5582_s21 + $0x17d0] sm:$0xff]  ;;  %v4089_v45 = vpack.c.bf16 %v855_v38, %v849_v37  ;;  %v912_v37 = vld [vmem:[%s5582_s21 + $0x1398] sm:$0xff]  ;;  %v918_v38 = vld [vmem:[%s5582_s21 + $0x13c8] sm:$0xff] }
 0x245   : > { %v4281_v46 = vpack.c.bf16 %v1047_v40, %v1041_v39  ;;  %v5132_v39 = vld [vmem:[#allocation2 + $0xf0] sm:$0xff]  ;;  %v4105_v40 = vpack.c.bf16 %v713_v31, %v707_v30  ;;  %v4299_v44 = vpack.c.bf16 %v918_v38, %v912_v37  ;;  %v767_v31 = vld [vmem:[%s5582_s21 + $0xf10] sm:$0xff]  ;;  %v972_v37 = vld [vmem:[%s5582_s21 + $0x1578] sm:$0xff] }
 0x246   : > { %v978_v38 = vld [vmem:[%s5582_s21 + $0x15a8] sm:$0xff] }
 0x24a   : > { %4070 = vmatpush1.bf16.xpose.msra.mxu0 %v4069_v49  ;;  %v671_v49 = vld [vmem:[%s5582_s21 + $0xc10] sm:$0xff] }
 0x24b   : > { %4262 = vmatpush1.bf16.xpose.msra.mxu1 %v4261_v50  ;;  %4072 = vmatprep.subr.bf16.mxu0 %v4071_v51  ;;  %v677_v50 = vld [vmem:[%s5582_s21 + $0xc40] sm:$0xff]  ;;  %v863_v51 = vld [vmem:[%s5582_s21 + $0x1210] sm:$0xff] }
 0x24c   : > { %4264 = vmatprep.subr.bf16.mxu1 %v4263_v52  ;;  %v869_v52 = vld [vmem:[%s5582_s21 + $0x1240] sm:$0xff]  ;;  %v4093_v57 = vpack.c.bf16 %v677_v50, %v671_v49  ;;  %v732_v50 = vld [vmem:[%s5582_s21 + $0xdf8] sm:$0xff] }
 0x24d   : > { %v4285_v58 = vpack.c.bf16 %v869_v52, %v863_v51  ;;  %v917_v49 = vld [vmem:[%s5582_s21 + $0x13c0] sm:$0xff]  ;;  %v738_v51 = vld [vmem:[%s5582_s21 + $0xe28] sm:$0xff] }
 0x24e   : > { %v5135_v52 = vld [vmem:[#allocation2 + $0x18] sm:$0xff] }
 0x252   : > { %4074 = vmatpush1.bf16.xpose.msra.mxu0 %v4073_v61  ;;  %v5122_v61 = vld [vmem:[#allocation2] sm:$0xff] }
 0x253   : > { %4266 = vmatpush1.bf16.xpose.msra.mxu1 %v4265_v62  ;;  %4076 = vmatprep.subr.bf16.mxu0 %v4075_v63  ;;  %v683_v62 = vld [vmem:[%s5582_s21 + $0xc70] sm:$0xff]  ;;  %v689_v63 = vld [vmem:[%s5582_s21 + $0xca0] sm:$0xff] }
 0x254   : > { %4268 = vmatprep.subr.bf16.mxu1 %v4267_v0  ;;  %v875_v0 = vld [vmem:[%s5582_s21 + $0x1270] sm:$0xff]  ;;  %v4097_v8 = vpack.c.bf16 %v689_v63, %v683_v62  ;;  %v929_v62 = vld [vmem:[%s5582_s21 + $0x1420] sm:$0xff]  ;;  %v744_v63 = vld [vmem:[%s5582_s21 + $0xe58] sm:$0xff] }
 0x25a   : > { %4078 = vmatpush1.bf16.xpose.msra.mxu0 %v4077_v9  ;;  %v5125_v9 = vld [vmem:[#allocation2 + $0x68] sm:$0xff] }
 0x25b   : > { %4270 = vmatpush1.bf16.xpose.msra.mxu1 %v4269_v10  ;;  %4080 = vmatprep.subr.bf16.mxu0 %v4079_v11  ;;  %v4289_v10 = vpack.c.bf16 %v881_v1, %v875_v0  ;;  %v4099_v11 = vpack.c.bf16 %v702_v3, %v696_v2  ;;  %v750_v0 = vld [vmem:[%s5582_s21 + $0xe88] sm:$0xff]  ;;  %v936_v1 = vld [vmem:[%s5582_s21 + $0x1458] sm:$0xff] }
 0x25c   : > { %4272 = vmatprep.subr.bf16.mxu1 %v4271_v12  ;;  %v4291_v12 = vpack.c.bf16 %v894_v6, %v888_v5  ;;  %v942_v2 = vld [vmem:[%s5582_s21 + $0x1488] sm:$0xff]  ;;  %v4115_v5 = vpack.c.bf16 %v750_v0, %v744_v63  ;;  %v996_v0 = vld [vmem:[%s5582_s21 + $0x1638] sm:$0xff] }
 0x25d   : > { %v4307_v6 = vpack.c.bf16 %v942_v2, %v936_v1  ;;  %v1002_v1 = vld [vmem:[%s5582_s21 + $0x1668] sm:$0xff] }
 0x262   : > { %4082 = vmatpush1.bf16.xpose.msra.mxu0 %v4081_v21  ;;  %v900_v21 = vld [vmem:[%s5582_s21 + $0x1338] sm:$0xff] }
 0x263   : > { %4274 = vmatpush1.bf16.xpose.msra.mxu1 %v4273_v22  ;;  %4084 = vmatprep.subr.bf16.mxu0 %v4083_v23  ;;  %v906_v22 = vld [vmem:[%s5582_s21 + $0x1368] sm:$0xff]  ;;  %v5128_v23 = vld [vmem:[#allocation2 + $0x90] sm:$0xff] }
 0x264   : > { %4276 = vmatprep.subr.bf16.mxu1 %v4275_v24  ;;  %v4101_v24 = vpack.c.bf16 %v701_v15, %v695_v14  ;;  %v4295_v28 = vpack.c.bf16 %v906_v22, %v900_v21  ;;  %v954_v14 = vld [vmem:[%s5582_s21 + $0x14e8] sm:$0xff]  ;;  %v947_v21 = vld [vmem:[%s5582_s21 + $0x14b0] sm:$0xff]  ;;  %v953_v22 = vld [vmem:[%s5582_s21 + $0x14e0] sm:$0xff] }
 0x26a   : > { %4086 = vmatpush1.bf16.xpose.msra.mxu0 %v4085_v33  ;;  %v905_v33 = vld [vmem:[%s5582_s21 + $0x1360] sm:$0xff] }
 0x26b   : > { %4278 = vmatpush1.bf16.xpose.msra.mxu1 %v4277_v34  ;;  %4088 = vmatprep.subr.bf16.mxu0 %v4087_v35  ;;  %v720_v34 = vld [vmem:[%s5582_s21 + $0xd98] sm:$0xff]  ;;  %v726_v35 = vld [vmem:[%s5582_s21 + $0xdc8] sm:$0xff]  ;;  %v4297_v42 = vpack.c.bf16 %v905_v33, %v899_v32  ;;  %v773_v32 = vld [vmem:[%s5582_s21 + $0xf40] sm:$0xff] }
 0x26c   : > { %4280 = vmatprep.subr.bf16.mxu1 %v4279_v36  ;;  %v5131_v36 = vld [vmem:[#allocation2 + $0xf8] sm:$0xff]  ;;  %v4107_v43 = vpack.c.bf16 %v726_v35, %v720_v34  ;;  %v959_v33 = vld [vmem:[%s5582_s21 + $0x1510] sm:$0xff]  ;;  %v965_v34 = vld [vmem:[%s5582_s21 + $0x1540] sm:$0xff] }
 0x26d   : > { %v780_v35 = vld [vmem:[%s5582_s21 + $0xf78] sm:$0xff] }
 0x272   : > { %4090 = vmatpush1.bf16.xpose.msra.mxu0 %v4089_v45  ;;  %v5134_v45 = vld [vmem:[#allocation2 + $0x120] sm:$0x1] }
 0x273   : > { %4282 = vmatpush1.bf16.xpose.msra.mxu1 %v4281_v46  ;;  %4092 = vmatprep.subr.bf16.mxu0 %v4091_v47  ;;  %v719_v46 = vld [vmem:[%s5582_s21 + $0xd90] sm:$0xff]  ;;  %v725_v47 = vld [vmem:[%s5582_s21 + $0xdc0] sm:$0xff] }
 0x274   : > { %4284 = vmatprep.subr.bf16.mxu1 %v4283_v48  ;;  %v911_v48 = vld [vmem:[%s5582_s21 + $0x1390] sm:$0xff]  ;;  %v4109_v55 = vpack.c.bf16 %v725_v47, %v719_v46  ;;  %v977_v46 = vld [vmem:[%s5582_s21 + $0x15a0] sm:$0xff]  ;;  %v792_v47 = vld [vmem:[%s5582_s21 + $0xfd8] sm:$0xff] }
 0x275   : > { %v4301_v56 = vpack.c.bf16 %v917_v49, %v911_v48  ;;  %v798_v48 = vld [vmem:[%s5582_s21 + $0x1008] sm:$0xff]  ;;  %v984_v49 = vld [vmem:[%s5582_s21 + $0x15d8] sm:$0xff] }
 0x279   : > { %2208 = vmatmul.mubr.f32.vlgmr.msra.gmra.mrb[14].mxu0 %v5122_v61 }
 0x27a   : > { %4094 = vmatpush1.bf16.xpose.msra.mxu0 %v4093_v57  ;;  %2529 = vmatmul.mubr.f32.vlgmr.msra.gmra.mrb[14].mxu1 %v5122_v61  ;;  %v4111_v57 = vpack.c.bf16 %v738_v51, %v732_v50  ;;  %v923_v61 = vld [vmem:[%s5582_s21 + $0x13f0] sm:$0xff]  ;;  %v990_v50 = vld [vmem:[%s5582_s21 + $0x1608] sm:$0xff]  ;;  %v1441_v51 = vlaneseq }
 0x27b   : > { %4286 = vmatpush1.bf16.xpose.msra.mxu1 %v4285_v58  ;;  %4096 = vmatprep.subr.bf16.mxu0 %v4095_v59  ;;  %v4303_v58 = vpack.c.bf16 %v930_v54, %v924_v53  ;;  %v731_v59 = vld [vmem:[%s5582_s21 + $0xdf0] sm:$0xff]  ;;  %v4131_v54 = vpack.c.bf16 %v798_v48, %v792_v47  ;;  %v828_v47 = vld [vmem:[%s5582_s21 + $0x10f8] sm:$0xff]  ;;  %v834_v48 = vld [vmem:[%s5582_s21 + $0x1128] sm:$0xff] }
 0x27c   : > { %4288 = vmatprep.subr.bf16.mxu1 %v4287_v60  ;;  %2213 = vmatprep.mubr.f32.mxu0 %v5123_v4  ;;  %v737_v60 = vld [vmem:[%s5582_s21 + $0xe20] sm:$0xff] }
 0x27d   : > { %2534 = vmatprep.mubr.f32.mxu1 %v5123_v4  ;;  %2214 = vmatmul.mubr.f32.gmra.mrb[16].mxu0 %v5124_v7  ;;  %v4113_v3 = vpack.c.bf16 %v737_v60, %v731_v59  ;;  %v4305_v4 = vpack.c.bf16 %v929_v62, %v923_v61  ;;  %v983_v59 = vld [vmem:[%s5582_s21 + $0x15d0] sm:$0xff]  ;;  %v989_v60 = vld [vmem:[%s5582_s21 + $0x1600] sm:$0xff]  ;;  %v804_v61 = vld [vmem:[%s5582_s21 + $0x1038] sm:$0xff] }
 0x27e   : > { %2535 = vmatmul.mubr.f32.gmra.mrb[16].mxu1 %v5124_v7  ;;  %2219 = vmatprep.mubr.f32.mxu0 %v5125_v9  ;;  %v743_v7 = vld [vmem:[%s5582_s21 + $0xe50] sm:$0xff]  ;;  %v810_v62 = vld [vmem:[%s5582_s21 + $0x1068] sm:$0xff] }
 0x27f   : > { %2540 = vmatprep.mubr.f32.mxu1 %v5125_v9  ;;  %v935_v9 = vld [vmem:[%s5582_s21 + $0x1450] sm:$0xff] }
 0x281   : > { %2220 = vmatmul.mubr.f32.gmra.mrb[18].mxu0 %v5126_v13 }
 0x282   : > { %4098 = vmatpush1.bf16.xpose.msra.mxu0 %v4097_v8  ;;  %2541 = vmatmul.mubr.f32.gmra.mrb[18].mxu1 %v5126_v13  ;;  %v749_v8 = vld [vmem:[%s5582_s21 + $0xe80] sm:$0xff]  ;;  %v948_v13 = vld [vmem:[%s5582_s21 + $0x14b8] sm:$0xff] }
 0x283   : > { %4290 = vmatpush1.bf16.xpose.msra.mxu1 %v4289_v10  ;;  %4100 = vmatprep.subr.bf16.mxu0 %v4099_v11  ;;  %v941_v10 = vld [vmem:[%s5582_s21 + $0x1480] sm:$0xff]  ;;  %v756_v11 = vld [vmem:[%s5582_s21 + $0xeb8] sm:$0xff]  ;;  %v4117_v15 = vpack.c.bf16 %v749_v8, %v743_v7  ;;  %v4311_v18 = vpack.c.bf16 %v954_v14, %v948_v13  ;;  %v4135_v8 = vpack.c.bf16 %v810_v62, %v804_v61  ;;  %v803_v14 = vld [vmem:[%s5582_s21 + $0x1030] sm:$0xff] }
 0x284   : > { %4292 = vmatprep.subr.bf16.mxu1 %v4291_v12  ;;  %2225 = vmatprep.mubr.f32.mxu0 %v5127_v20  ;;  %v762_v12 = vld [vmem:[%s5582_s21 + $0xee8] sm:$0xff]  ;;  %v4309_v16 = vpack.c.bf16 %v941_v10, %v935_v9  ;;  %v4327_v9 = vpack.c.bf16 %v1002_v1, %v996_v0  ;;  %v4143_v61 = vpack.c.bf16 %v834_v48, %v828_v47  ;;  %v1037_v47 = vld [vmem:[%s5582_s21 + $0x1780] sm:$0xff]  ;;  %v852_v48 = vld [vmem:[%s5582_s21 + $0x11b8] sm:$0xff] }
 0x285   : > { %2546 = vmatprep.mubr.f32.mxu1 %v5127_v20  ;;  %2226 = vmatmul.mubr.f32.gmra.mrb[20].mxu0 %v5128_v23  ;;  %v4119_v17 = vpack.c.bf16 %v762_v12, %v756_v11  ;;  %v761_v20 = vld [vmem:[%s5582_s21 + $0xee0] sm:$0xff] }
 0x286   : > { %2547 = vmatmul.mubr.f32.gmra.mrb[20].mxu1 %v5128_v23  ;;  %2231 = vmatprep.mubr.f32.mxu0 %v5129_v25  ;;  %v768_v23 = vld [vmem:[%s5582_s21 + $0xf18] sm:$0xff] }
 0x287   : > { %2552 = vmatprep.mubr.f32.mxu1 %v5129_v25  ;;  %v960_v25 = vld [vmem:[%s5582_s21 + $0x1518] sm:$0xff] }
 0x289   : > { %2232 = vmatmul.mubr.f32.gmra.mrb[22].mxu0 %v5130_v29 }
 0x28a   : > { %4102 = vmatpush1.bf16.xpose.msra.mxu0 %v4101_v24  ;;  %2553 = vmatmul.mubr.f32.gmra.mrb[22].mxu1 %v5130_v29  ;;  %v774_v24 = vld [vmem:[%s5582_s21 + $0xf48] sm:$0xff] }
 0x28b   : > { %4294 = vmatpush1.bf16.xpose.msra.mxu1 %v4293_v26  ;;  %4104 = vmatprep.subr.bf16.mxu0 %v4103_v27  ;;  %v966_v26 = vld [vmem:[%s5582_s21 + $0x1548] sm:$0xff]  ;;  %v4121_v27 = vpack.c.bf16 %v761_v20, %v755_v19  ;;  %v4123_v29 = vpack.c.bf16 %v774_v24, %v768_v23  ;;  %v816_v19 = vld [vmem:[%s5582_s21 + $0x1098] sm:$0xff] }
 0x28c   : > { %4296 = vmatprep.subr.bf16.mxu1 %v4295_v28  ;;  %2237 = vmatprep.mubr.f32.mxu0 %v5131_v36  ;;  %v4313_v28 = vpack.c.bf16 %v953_v22, %v947_v21  ;;  %v4315_v30 = vpack.c.bf16 %v966_v26, %v960_v25  ;;  %v822_v20 = vld [vmem:[%s5582_s21 + $0x10c8] sm:$0xff]  ;;  %v1008_v24 = vld [vmem:[%s5582_s21 + $0x1698] sm:$0xff] }
 0x28d   : > { %2558 = vmatprep.mubr.f32.mxu1 %v5131_v36  ;;  %2238 = vmatmul.mubr.f32.gmra.mrb[24].mxu0 %v5132_v39  ;;  %v786_v36 = vld [vmem:[%s5582_s21 + $0xfa8] sm:$0xff] }
 0x28e   : > { %2559 = vmatmul.mubr.f32.gmra.mrb[24].mxu1 %v5132_v39  ;;  %2243 = vmatprep.mubr.f32.mxu0 %v5133_v41  ;;  %v4125_v39 = vpack.c.bf16 %v773_v32, %v767_v31  ;;  %v1014_v25 = vld [vmem:[%s5582_s21 + $0x16c8] sm:$0xff]  ;;  %v4139_v32 = vpack.c.bf16 %v822_v20, %v816_v19  ;;  %v1025_v19 = vld [vmem:[%s5582_s21 + $0x1720] sm:$0xff]  ;;  %v840_v20 = vld [vmem:[%s5582_s21 + $0x1158] sm:$0xff] }
 0x28f   : > { %2564 = vmatprep.mubr.f32.mxu1 %v5133_v41  ;;  %v4127_v41 = vpack.c.bf16 %v786_v36, %v780_v35 }
 0x291   : > { %2244 = vmatmul.mubr.f32.gmra.mrb[26].mxu0 %v5134_v45 }
 0x292   : > { %4106 = vmatpush1.bf16.xpose.msra.mxu0 %v4105_v40  ;;  %2565 = vmatmul.mubr.f32.gmra.mrb[26].mxu1 %v5134_v45  ;;  %v4317_v40 = vpack.c.bf16 %v965_v34, %v959_v33  ;;  %v971_v45 = vld [vmem:[%s5582_s21 + $0x1570] sm:$0xff]  ;;  %v4331_v34 = vpack.c.bf16 %v1014_v25, %v1008_v24  ;;  %v1032_v25 = vld [vmem:[%s5582_s21 + $0x1758] sm:$0xff] }
 0x293   : > { %4298 = vmatpush1.bf16.xpose.msra.mxu1 %v4297_v42  ;;  %4108 = vmatprep.subr.bf16.mxu0 %v4107_v43  ;;  %v4319_v42 = vpack.c.bf16 %v978_v38, %v972_v37  ;;  %v779_v43 = vld [vmem:[%s5582_s21 + $0xf70] sm:$0xff]  ;;  %v4321_v53 = vpack.c.bf16 %v977_v46, %v971_v45  ;;  %v1013_v46 = vld [vmem:[%s5582_s21 + $0x16c0] sm:$0xff] }
 0x294   : > { %4300 = vmatprep.subr.bf16.mxu1 %v4299_v44  ;;  %2314 = vmatprep.mubr.f32.mxu0 %v5135_v52  ;;  %v785_v44 = vld [vmem:[%s5582_s21 + $0xfa0] sm:$0xff] }
 0x295   : > { %2635 = vmatprep.mubr.f32.mxu1 %v5135_v52  ;;  %v4129_v52 = vpack.c.bf16 %v785_v44, %v779_v43  ;;  %v821_v43 = vld [vmem:[%s5582_s21 + $0x10c0] sm:$0xff]  ;;  %v1007_v44 = vld [vmem:[%s5582_s21 + $0x1690] sm:$0xff] }
 0x29a   : > { %4110 = vmatpush1.bf16.xpose.msra.mxu0 %v4109_v55  ;;  %v4323_v55 = vpack.c.bf16 %v990_v50, %v984_v49 }
 0x29b   : > { %4302 = vmatpush1.bf16.xpose.msra.mxu1 %v4301_v56  ;;  %4112 = vmatprep.subr.bf16.mxu0 %v4111_v57  ;;  %v6185_v56 = vshrl.u32 %v1441_v51, 7  ;;  %v791_v57 = vld [vmem:[%s5582_s21 + $0xfd0] sm:$0xff] }
 0x29c   : > { %4304 = vmatprep.subr.bf16.mxu1 %v4303_v58  ;;  %v797_v58 = vld [vmem:[%s5582_s21 + $0x1000] sm:$0xff] }
 0x29d   : > { %v1443_v63 = vsub.s32 0, %v6185_v56  ;;  %v4133_v2 = vpack.c.bf16 %v797_v58, %v791_v57  ;;  %v1455_v7 = vsub.s32 3, %v6185_v56 }
 0x2a2   : > { %4114 = vmatpush1.bf16.xpose.msra.mxu0 %v4113_v3  ;;  %v1437_v3 = vld [vmem:[%s6196_s26] sm:$0xff] }
 0x2a3   : > { %4306 = vmatpush1.bf16.xpose.msra.mxu1 %v4305_v4  ;;  %4116 = vmatprep.subr.bf16.mxu0 %v4115_v5  ;;  %v1451_v4 = vsub.s32 2, %v6185_v56  ;;  %v1447_v5 = vsub.s32 1, %v6185_v56  ;;  %v6205_v10 = vrot.slane %v1437_v3, %v1443_v63  ;;  %v6217_v13 = vrot.slane %v1437_v3, %v1455_v7 }
 0x2a4   : > { %4308 = vmatprep.subr.bf16.mxu1 %v4307_v6  ;;  %v4325_v6 = vpack.c.bf16 %v989_v60, %v983_v59  ;;  %v4333_v60 = vpack.c.bf16 %v1013_v46, %v1007_v44  ;;  %v845_v44 = vld [vmem:[%s5582_s21 + $0x1180] sm:$0xff] }
 0x2a5   : > { %v6209_v11 = vrot.slane %v1437_v3, %v1451_v4  ;;  %v6213_v12 = vrot.slane %v1437_v3, %v1447_v5 }
 0x2aa   : > { %4118 = vmatpush1.bf16.xpose.msra.mxu0 %v4117_v15  ;;  %v809_v15 = vld [vmem:[%s5582_s21 + $0x1060] sm:$0xff] }
 0x2ab   : > { %4310 = vmatpush1.bf16.xpose.msra.mxu1 %v4309_v16  ;;  %4120 = vmatprep.subr.bf16.mxu0 %v4119_v17  ;;  %v995_v16 = vld [vmem:[%s5582_s21 + $0x1630] sm:$0xff] }
 0x2ac   : > { %4312 = vmatprep.subr.bf16.mxu1 %v4311_v18  ;;  %v1001_v18 = vld [vmem:[%s5582_s21 + $0x1660] sm:$0xff] }
 0x2ad   : > { %v4329_v31 = vpack.c.bf16 %v1001_v18, %v995_v16  ;;  %v833_v16 = vld [vmem:[%s5582_s21 + $0x1120] sm:$0xff] }
 0x2b2   : > { %4122 = vmatpush1.bf16.xpose.msra.mxu0 %v4121_v27 }
 0x2b3   : > { %4314 = vmatpush1.bf16.xpose.msra.mxu1 %v4313_v28  ;;  %4124 = vmatprep.subr.bf16.mxu0 %v4123_v29  ;;  %v4137_v29 = vpack.c.bf16 %v809_v15, %v803_v14  ;;  %v827_v15 = vld [vmem:[%s5582_s21 + $0x10f0] sm:$0xff] }
 0x2b4   : > { %4316 = vmatprep.subr.bf16.mxu1 %v4315_v30 }
 0x2ba   : > { %4126 = vmatpush1.bf16.xpose.msra.mxu0 %v4125_v39 }
 0x2bb   : > { %4318 = vmatpush1.bf16.xpose.msra.mxu1 %v4317_v40  ;;  %4128 = vmatprep.subr.bf16.mxu0 %v4127_v41 }
 0x2bc   : > { %4320 = vmatprep.subr.bf16.mxu1 %v4319_v42  ;;  %v815_v42 = vld [vmem:[%s5582_s21 + $0x1090] sm:$0xff] }
 0x2bd   : > { %v4141_v58 = vpack.c.bf16 %v821_v43, %v815_v42  ;;  %v839_v43 = vld [vmem:[%s5582_s21 + $0x1150] sm:$0xff] }
 0x2c2   : > { %4130 = vmatpush1.bf16.xpose.msra.mxu0 %v4129_v52  ;;  %v1020_v52 = vld [vmem:[%s5582_s21 + $0x16f8] sm:$0xff] }
 0x2c3   : > { %4322 = vmatpush1.bf16.xpose.msra.mxu1 %v4321_v53  ;;  %4132 = vmatprep.subr.bf16.mxu0 %v4131_v54  ;;  %v1026_v53 = vld [vmem:[%s5582_s21 + $0x1728] sm:$0xff] }
 0x2c4   : > { %4324 = vmatprep.subr.bf16.mxu1 %v4323_v55  ;;  %v4335_v0 = vpack.c.bf16 %v1026_v53, %v1020_v52  ;;  %v1044_v53 = vld [vmem:[%s5582_s21 + $0x17b8] sm:$0xff] }
 0x2ca   : > { %4134 = vmatpush1.bf16.xpose.msra.mxu0 %v4133_v2 }
 0x2cb   : > { %4326 = vmatpush1.bf16.xpose.msra.mxu1 %v4325_v6  ;;  %4136 = vmatprep.subr.bf16.mxu0 %v4135_v8 }
 0x2cc   : > { %v1781_v17 = vpop.f32.mrb[0].mxu0  ;;  %4328 = vmatprep.subr.bf16.mxu1 %v4327_v9 }
 0x2cd   : > { %v4795_v21 = vadd.f32 %v1781_v17, %v6205_v10  ;;  %v2102_v22 = vpop.f32.mrb[0].mxu1  ;;  %v1783_v23 = vpop.f32.mrb[1].mxu0  ;;  %v1019_v17 = vld [vmem:[%s5582_s21 + $0x16f0] sm:$0xff] }
 0x2ce   : > { %v4809_v26 = vadd.f32 %v2102_v22, %v6209_v11  ;;  %v4796_v27 = vadd.f32 %v1783_v23, %v6213_v12  ;;  %v2104_v28 = vpop.f32.mrb[1].mxu1 }
 0x2cf   : > { %3427 = vst [vmem:[%s6230_s10] sm:$0xff] %v4795_v21  ;;  %v4810_v30 = vadd.f32 %v2104_v28, %v6217_v13  ;;  %v846_v21 = vld [vmem:[%s5582_s21 + $0x1188] sm:$0xff] }
 0x2d0   : > { %3429 = vst [vmem:[%s6230_s10 + $0x10] sm:$0xff] %v4809_v26  ;;  %3428 = vst [vmem:[%s6230_s10 + $0x8] sm:$0xff] %v4796_v27  ;;  %v1787_v33 = vpop.f32.mrb[2].mxu0  ;;  %v1038_v26 = vld [vmem:[%s5582_s21 + $0x1788] sm:$0xff] }
 0x2d1   : > { %3430 = vst [vmem:[%s6230_s10 + $0x18] sm:$0xff] %v4810_v30  ;;  %v4797_v35 = vadd.f32 %v1787_v33, %v6205_v10  ;;  %v2108_v36 = vpop.f32.mrb[2].mxu1  ;;  %v1789_v37 = vpop.f32.mrb[3].mxu0  ;;  %v4145_v30 = vpack.c.bf16 %v833_v16, %v827_v15  ;;  %v4147_v33 = vpack.c.bf16 %v846_v21, %v840_v20  ;;  %v673_v16 = vld [vmem:[%s5582_s21 + $0xc20] sm:$0xff]  ;;  %v686_v20 = vld [vmem:[%s5582_s21 + $0xc88] sm:$0xff]  ;;  %v692_v21 = vld [vmem:[%s5582_s21 + $0xcb8] sm:$0xff] }
 0x2d2   : > { %v4811_v38 = vadd.f32 %v2108_v36, %v6209_v11  ;;  %v4798_v39 = vadd.f32 %v1789_v37, %v6213_v12  ;;  %v2110_v40 = vpop.f32.mrb[3].mxu1  ;;  %4138 = vmatpush1.bf16.xpose.msra.mxu0 %v4137_v29 }
 0x2d3   : > { %3439 = vst [vmem:[%s6230_s10 + $0x60] sm:$0xff] %v4797_v35  ;;  %v4812_v41 = vadd.f32 %v2110_v40, %v6217_v13  ;;  %4330 = vmatpush1.bf16.xpose.msra.mxu1 %v4329_v31  ;;  %4140 = vmatprep.subr.bf16.mxu0 %v4139_v32  ;;  %v4337_v32 = vpack.c.bf16 %v1025_v19, %v1019_v17  ;;  %v679_v17 = vld [vmem:[%s5582_s21 + $0xc50] sm:$0xff] }
 0x2d4   : > { %3441 = vst [vmem:[%s6230_s10 + $0x70] sm:$0xff] %v4811_v38  ;;  %3440 = vst [vmem:[%s6230_s10 + $0x68] sm:$0xff] %v4798_v39  ;;  %v1793_v45 = vpop.f32.mrb[4].mxu0  ;;  %4332 = vmatprep.subr.bf16.mxu1 %v4331_v34  ;;  %v4339_v35 = vpack.c.bf16 %v1038_v26, %v1032_v25  ;;  %v871_v19 = vld [vmem:[%s5582_s21 + $0x1250] sm:$0xff]  ;;  %v4159_v26 = vpack.c.bf16 %v692_v21, %v686_v20  ;;  %v913_v20 = vld [vmem:[%s5582_s21 + $0x13a0] sm:$0xff] }
 0x2d5   : > { %3442 = vst [vmem:[%s6230_s10 + $0x78] sm:$0xff] %v4812_v41  ;;  %v4799_v49 = vadd.f32 %v1793_v45, %v6205_v10  ;;  %v2114_v50 = vpop.f32.mrb[4].mxu1  ;;  %v1795_v51 = vpop.f32.mrb[5].mxu0  ;;  %v1031_v45 = vld [vmem:[%s5582_s21 + $0x1750] sm:$0xff] }
 0x2d6   : > { %v4813_v54 = vadd.f32 %v2114_v50, %v6209_v11  ;;  %v4800_v55 = vadd.f32 %v1795_v51, %v6213_v12  ;;  %v2116_v57 = vpop.f32.mrb[5].mxu1  ;;  %v919_v21 = vld [vmem:[%s5582_s21 + $0x13d0] sm:$0xff] }
 0x2d7   : > { %3451 = vst [vmem:[%s6230_s10 + $0xc0] sm:$0xff] %v4799_v49  ;;  %v4814_v59 = vadd.f32 %v2116_v57, %v6217_v13  ;;  %v858_v49 = vld [vmem:[%s5582_s21 + $0x11e8] sm:$0xff] }
 0x2d8   : > { %3453 = vst [vmem:[%s6230_s10 + $0xd0] sm:$0xff] %v4813_v54  ;;  %3452 = vst [vmem:[%s6230_s10 + $0xc8] sm:$0xff] %v4800_v55  ;;  %v1799_v62 = vpop.f32.mrb[6].mxu0  ;;  %v1050_v54 = vld [vmem:[%s5582_s21 + $0x17e8] sm:$0xff] }
 0x2d9   : > { %3454 = vst [vmem:[%s6230_s10 + $0xd8] sm:$0xff] %v4814_v59  ;;  %v4801_v1 = vadd.f32 %v1799_v62, %v6205_v10  ;;  %v2120_v2 = vpop.f32.mrb[6].mxu1  ;;  %v1801_v3 = vpop.f32.mrb[7].mxu0  ;;  %v4149_v59 = vpack.c.bf16 %v845_v44, %v839_v43  ;;  %v4343_v62 = vpack.c.bf16 %v1050_v54, %v1044_v53  ;;  %v5140_v44 = vld [vmem:[#allocation2 + $0x70] sm:$0xff]  ;;  %v908_v53 = vld [vmem:[%s5582_s21 + $0x1378] sm:$0xff]  ;;  %v5142_v54 = vld [vmem:[#allocation2 + $0xa0] sm:$0xff] }
 0x2da   : > { %v4815_v6 = vadd.f32 %v2120_v2, %v6209_v11  ;;  %v4802_v8 = vadd.f32 %v1801_v3, %v6213_v12  ;;  %v2122_v9 = vpop.f32.mrb[7].mxu1  ;;  %4142 = vmatpush1.bf16.xpose.msra.mxu0 %v4141_v58  ;;  %v680_v2 = vld [vmem:[%s5582_s21 + $0xc58] sm:$0xff]  ;;  %v866_v3 = vld [vmem:[%s5582_s21 + $0x1228] sm:$0xff] }
 0x2db   : > { %3463 = vst [vmem:[%s6230_s10 + $0x120] sm:$0xff] %v4801_v1  ;;  %v4816_v14 = vadd.f32 %v2122_v9, %v6217_v13  ;;  %4334 = vmatpush1.bf16.xpose.msra.mxu1 %v4333_v60  ;;  %4144 = vmatprep.subr.bf16.mxu0 %v4143_v61  ;;  %v4151_v61 = vpack.c.bf16 %v858_v49, %v852_v48  ;;  %v674_v1 = vld [vmem:[%s5582_s21 + $0xc28] sm:$0xff]  ;;  %v895_v48 = vld [vmem:[%s5582_s21 + $0x1310] sm:$0xff] }
 0x2dc   : > { %3465 = vst [vmem:[%s6230_s10 + $0x130] sm:$0xff] %v4815_v6  ;;  %3464 = vst [vmem:[%s6230_s10 + $0x128] sm:$0xff] %v4802_v8  ;;  %v1805_v18 = vpop.f32.mrb[8].mxu0  ;;  %4336 = vmatprep.subr.bf16.mxu1 %v4335_v0  ;;  %v1043_v0 = vld [vmem:[%s5582_s21 + $0x17b0] sm:$0xff]  ;;  %v872_v6 = vld [vmem:[%s5582_s21 + $0x1258] sm:$0xff] }
 0x2dd   : > { %3466 = vst [vmem:[%s6230_s10 + $0x138] sm:$0xff] %v4816_v14  ;;  %v4803_v22 = vadd.f32 %v1805_v18, %v6205_v10  ;;  %v2126_v23 = vpop.f32.mrb[8].mxu1  ;;  %v1807_v24 = vpop.f32.mrb[9].mxu0  ;;  %v4155_v14 = vpack.c.bf16 %v680_v2, %v674_v1  ;;  %v4347_v15 = vpack.c.bf16 %v872_v6, %v866_v3  ;;  %v865_v18 = vld [vmem:[%s5582_s21 + $0x1220] sm:$0xff]  ;;  %v710_v49 = vld [vmem:[%s5582_s21 + $0xd48] sm:$0xff]  ;;  %v5145_v1 = vld [vmem:[#allocation2 + $0x108] sm:$0xff] }
 0x2de   : > { %v4817_v27 = vadd.f32 %v2126_v23, %v6209_v11  ;;  %v4804_v28 = vadd.f32 %v1807_v24, %v6213_v12  ;;  %v2128_v29 = vpop.f32.mrb[9].mxu1  ;;  %v884_v23 = vld [vmem:[%s5582_s21 + $0x12b8] sm:$0xff]  ;;  %v4157_v24 = vpack.c.bf16 %v679_v17, %v673_v16  ;;  %v4349_v25 = vpack.c.bf16 %v871_v19, %v865_v18  ;;  %v914_v2 = vld [vmem:[%s5582_s21 + $0x13a8] sm:$0xff]  ;;  %v5146_v6 = vld [vmem:[#allocation2 + $0x100] sm:$0xff] }
 0x2df   : > { %3475 = vst [vmem:[%s6230_s10 + $0x180] sm:$0xff] %v4803_v22  ;;  %v4818_v31 = vadd.f32 %v2128_v29, %v6217_v13  ;;  %v878_v22 = vld [vmem:[%s5582_s21 + $0x1288] sm:$0xff]  ;;  %v685_v29 = vld [vmem:[%s5582_s21 + $0xc80] sm:$0xff]  ;;  %v920_v3 = vld [vmem:[%s5582_s21 + $0x13d8] sm:$0xff] }
 0x2e0   : > { %3477 = vst [vmem:[%s6230_s10 + $0x190] sm:$0xff] %v4817_v27  ;;  %3476 = vst [vmem:[%s6230_s10 + $0x188] sm:$0xff] %v4804_v28  ;;  %v1811_v34 = vpop.f32.mrb[10].mxu0  ;;  %v4351_v27 = vpack.c.bf16 %v884_v23, %v878_v22  ;;  %v5136_v28 = vld [vmem:[#allocation2 + $0x10] sm:$0xff]  ;;  %v4363_v16 = vpack.c.bf16 %v920_v3, %v914_v2  ;;  %v727_v19 = vld [vmem:[%s5582_s21 + $0xdd0] sm:$0xff] }
 0x2e1   : > { %3478 = vst [vmem:[%s6230_s10 + $0x198] sm:$0xff] %v4818_v31  ;;  %v4805_v36 = vadd.f32 %v1811_v34, %v6205_v10  ;;  %v2132_v37 = vpop.f32.mrb[10].mxu1  ;;  %v1813_v38 = vpop.f32.mrb[11].mxu0  ;;  %v877_v31 = vld [vmem:[%s5582_s21 + $0x1280] sm:$0xff]  ;;  %v704_v34 = vld [vmem:[%s5582_s21 + $0xd18] sm:$0xff]  ;;  %v734_v22 = vld [vmem:[%s5582_s21 + $0xe08] sm:$0xff] }
 0x2e2   : > { %v4819_v39 = vadd.f32 %v2132_v37, %v6209_v11  ;;  %v4806_v40 = vadd.f32 %v1813_v38, %v6213_v12  ;;  %v2134_v41 = vpop.f32.mrb[11].mxu1  ;;  %4146 = vmatpush1.bf16.xpose.msra.mxu0 %v4145_v30  ;;  %v691_v30 = vld [vmem:[%s5582_s21 + $0xcb0] sm:$0xff]  ;;  %v896_v37 = vld [vmem:[%s5582_s21 + $0x1318] sm:$0xff]  ;;  %v5148_v17 = vld [vmem:[#allocation2 + $0x130] sm:$0x1] }
 0x2e3   : > { %3487 = vst [vmem:[%s6230_s10 + $0x1e0] sm:$0xff] %v4805_v36  ;;  %v4820_v42 = vadd.f32 %v2134_v41, %v6217_v13  ;;  %4338 = vmatpush1.bf16.xpose.msra.mxu1 %v4337_v32  ;;  %4148 = vmatprep.subr.bf16.mxu0 %v4147_v33  ;;  %v883_v32 = vld [vmem:[%s5582_s21 + $0x12b0] sm:$0xff]  ;;  %v698_v33 = vld [vmem:[%s5582_s21 + $0xce8] sm:$0xff]  ;;  %v721_v18 = vld [vmem:[%s5582_s21 + $0xda0] sm:$0xff] }
 0x2e4   : > { %3489 = vst [vmem:[%s6230_s10 + $0x1f0] sm:$0xff] %v4819_v39  ;;  %3488 = vst [vmem:[%s6230_s10 + $0x1e8] sm:$0xff] %v4806_v40  ;;  %v1817_v46 = vpop.f32.mrb[12].mxu0  ;;  %4340 = vmatprep.subr.bf16.mxu1 %v4339_v35  ;;  %v5137_v35 = vld [vmem:[#allocation2 + $0x48] sm:$0xff]  ;;  %v890_v36 = vld [vmem:[%s5582_s21 + $0x12e8] sm:$0xff]  ;;  %v4161_v39 = vpack.c.bf16 %v691_v30, %v685_v29  ;;  %v4353_v41 = vpack.c.bf16 %v883_v32, %v877_v31 }
 0x2e5   : > { %3490 = vst [vmem:[%s6230_s10 + $0x1f8] sm:$0xff] %v4820_v42  ;;  %v4807_v50 = vadd.f32 %v1817_v46, %v6205_v10  ;;  %v2138_v51 = vpop.f32.mrb[12].mxu1  ;;  %v1819_v52 = vpop.f32.mrb[13].mxu0  ;;  %v4341_v10 = vpack.c.bf16 %v1037_v47, %v1031_v45  ;;  %v5138_v38 = vld [vmem:[#allocation2 + $0x40] sm:$0xff]  ;;  %v5139_v40 = vld [vmem:[#allocation2 + $0x78] sm:$0xff]  ;;  %v4163_v42 = vpack.c.bf16 %v704_v34, %v698_v33  ;;  %v4355_v43 = vpack.c.bf16 %v896_v37, %v890_v36  ;;  %v697_v45 = vld [vmem:[%s5582_s21 + $0xce0] sm:$0xff] }
 0x2e6   : > { %v4821_v55 = vadd.f32 %v2138_v51, %v6209_v11  ;;  %v4808_v57 = vadd.f32 %v1819_v52, %v6213_v12  ;;  %v2140_v58 = vpop.f32.mrb[13].mxu1  ;;  %v851_v11 = vld [vmem:[%s5582_s21 + $0x11b0] sm:$0xff]  ;;  %v857_v12 = vld [vmem:[%s5582_s21 + $0x11e0] sm:$0xff]  ;;  %v5141_v51 = vld [vmem:[#allocation2 + $0xa8] sm:$0xff] }
 0x2e7   : > { %3499 = vst [vmem:[%s6230_s10 + $0x240] sm:$0x1] %v4807_v50  ;;  %v4822_v60 = vadd.f32 %v2140_v58, %v6217_v13  ;;  %v1049_v13 = vld [vmem:[%s5582_s21 + $0x17e0] sm:$0xff]  ;;  %v4153_v8 = vpack.c.bf16 %v857_v12, %v851_v11  ;;  %v703_v46 = vld [vmem:[%s5582_s21 + $0xd10] sm:$0xff]  ;;  %v716_v50 = vld [vmem:[%s5582_s21 + $0xd78] sm:$0xff] }
 0x2e8   : > { %3501 = vst [vmem:[%s6230_s10 + $0x250] sm:$0x1] %v4821_v55  ;;  %3500 = vst [vmem:[%s6230_s10 + $0x248] sm:$0x1] %v4808_v57  ;;  %v4345_v9 = vpack.c.bf16 %v1049_v13, %v1043_v0  ;;  %v889_v47 = vld [vmem:[%s5582_s21 + $0x12e0] sm:$0xff]  ;;  %v902_v52 = vld [vmem:[%s5582_s21 + $0x1348] sm:$0xff]  ;;  %v4165_v55 = vpack.c.bf16 %v703_v46, %v697_v45 }
 0x2e9   : > { %3502 = vst [vmem:[%s6230_s10 + $0x258] sm:$0x1] %v4822_v60  ;;  %v5143_v57 = vld [vmem:[#allocation2 + $0xd8] sm:$0xff]  ;;  %v4357_v58 = vpack.c.bf16 %v895_v48, %v889_v47  ;;  %v4359_v60 = vpack.c.bf16 %v908_v53, %v902_v52  ;;  %v901_v11 = vld [vmem:[%s5582_s21 + $0x1340] sm:$0xff]  ;;  %v907_v12 = vld [vmem:[%s5582_s21 + $0x1370] sm:$0xff] }
 0x2ea   : > { %4150 = vmatpush1.bf16.xpose.msra.mxu0 %v4149_v59  ;;  %v4167_v59 = vpack.c.bf16 %v716_v50, %v710_v49  ;;  %v722_v0 = vld [vmem:[%s5582_s21 + $0xda8] sm:$0xff]  ;;  %v728_v13 = vld [vmem:[%s5582_s21 + $0xdd8] sm:$0xff]  ;;  %v733_v31 = vld [vmem:[%s5582_s21 + $0xe00] sm:$0xff] }
 0x2eb   : > { %4342 = vmatpush1.bf16.xpose.msra.mxu1 %v4341_v10  ;;  %4152 = vmatprep.subr.bf16.mxu0 %v4151_v61  ;;  %v5144_v10 = vld [vmem:[#allocation2 + $0xd0] sm:$0xff]  ;;  %v740_v23 = vld [vmem:[%s5582_s21 + $0xe38] sm:$0xff]  ;;  %v739_v32 = vld [vmem:[%s5582_s21 + $0xe30] sm:$0xff] }
 0x2ec   : > { %4344 = vmatprep.subr.bf16.mxu1 %v4343_v62  ;;  %v709_v61 = vld [vmem:[%s5582_s21 + $0xd40] sm:$0xff]  ;;  %v715_v62 = vld [vmem:[%s5582_s21 + $0xd70] sm:$0xff]  ;;  %v4175_v29 = vpack.c.bf16 %v740_v23, %v734_v22  ;;  %v752_v36 = vld [vmem:[%s5582_s21 + $0xe98] sm:$0xff] }
 0x2ed   : > { %v925_v33 = vld [vmem:[%s5582_s21 + $0x1400] sm:$0xff]  ;;  %v931_v34 = vld [vmem:[%s5582_s21 + $0x1430] sm:$0xff]  ;;  %v938_v37 = vld [vmem:[%s5582_s21 + $0x1468] sm:$0xff] }
 0x2ee   : > { %v937_v45 = vld [vmem:[%s5582_s21 + $0x1460] sm:$0xff]  ;;  %v943_v46 = vld [vmem:[%s5582_s21 + $0x1490] sm:$0xff]  ;;  %v758_v47 = vld [vmem:[%s5582_s21 + $0xec8] sm:$0xff] }
 0x2ef   : > { %v764_v48 = vld [vmem:[%s5582_s21 + $0xef8] sm:$0xff]  ;;  %v950_v49 = vld [vmem:[%s5582_s21 + $0x14c8] sm:$0xff]  ;;  %v4373_v52 = vpack.c.bf16 %v943_v46, %v937_v45  ;;  %v775_v2 = vld [vmem:[%s5582_s21 + $0xf50] sm:$0xff] }
 0x2f0   : > { %v956_v50 = vld [vmem:[%s5582_s21 + $0x14f8] sm:$0xff]  ;;  %v4183_v53 = vpack.c.bf16 %v764_v48, %v758_v47  ;;  %v961_v3 = vld [vmem:[%s5582_s21 + $0x1520] sm:$0xff]  ;;  %v979_v23 = vld [vmem:[%s5582_s21 + $0x15b0] sm:$0xff] }
 0x2f1   : > { %v973_v22 = vld [vmem:[%s5582_s21 + $0x1580] sm:$0xff]  ;;  %v811_v45 = vld [vmem:[%s5582_s21 + $0x1070] sm:$0xff]  ;;  %v818_v48 = vld [vmem:[%s5582_s21 + $0x10a8] sm:$0xff] }
 0x2f2   : > { %4154 = vmatpush1.bf16.xpose.msra.mxu0 %v4153_v8  ;;  %v4169_v8 = vpack.c.bf16 %v715_v62, %v709_v61  ;;  %v962_v61 = vld [vmem:[%s5582_s21 + $0x1528] sm:$0xff]  ;;  %v968_v62 = vld [vmem:[%s5582_s21 + $0x1558] sm:$0xff]  ;;  %v997_v46 = vld [vmem:[%s5582_s21 + $0x1640] sm:$0xff] }
 0x2f3   : > { %4346 = vmatpush1.bf16.xpose.msra.mxu1 %v4345_v9  ;;  %4156 = vmatprep.subr.bf16.mxu0 %v4155_v14  ;;  %v5147_v9 = vld [vmem:[#allocation2 + $0x138] sm:$0x1]  ;;  %v4361_v14 = vpack.c.bf16 %v907_v12, %v901_v11  ;;  %v1003_v47 = vld [vmem:[%s5582_s21 + $0x1670] sm:$0xff] }
 0x2f4   : > { %4348 = vmatprep.subr.bf16.mxu1 %v4347_v15  ;;  %v4171_v15 = vpack.c.bf16 %v728_v13, %v722_v0  ;;  %v4379_v13 = vpack.c.bf16 %v968_v62, %v962_v61  ;;  %v836_v61 = vld [vmem:[%s5582_s21 + $0x1138] sm:$0xff]  ;;  %v1022_v62 = vld [vmem:[%s5582_s21 + $0x1708] sm:$0xff] }
 0x2f9   : > { %2315 = vmatmul.mubr.f32.vlgmr.msra.gmra.mrb[14].mxu0 %v5136_v28 }
 0x2fa   : > { %4158 = vmatpush1.bf16.xpose.msra.mxu0 %v4157_v24  ;;  %2636 = vmatmul.mubr.f32.vlgmr.msra.gmra.mrb[14].mxu1 %v5136_v28  ;;  %v5149_v24 = vld [vmem:[#allocation2 + $0x28] sm:$0xff]  ;;  %v4365_v28 = vpack.c.bf16 %v919_v21, %v913_v20  ;;  %v781_v20 = vld [vmem:[%s5582_s21 + $0xf80] sm:$0xff]  ;;  %v787_v21 = vld [vmem:[%s5582_s21 + $0xfb0] sm:$0xff] }
 0x2fb   : > { %4350 = vmatpush1.bf16.xpose.msra.mxu1 %v4349_v25  ;;  %4160 = vmatprep.subr.bf16.mxu0 %v4159_v26  ;;  %v926_v25 = vld [vmem:[%s5582_s21 + $0x1408] sm:$0xff]  ;;  %v932_v26 = vld [vmem:[%s5582_s21 + $0x1438] sm:$0xff] }
 0x2fc   : > { %4352 = vmatprep.subr.bf16.mxu1 %v4351_v27  ;;  %2320 = vmatprep.mubr.f32.mxu0 %v5137_v35  ;;  %v4173_v27 = vpack.c.bf16 %v727_v19, %v721_v18  ;;  %v4367_v30 = vpack.c.bf16 %v932_v26, %v926_v25  ;;  %v800_v25 = vld [vmem:[%s5582_s21 + $0x1018] sm:$0xff]  ;;  %v986_v26 = vld [vmem:[%s5582_s21 + $0x15e8] sm:$0xff] }
 0x2fd   : > { %2641 = vmatprep.mubr.f32.mxu1 %v5137_v35  ;;  %2321 = vmatmul.mubr.f32.gmra.mrb[16].mxu0 %v5138_v38  ;;  %v746_v35 = vld [vmem:[%s5582_s21 + $0xe68] sm:$0xff] }
 0x2fe   : > { %2642 = vmatmul.mubr.f32.gmra.mrb[16].mxu1 %v5138_v38  ;;  %2326 = vmatprep.mubr.f32.mxu0 %v5139_v40  ;;  %v944_v38 = vld [vmem:[%s5582_s21 + $0x1498] sm:$0xff] }
 0x2ff   : > { %2647 = vmatprep.mubr.f32.mxu1 %v5139_v40  ;;  %v4369_v40 = vpack.c.bf16 %v931_v34, %v925_v33  ;;  %v799_v33 = vld [vmem:[%s5582_s21 + $0x1010] sm:$0xff]  ;;  %v985_v34 = vld [vmem:[%s5582_s21 + $0x15e0] sm:$0xff] }
 0x301   : > { %2327 = vmatmul.mubr.f32.gmra.mrb[18].mxu0 %v5140_v44 }
 0x302   : > { %4162 = vmatpush1.bf16.xpose.msra.mxu0 %v4161_v39  ;;  %2648 = vmatmul.mubr.f32.gmra.mrb[18].mxu1 %v5140_v44  ;;  %v4177_v39 = vpack.c.bf16 %v739_v32, %v733_v31  ;;  %v751_v44 = vld [vmem:[%s5582_s21 + $0xe90] sm:$0xff]  ;;  %v793_v32 = vld [vmem:[%s5582_s21 + $0xfe0] sm:$0xff] }
 0x303   : > { %4354 = vmatpush1.bf16.xpose.msra.mxu1 %v4353_v41  ;;  %4164 = vmatprep.subr.bf16.mxu0 %v4163_v42  ;;  %v4179_v41 = vpack.c.bf16 %v752_v36, %v746_v35  ;;  %v4371_v42 = vpack.c.bf16 %v944_v38, %v938_v37  ;;  %v991_v35 = vld [vmem:[%s5582_s21 + $0x1610] sm:$0xff]  ;;  %v806_v36 = vld [vmem:[%s5582_s21 + $0x1048] sm:$0xff]  ;;  %v812_v37 = vld [vmem:[%s5582_s21 + $0x1078] sm:$0xff] }
 0x304   : > { %4356 = vmatprep.subr.bf16.mxu1 %v4355_v43  ;;  %2332 = vmatprep.mubr.f32.mxu0 %v5141_v51  ;;  %v745_v43 = vld [vmem:[%s5582_s21 + $0xe60] sm:$0xff]  ;;  %v998_v38 = vld [vmem:[%s5582_s21 + $0x1648] sm:$0xff] }
 0x305   : > { %2653 = vmatprep.mubr.f32.mxu1 %v5141_v51  ;;  %2333 = vmatmul.mubr.f32.gmra.mrb[20].mxu0 %v5142_v54  ;;  %v4181_v51 = vpack.c.bf16 %v751_v44, %v745_v43  ;;  %v805_v44 = vld [vmem:[%s5582_s21 + $0x1040] sm:$0xff] }
 0x306   : > { %2654 = vmatmul.mubr.f32.gmra.mrb[20].mxu1 %v5142_v54  ;;  %2338 = vmatprep.mubr.f32.mxu0 %v5143_v57  ;;  %v4375_v54 = vpack.c.bf16 %v956_v50, %v950_v49  ;;  %v824_v49 = vld [vmem:[%s5582_s21 + $0x10d8] sm:$0xff]  ;;  %v1010_v50 = vld [vmem:[%s5582_s21 + $0x16a8] sm:$0xff] }
 0x307   : > { %2659 = vmatprep.mubr.f32.mxu1 %v5143_v57  ;;  %v763_v57 = vld [vmem:[%s5582_s21 + $0xef0] sm:$0xff] }
 0x309   : > { %2339 = vmatmul.mubr.f32.gmra.mrb[22].mxu0 %v5144_v10 }
 0x30a   : > { %4166 = vmatpush1.bf16.xpose.msra.mxu0 %v4165_v55  ;;  %2660 = vmatmul.mubr.f32.gmra.mrb[22].mxu1 %v5144_v10  ;;  %v757_v55 = vld [vmem:[%s5582_s21 + $0xec0] sm:$0xff]  ;;  %v776_v10 = vld [vmem:[%s5582_s21 + $0xf58] sm:$0xff] }
 0x30b   : > { %4358 = vmatpush1.bf16.xpose.msra.mxu1 %v4357_v58  ;;  %4168 = vmatprep.subr.bf16.mxu0 %v4167_v59  ;;  %v949_v58 = vld [vmem:[%s5582_s21 + $0x14c0] sm:$0xff]  ;;  %v955_v59 = vld [vmem:[%s5582_s21 + $0x14f0] sm:$0xff]  ;;  %v4185_v11 = vpack.c.bf16 %v763_v57, %v757_v55 }
 0x30c   : > { %4360 = vmatprep.subr.bf16.mxu1 %v4359_v60  ;;  %2344 = vmatprep.mubr.f32.mxu0 %v5145_v1  ;;  %v770_v60 = vld [vmem:[%s5582_s21 + $0xf28] sm:$0xff]  ;;  %v4377_v12 = vpack.c.bf16 %v955_v59, %v949_v58  ;;  %v817_v57 = vld [vmem:[%s5582_s21 + $0x10a0] sm:$0xff]  ;;  %v823_v58 = vld [vmem:[%s5582_s21 + $0x10d0] sm:$0xff] }
 0x30d   : > { %2665 = vmatprep.mubr.f32.mxu1 %v5145_v1  ;;  %2345 = vmatmul.mubr.f32.gmra.mrb[24].mxu0 %v5146_v6  ;;  %v4187_v0 = vpack.c.bf16 %v776_v10, %v770_v60  ;;  %v769_v1 = vld [vmem:[%s5582_s21 + $0xf20] sm:$0xff]  ;;  %v1015_v60 = vld [vmem:[%s5582_s21 + $0x16d0] sm:$0xff]  ;;  %v830_v10 = vld [vmem:[%s5582_s21 + $0x1108] sm:$0xff] }
 0x30e   : > { %2666 = vmatmul.mubr.f32.gmra.mrb[24].mxu1 %v5146_v6  ;;  %2350 = vmatprep.mubr.f32.mxu0 %v5147_v9  ;;  %v967_v6 = vld [vmem:[%s5582_s21 + $0x1550] sm:$0xff]  ;;  %v1009_v59 = vld [vmem:[%s5582_s21 + $0x16a0] sm:$0xff] }
 0x30f   : > { %2671 = vmatprep.mubr.f32.mxu1 %v5147_v9  ;;  %v788_v9 = vld [vmem:[%s5582_s21 + $0xfb8] sm:$0xff] }
 0x311   : > { %2351 = vmatmul.mubr.f32.gmra.mrb[26].mxu0 %v5148_v17 }
 0x312   : > { %4170 = vmatpush1.bf16.xpose.msra.mxu0 %v4169_v8  ;;  %2672 = vmatmul.mubr.f32.gmra.mrb[26].mxu1 %v5148_v17  ;;  %v782_v8 = vld [vmem:[%s5582_s21 + $0xf88] sm:$0xff]  ;;  %v4381_v17 = vpack.c.bf16 %v967_v6, %v961_v3  ;;  %v835_v3 = vld [vmem:[%s5582_s21 + $0x1130] sm:$0xff]  ;;  %v1021_v6 = vld [vmem:[%s5582_s21 + $0x1700] sm:$0xff] }
 0x313   : > { %4362 = vmatpush1.bf16.xpose.msra.mxu1 %v4361_v14  ;;  %4172 = vmatprep.subr.bf16.mxu0 %v4171_v15  ;;  %v974_v14 = vld [vmem:[%s5582_s21 + $0x1588] sm:$0xff]  ;;  %v980_v15 = vld [vmem:[%s5582_s21 + $0x15b8] sm:$0xff]  ;;  %v4191_v18 = vpack.c.bf16 %v788_v9, %v782_v8  ;;  %v1027_v8 = vld [vmem:[%s5582_s21 + $0x1730] sm:$0xff] }
 0x314   : > { %4364 = vmatprep.subr.bf16.mxu1 %v4363_v16  ;;  %2421 = vmatprep.mubr.f32.mxu0 %v5149_v24  ;;  %v4189_v16 = vpack.c.bf16 %v775_v2, %v769_v1  ;;  %v4383_v19 = vpack.c.bf16 %v980_v15, %v974_v14  ;;  %v829_v2 = vld [vmem:[%s5582_s21 + $0x1100] sm:$0xff]  ;;  %v842_v9 = vld [vmem:[%s5582_s21 + $0x1168] sm:$0xff]  ;;  %v848_v14 = vld [vmem:[%s5582_s21 + $0x1198] sm:$0xff] }
 0x315   : > { %2742 = vmatprep.mubr.f32.mxu1 %v5149_v24  ;;  %v794_v24 = vld [vmem:[%s5582_s21 + $0xfe8] sm:$0xff] }
 0x316   : > { %v1034_v15 = vld [vmem:[%s5582_s21 + $0x1768] sm:$0xff] }
 0x31a   : > { %4174 = vmatpush1.bf16.xpose.msra.mxu0 %v4173_v27  ;;  %v992_v27 = vld [vmem:[%s5582_s21 + $0x1618] sm:$0xff] }
 0x31b   : > { %4366 = vmatpush1.bf16.xpose.msra.mxu1 %v4365_v28  ;;  %4176 = vmatprep.subr.bf16.mxu0 %v4175_v29  ;;  %v4193_v28 = vpack.c.bf16 %v787_v21, %v781_v20  ;;  %v4385_v29 = vpack.c.bf16 %v979_v23, %v973_v22  ;;  %v4387_v31 = vpack.c.bf16 %v992_v27, %v986_v26  ;;  %v841_v21 = vld [vmem:[%s5582_s21 + $0x1160] sm:$0xff]  ;;  %v847_v22 = vld [vmem:[%s5582_s21 + $0x1190] sm:$0xff]  ;;  %v860_v26 = vld [vmem:[%s5582_s21 + $0x11f8] sm:$0xff] }
 0x31c   : > { %4368 = vmatprep.subr.bf16.mxu1 %v4367_v30  ;;  %v4195_v30 = vpack.c.bf16 %v800_v25, %v794_v24  ;;  %v1033_v23 = vld [vmem:[%s5582_s21 + $0x1760] sm:$0xff]  ;;  %v1039_v24 = vld [vmem:[%s5582_s21 + $0x1790] sm:$0xff]  ;;  %v854_v25 = vld [vmem:[%s5582_s21 + $0x11c8] sm:$0xff] }
 0x31d   : > { %v1046_v27 = vld [vmem:[%s5582_s21 + $0x17c8] sm:$0xff] }
 0x322   : > { %4178 = vmatpush1.bf16.xpose.msra.mxu0 %v4177_v39  ;;  %v1004_v39 = vld [vmem:[%s5582_s21 + $0x1678] sm:$0xff] }
 0x323   : > { %4370 = vmatpush1.bf16.xpose.msra.mxu1 %v4369_v40  ;;  %4180 = vmatprep.subr.bf16.mxu0 %v4179_v41  ;;  %v4197_v40 = vpack.c.bf16 %v799_v33, %v793_v32  ;;  %v4389_v41 = vpack.c.bf16 %v991_v35, %v985_v34  ;;  %v4391_v43 = vpack.c.bf16 %v1004_v39, %v998_v38  ;;  %v853_v33 = vld [vmem:[%s5582_s21 + $0x11c0] sm:$0xff]  ;;  %v859_v34 = vld [vmem:[%s5582_s21 + $0x11f0] sm:$0xff]  ;;  %v1060_v38 = vld [vmem:[%s5582_s21 + $0x1838] sm:$0xff] }
 0x324   : > { %4372 = vmatprep.subr.bf16.mxu1 %v4371_v42  ;;  %v4199_v42 = vpack.c.bf16 %v812_v37, %v806_v36  ;;  %v1045_v35 = vld [vmem:[%s5582_s21 + $0x17c0] sm:$0xff]  ;;  %v1051_v36 = vld [vmem:[%s5582_s21 + $0x17f0] sm:$0xff]  ;;  %v1054_v37 = vld [vmem:[%s5582_s21 + $0x1808] sm:$0xff] }
 0x325   : > { %v1246_v39 = vld [vmem:[%s5582_s21 + $0x1e08] sm:$0xff] }
 0x32a   : > { %4182 = vmatpush1.bf16.xpose.msra.mxu0 %v4181_v51  ;;  %v1016_v51 = vld [vmem:[%s5582_s21 + $0x16d8] sm:$0xff] }
 0x32b   : > { %4374 = vmatpush1.bf16.xpose.msra.mxu1 %v4373_v52  ;;  %4184 = vmatprep.subr.bf16.mxu0 %v4183_v53  ;;  %v4201_v52 = vpack.c.bf16 %v811_v45, %v805_v44  ;;  %v4393_v53 = vpack.c.bf16 %v1003_v47, %v997_v46  ;;  %v4395_v55 = vpack.c.bf16 %v1016_v51, %v1010_v50  ;;  %v1053_v45 = vld [vmem:[%s5582_s21 + $0x1800] sm:$0xff]  ;;  %v1059_v46 = vld [vmem:[%s5582_s21 + $0x1830] sm:$0xff]  ;;  %v1072_v50 = vld [vmem:[%s5582_s21 + $0x1898] sm:$0xff] }
 0x32c   : > { %4376 = vmatprep.subr.bf16.mxu1 %v4375_v54  ;;  %v4203_v54 = vpack.c.bf16 %v824_v49, %v818_v48  ;;  %v1245_v47 = vld [vmem:[%s5582_s21 + $0x1e00] sm:$0xff]  ;;  %v1251_v48 = vld [vmem:[%s5582_s21 + $0x1e30] sm:$0xff]  ;;  %v1066_v49 = vld [vmem:[%s5582_s21 + $0x1868] sm:$0xff]  ;;  %v4413_v51 = vpack.c.bf16 %v1059_v46, %v1053_v45 }
 0x32d   : > { %v5162_v46 = vld [vmem:[#allocation2 + $0x140] sm:$0x1] }
 0x332   : > { %4186 = vmatpush1.bf16.xpose.msra.mxu0 %v4185_v11  ;;  %v1028_v11 = vld [vmem:[%s5582_s21 + $0x1738] sm:$0xff] }
 0x333   : > { %4378 = vmatpush1.bf16.xpose.msra.mxu1 %v4377_v12  ;;  %4188 = vmatprep.subr.bf16.mxu0 %v4187_v0  ;;  %v4205_v12 = vpack.c.bf16 %v823_v58, %v817_v57  ;;  %v4397_v0 = vpack.c.bf16 %v1015_v60, %v1009_v59  ;;  %v4399_v1 = vpack.c.bf16 %v1028_v11, %v1022_v62  ;;  %v5150_v57 = vld [vmem:[#allocation2 + $0x20] sm:$0xff]  ;;  %v5151_v59 = vld [vmem:[#allocation2 + $0x58] sm:$0xff]  ;;  %v1065_v60 = vld [vmem:[%s5582_s21 + $0x1860] sm:$0xff] }
 0x334   : > { %4380 = vmatprep.subr.bf16.mxu1 %v4379_v13  ;;  %v4207_v13 = vpack.c.bf16 %v836_v61, %v830_v10  ;;  %v1071_v10 = vld [vmem:[%s5582_s21 + $0x1890] sm:$0xff]  ;;  %v1257_v61 = vld [vmem:[%s5582_s21 + $0x1e60] sm:$0xff] }
 0x335   : > { %v1263_v62 = vld [vmem:[%s5582_s21 + $0x1e90] sm:$0xff]  ;;  %v5152_v11 = vld [vmem:[#allocation2 + $0x50] sm:$0xff] }
 0x33a   : > { %4190 = vmatpush1.bf16.xpose.msra.mxu0 %v4189_v16  ;;  %v1040_v16 = vld [vmem:[%s5582_s21 + $0x1798] sm:$0xff] }
 0x33b   : > { %4382 = vmatpush1.bf16.xpose.msra.mxu1 %v4381_v17  ;;  %4192 = vmatprep.subr.bf16.mxu0 %v4191_v18  ;;  %v4209_v17 = vpack.c.bf16 %v835_v3, %v829_v2  ;;  %v4401_v18 = vpack.c.bf16 %v1027_v8, %v1021_v6  ;;  %v4403_v20 = vpack.c.bf16 %v1040_v16, %v1034_v15  ;;  %v1270_v2 = vld [vmem:[%s5582_s21 + $0x1ec8] sm:$0xff]  ;;  %v1276_v3 = vld [vmem:[%s5582_s21 + $0x1ef8] sm:$0xff]  ;;  %v1077_v16 = vld [vmem:[%s5582_s21 + $0x18c0] sm:$0xff] }
 0x33c   : > { %4384 = vmatprep.subr.bf16.mxu1 %v4383_v19  ;;  %v4211_v19 = vpack.c.bf16 %v848_v14, %v842_v9  ;;  %v4609_v6 = vpack.c.bf16 %v1263_v62, %v1257_v61  ;;  %v5154_v9 = vld [vmem:[#allocation2 + $0x80] sm:$0xff]  ;;  %v4611_v14 = vpack.c.bf16 %v1276_v3, %v1270_v2  ;;  %v5155_v15 = vld [vmem:[#allocation2 + $0xb8] sm:$0xff]  ;;  %v1305_v62 = vld [vmem:[%s5582_s21 + $0x1fe0] sm:$0xff] }
 0x33d   : > { %v1119_v61 = vld [vmem:[%s5582_s21 + $0x1a10] sm:$0xff] }
 0x342   : > { %4194 = vmatpush1.bf16.xpose.msra.mxu0 %v4193_v28  ;;  %v1052_v28 = vld [vmem:[%s5582_s21 + $0x17f8] sm:$0xff] }
 0x343   : > { %4386 = vmatpush1.bf16.xpose.msra.mxu1 %v4385_v29  ;;  %4196 = vmatprep.subr.bf16.mxu0 %v4195_v30  ;;  %v4213_v29 = vpack.c.bf16 %v847_v22, %v841_v21  ;;  %v4405_v30 = vpack.c.bf16 %v1039_v24, %v1033_v23  ;;  %v4407_v32 = vpack.c.bf16 %v1052_v28, %v1046_v27  ;;  %v1090_v21 = vld [vmem:[%s5582_s21 + $0x1928] sm:$0xff]  ;;  %v1096_v22 = vld [vmem:[%s5582_s21 + $0x1958] sm:$0xff] }
 0x344   : > { %4388 = vmatprep.subr.bf16.mxu1 %v4387_v31  ;;  %v4215_v31 = vpack.c.bf16 %v860_v26, %v854_v25  ;;  %v5157_v23 = vld [vmem:[#allocation2 + $0xe8] sm:$0xff]  ;;  %v1282_v25 = vld [vmem:[%s5582_s21 + $0x1f28] sm:$0xff]  ;;  %v4423_v28 = vpack.c.bf16 %v1096_v22, %v1090_v21 }
 0x345   : > { %v1288_v26 = vld [vmem:[%s5582_s21 + $0x1f58] sm:$0xff] }
 0x34a   : > { %4198 = vmatpush1.bf16.xpose.msra.mxu0 %v4197_v40  ;;  %v1252_v40 = vld [vmem:[%s5582_s21 + $0x1e38] sm:$0xff] }
 0x34b   : > { %4390 = vmatpush1.bf16.xpose.msra.mxu1 %v4389_v41  ;;  %4200 = vmatprep.subr.bf16.mxu0 %v4199_v42  ;;  %v4217_v41 = vpack.c.bf16 %v859_v34, %v853_v33  ;;  %v4409_v42 = vpack.c.bf16 %v1051_v36, %v1045_v35  ;;  %v4603_v44 = vpack.c.bf16 %v1252_v40, %v1246_v39  ;;  %v1095_v33 = vld [vmem:[%s5582_s21 + $0x1950] sm:$0xff]  ;;  %v1281_v34 = vld [vmem:[%s5582_s21 + $0x1f20] sm:$0xff]  ;;  %v1102_v36 = vld [vmem:[%s5582_s21 + $0x1988] sm:$0xff] }
 0x34c   : > { %4392 = vmatprep.subr.bf16.mxu1 %v4391_v43  ;;  %v4411_v43 = vpack.c.bf16 %v1060_v38, %v1054_v37  ;;  %v1287_v35 = vld [vmem:[%s5582_s21 + $0x1f50] sm:$0xff]  ;;  %v1108_v37 = vld [vmem:[%s5582_s21 + $0x19b8] sm:$0xff]  ;;  %v5160_v38 = vld [vmem:[#allocation2 + $0x110] sm:$0xff] }
 0x34d   : > { %v1294_v39 = vld [vmem:[%s5582_s21 + $0x1f88] sm:$0xff]  ;;  %v1300_v40 = vld [vmem:[%s5582_s21 + $0x1fb8] sm:$0xff] }
 0x34e   : > { %v4619_v45 = vpack.c.bf16 %v1300_v40, %v1294_v39  ;;  %v1341_v39 = vld [vmem:[%s5582_s21 + $0x2100] sm:$0xff]  ;;  %v1347_v40 = vld [vmem:[%s5582_s21 + $0x2130] sm:$0xff] }
 0x352   : > { %4202 = vmatpush1.bf16.xpose.msra.mxu0 %v4201_v52  ;;  %v1258_v52 = vld [vmem:[%s5582_s21 + $0x1e68] sm:$0xff] }
 0x353   : > { %4394 = vmatpush1.bf16.xpose.msra.mxu1 %v4393_v53  ;;  %4204 = vmatprep.subr.bf16.mxu0 %v4203_v54  ;;  %v1264_v53 = vld [vmem:[%s5582_s21 + $0x1e98] sm:$0xff]  ;;  %v4605_v54 = vpack.c.bf16 %v1251_v48, %v1245_v47  ;;  %v1101_v47 = vld [vmem:[%s5582_s21 + $0x1980] sm:$0xff]  ;;  %v1107_v48 = vld [vmem:[%s5582_s21 + $0x19b0] sm:$0xff] }
 0x354   : > { %4396 = vmatprep.subr.bf16.mxu1 %v4395_v55  ;;  %v4415_v55 = vpack.c.bf16 %v1072_v50, %v1066_v49  ;;  %v4607_v58 = vpack.c.bf16 %v1264_v53, %v1258_v52  ;;  %v1293_v49 = vld [vmem:[%s5582_s21 + $0x1f80] sm:$0xff]  ;;  %v1299_v50 = vld [vmem:[%s5582_s21 + $0x1fb0] sm:$0xff]  ;;  %v1120_v52 = vld [vmem:[%s5582_s21 + $0x1a18] sm:$0xff] }
 0x355   : > { %v5163_v53 = vld [vmem:[#allocation2 + $0x8] sm:$0xff] }
 0x35a   : > { %4206 = vmatpush1.bf16.xpose.msra.mxu0 %v4205_v12  ;;  %v1078_v12 = vld [vmem:[%s5582_s21 + $0x18c8] sm:$0xff] }
 0x35b   : > { %4398 = vmatpush1.bf16.xpose.msra.mxu1 %v4397_v0  ;;  %4208 = vmatprep.subr.bf16.mxu0 %v4207_v13  ;;  %v1084_v0 = vld [vmem:[%s5582_s21 + $0x18f8] sm:$0xff] }
 0x35c   : > { %4400 = vmatprep.subr.bf16.mxu1 %v4399_v1  ;;  %v5153_v13 = vld [vmem:[#allocation2 + $0x88] sm:$0xff]  ;;  %v4417_v1 = vpack.c.bf16 %v1071_v10, %v1065_v60  ;;  %v4419_v8 = vpack.c.bf16 %v1084_v0, %v1078_v12  ;;  %v1113_v10 = vld [vmem:[%s5582_s21 + $0x19e0] sm:$0xff]  ;;  %v1126_v12 = vld [vmem:[%s5582_s21 + $0x1a48] sm:$0xff] }
 0x35d   : > { %v1132_v0 = vld [vmem:[%s5582_s21 + $0x1a78] sm:$0xff]  ;;  %v4433_v2 = vpack.c.bf16 %v1119_v61, %v1113_v10  ;;  %v1173_v61 = vld [vmem:[%s5582_s21 + $0x1bc0] sm:$0xff] }
 0x362   : > { %4210 = vmatpush1.bf16.xpose.msra.mxu0 %v4209_v17  ;;  %v1083_v17 = vld [vmem:[%s5582_s21 + $0x18f0] sm:$0xff] }
 0x363   : > { %4402 = vmatpush1.bf16.xpose.msra.mxu1 %v4401_v18  ;;  %4212 = vmatprep.subr.bf16.mxu0 %v4211_v19  ;;  %v1269_v18 = vld [vmem:[%s5582_s21 + $0x1ec0] sm:$0xff]  ;;  %v1275_v19 = vld [vmem:[%s5582_s21 + $0x1ef0] sm:$0xff]  ;;  %v4421_v24 = vpack.c.bf16 %v1083_v17, %v1077_v16  ;;  %v1138_v17 = vld [vmem:[%s5582_s21 + $0x1aa8] sm:$0xff] }
 0x364   : > { %4404 = vmatprep.subr.bf16.mxu1 %v4403_v20  ;;  %v5156_v20 = vld [vmem:[#allocation2 + $0xb0] sm:$0xff]  ;;  %v4613_v27 = vpack.c.bf16 %v1275_v19, %v1269_v18  ;;  %v1323_v16 = vld [vmem:[%s5582_s21 + $0x2070] sm:$0xff]  ;;  %v1144_v18 = vld [vmem:[%s5582_s21 + $0x1ad8] sm:$0xff] }
 0x365   : > { %v1330_v19 = vld [vmem:[%s5582_s21 + $0x20a8] sm:$0xff] }
 0x36a   : > { %4214 = vmatpush1.bf16.xpose.msra.mxu0 %v4213_v29  ;;  %v5158_v29 = vld [vmem:[#allocation2 + $0xe0] sm:$0xff] }
 0x36b   : > { %4406 = vmatpush1.bf16.xpose.msra.mxu1 %v4405_v30  ;;  %4216 = vmatprep.subr.bf16.mxu0 %v4215_v31  ;;  %v4615_v30 = vpack.c.bf16 %v1288_v26, %v1282_v25  ;;  %v5159_v31 = vld [vmem:[#allocation2 + $0x118] sm:$0xff]  ;;  %v1137_v25 = vld [vmem:[%s5582_s21 + $0x1aa0] sm:$0xff]  ;;  %v1143_v26 = vld [vmem:[%s5582_s21 + $0x1ad0] sm:$0xff] }
 0x36c   : > { %4408 = vmatprep.subr.bf16.mxu1 %v4407_v32  ;;  %v1089_v32 = vld [vmem:[%s5582_s21 + $0x1920] sm:$0xff] }
 0x372   : > { %4218 = vmatpush1.bf16.xpose.msra.mxu0 %v4217_v41  ;;  %v5161_v41 = vld [vmem:[#allocation2 + $0x148] sm:$0x1] }
 0x373   : > { %4410 = vmatpush1.bf16.xpose.msra.mxu1 %v4409_v42  ;;  %4412 = vmatprep.subr.bf16.mxu0 %v4411_v43  ;;  %v4425_v42 = vpack.c.bf16 %v1095_v33, %v1089_v32  ;;  %v4617_v43 = vpack.c.bf16 %v1287_v35, %v1281_v34  ;;  %v1348_v32 = vld [vmem:[%s5582_s21 + $0x2138] sm:$0xff]  ;;  %v4441_v33 = vpack.c.bf16 %v1143_v26, %v1137_v25  ;;  %v1197_v26 = vld [vmem:[%s5582_s21 + $0x1c80] sm:$0xff] }
 0x374   : > { %4604 = vmatprep.subr.bf16.mxu1 %v4603_v44  ;;  %v4427_v44 = vpack.c.bf16 %v1108_v37, %v1102_v36  ;;  %v1149_v37 = vld [vmem:[%s5582_s21 + $0x1b00] sm:$0xff] }
 0x379   : > { %2422 = vmatmul.mubr.f32.vlgmr.msra.gmra.mrb[14].mxu0 %v5150_v57 }
 0x37a   : > { %2743 = vmatmul.mubr.f32.vlgmr.msra.gmra.mrb[14].mxu1 %v5150_v57  ;;  %4414 = vmatpush1.bf16.xpose.msra.mxu0 %v4413_v51  ;;  %v1114_v51 = vld [vmem:[%s5582_s21 + $0x19e8] sm:$0xff]  ;;  %v4429_v57 = vpack.c.bf16 %v1107_v48, %v1101_v47 }
 0x37b   : > { %4606 = vmatpush1.bf16.xpose.msra.mxu1 %v4605_v54  ;;  %2427 = vmatprep.mubr.f32.mxu0 %v5151_v59  ;;  %v1306_v54 = vld [vmem:[%s5582_s21 + $0x1fe8] sm:$0xff] }
 0x37c   : > { %2748 = vmatprep.mubr.f32.mxu1 %v5151_v59  ;;  %4416 = vmatprep.subr.bf16.mxu0 %v4415_v55  ;;  %v1312_v55 = vld [vmem:[%s5582_s21 + $0x2018] sm:$0xff]  ;;  %v4431_v59 = vpack.c.bf16 %v1120_v52, %v1114_v51  ;;  %v1353_v51 = vld [vmem:[%s5582_s21 + $0x2160] sm:$0xff]  ;;  %v1359_v52 = vld [vmem:[%s5582_s21 + $0x2190] sm:$0xff] }
 0x37d   : > { %2428 = vmatmul.mubr.f32.gmra.mrb[16].mxu0 %v5152_v11  ;;  %4608 = vmatprep.subr.bf16.mxu1 %v4607_v58  ;;  %v4621_v58 = vpack.c.bf16 %v1299_v50, %v1293_v49  ;;  %v4623_v60 = vpack.c.bf16 %v1312_v55, %v1306_v54  ;;  %v1161_v49 = vld [vmem:[%s5582_s21 + $0x1b60] sm:$0xff]  ;;  %v1167_v50 = vld [vmem:[%s5582_s21 + $0x1b90] sm:$0xff]  ;;  %v1180_v54 = vld [vmem:[%s5582_s21 + $0x1bf8] sm:$0xff] }
 0x37e   : > { %2749 = vmatmul.mubr.f32.gmra.mrb[16].mxu1 %v5152_v11  ;;  %2433 = vmatprep.mubr.f32.mxu0 %v5153_v13  ;;  %v1311_v11 = vld [vmem:[%s5582_s21 + $0x2010] sm:$0xff]  ;;  %v1366_v55 = vld [vmem:[%s5582_s21 + $0x21c8] sm:$0xff] }
 0x37f   : > { %2754 = vmatprep.mubr.f32.mxu1 %v5153_v13  ;;  %v1318_v13 = vld [vmem:[%s5582_s21 + $0x2048] sm:$0xff]  ;;  %v4625_v3 = vpack.c.bf16 %v1311_v11, %v1305_v62  ;;  %v1179_v62 = vld [vmem:[%s5582_s21 + $0x1bf0] sm:$0xff]  ;;  %v1365_v11 = vld [vmem:[%s5582_s21 + $0x21c0] sm:$0xff] }
 0x381   : > { %2434 = vmatmul.mubr.f32.gmra.mrb[18].mxu0 %v5154_v9 }
 0x382   : > { %2755 = vmatmul.mubr.f32.gmra.mrb[18].mxu1 %v5154_v9  ;;  %4418 = vmatpush1.bf16.xpose.msra.mxu0 %v4417_v1  ;;  %v1324_v1 = vld [vmem:[%s5582_s21 + $0x2078] sm:$0xff]  ;;  %v1125_v9 = vld [vmem:[%s5582_s21 + $0x1a40] sm:$0xff] }
 0x383   : > { %4610 = vmatpush1.bf16.xpose.msra.mxu1 %v4609_v6  ;;  %2439 = vmatprep.mubr.f32.mxu0 %v5155_v15  ;;  %v4435_v6 = vpack.c.bf16 %v1132_v0, %v1126_v12  ;;  %v1371_v12 = vld [vmem:[%s5582_s21 + $0x21f0] sm:$0xff]  ;;  %v1186_v0 = vld [vmem:[%s5582_s21 + $0x1c28] sm:$0xff] }
 0x384   : > { %2760 = vmatprep.mubr.f32.mxu1 %v5155_v15  ;;  %4420 = vmatprep.subr.bf16.mxu0 %v4419_v8  ;;  %v4627_v8 = vpack.c.bf16 %v1324_v1, %v1318_v13  ;;  %v1317_v15 = vld [vmem:[%s5582_s21 + $0x2040] sm:$0xff]  ;;  %v1192_v13 = vld [vmem:[%s5582_s21 + $0x1c58] sm:$0xff]  ;;  %v1378_v1 = vld [vmem:[%s5582_s21 + $0x2228] sm:$0xff] }
 0x385   : > { %2440 = vmatmul.mubr.f32.gmra.mrb[20].mxu0 %v5156_v20  ;;  %4612 = vmatprep.subr.bf16.mxu1 %v4611_v14  ;;  %v1131_v14 = vld [vmem:[%s5582_s21 + $0x1a70] sm:$0xff]  ;;  %v4629_v22 = vpack.c.bf16 %v1323_v16, %v1317_v15  ;;  %v1377_v16 = vld [vmem:[%s5582_s21 + $0x2220] sm:$0xff] }
 0x386   : > { %2761 = vmatmul.mubr.f32.gmra.mrb[20].mxu1 %v5156_v20  ;;  %2445 = vmatprep.mubr.f32.mxu0 %v5157_v23  ;;  %v1336_v20 = vld [vmem:[%s5582_s21 + $0x20d8] sm:$0xff]  ;;  %v4437_v21 = vpack.c.bf16 %v1131_v14, %v1125_v9  ;;  %v1185_v14 = vld [vmem:[%s5582_s21 + $0x1c20] sm:$0xff]  ;;  %v1191_v15 = vld [vmem:[%s5582_s21 + $0x1c50] sm:$0xff] }
 0x387   : > { %2766 = vmatprep.mubr.f32.mxu1 %v5157_v23  ;;  %v4439_v23 = vpack.c.bf16 %v1144_v18, %v1138_v17  ;;  %v1383_v17 = vld [vmem:[%s5582_s21 + $0x2250] sm:$0xff]  ;;  %v1198_v18 = vld [vmem:[%s5582_s21 + $0x1c88] sm:$0xff] }
 0x389   : > { %2446 = vmatmul.mubr.f32.gmra.mrb[22].mxu0 %v5158_v29 }
 0x38a   : > { %2767 = vmatmul.mubr.f32.gmra.mrb[22].mxu1 %v5158_v29  ;;  %4422 = vmatpush1.bf16.xpose.msra.mxu0 %v4421_v24  ;;  %v4631_v24 = vpack.c.bf16 %v1336_v20, %v1330_v19  ;;  %v1150_v29 = vld [vmem:[%s5582_s21 + $0x1b08] sm:$0xff]  ;;  %v1204_v19 = vld [vmem:[%s5582_s21 + $0x1cb8] sm:$0xff] }
 0x38b   : > { %4614 = vmatpush1.bf16.xpose.msra.mxu1 %v4613_v27  ;;  %2451 = vmatprep.mubr.f32.mxu0 %v5159_v31  ;;  %v1329_v27 = vld [vmem:[%s5582_s21 + $0x20a0] sm:$0xff]  ;;  %v1390_v20 = vld [vmem:[%s5582_s21 + $0x2288] sm:$0xff] }
 0x38c   : > { %2772 = vmatprep.mubr.f32.mxu1 %v5159_v31  ;;  %4424 = vmatprep.subr.bf16.mxu0 %v4423_v28  ;;  %v1335_v28 = vld [vmem:[%s5582_s21 + $0x20d0] sm:$0xff]  ;;  %v1342_v31 = vld [vmem:[%s5582_s21 + $0x2108] sm:$0xff] }
 0x38d   : > { %2452 = vmatmul.mubr.f32.gmra.mrb[24].mxu0 %v5160_v38  ;;  %4616 = vmatprep.subr.bf16.mxu1 %v4615_v30  ;;  %v1156_v30 = vld [vmem:[%s5582_s21 + $0x1b38] sm:$0xff]  ;;  %v4633_v34 = vpack.c.bf16 %v1335_v28, %v1329_v27  ;;  %v4635_v36 = vpack.c.bf16 %v1348_v32, %v1342_v31  ;;  %v1203_v27 = vld [vmem:[%s5582_s21 + $0x1cb0] sm:$0xff]  ;;  %v1389_v28 = vld [vmem:[%s5582_s21 + $0x2280] sm:$0xff] }
 0x38e   : > { %2773 = vmatmul.mubr.f32.gmra.mrb[24].mxu1 %v5160_v38  ;;  %2457 = vmatprep.mubr.f32.mxu0 %v5161_v41  ;;  %v4443_v35 = vpack.c.bf16 %v1156_v30, %v1150_v29  ;;  %v1155_v38 = vld [vmem:[%s5582_s21 + $0x1b30] sm:$0xff]  ;;  %v1210_v30 = vld [vmem:[%s5582_s21 + $0x1ce8] sm:$0xff]  ;;  %v1216_v31 = vld [vmem:[%s5582_s21 + $0x1d18] sm:$0xff] }
 0x38f   : > { %2778 = vmatprep.mubr.f32.mxu1 %v5161_v41  ;;  %v1162_v41 = vld [vmem:[%s5582_s21 + $0x1b68] sm:$0xff]  ;;  %v1395_v29 = vld [vmem:[%s5582_s21 + $0x22b0] sm:$0xff] }
 0x390   : > { %v1402_v32 = vld [vmem:[%s5582_s21 + $0x22e8] sm:$0xff] }
 0x391   : > { %2458 = vmatmul.mubr.f32.gmra.mrb[26].mxu0 %v5162_v46 }
 0x392   : > { %2779 = vmatmul.mubr.f32.gmra.mrb[26].mxu1 %v5162_v46  ;;  %4426 = vmatpush1.bf16.xpose.msra.mxu0 %v4425_v42  ;;  %v1168_v42 = vld [vmem:[%s5582_s21 + $0x1b98] sm:$0xff]  ;;  %v4637_v46 = vpack.c.bf16 %v1347_v40, %v1341_v39  ;;  %v1215_v39 = vld [vmem:[%s5582_s21 + $0x1d10] sm:$0xff]  ;;  %v1401_v40 = vld [vmem:[%s5582_s21 + $0x22e0] sm:$0xff] }
 0x393   : > { %4618 = vmatpush1.bf16.xpose.msra.mxu1 %v4617_v43  ;;  %4428 = vmatprep.subr.bf16.mxu0 %v4427_v44  ;;  %v1354_v43 = vld [vmem:[%s5582_s21 + $0x2168] sm:$0xff]  ;;  %v1360_v44 = vld [vmem:[%s5582_s21 + $0x2198] sm:$0xff]  ;;  %v4447_v47 = vpack.c.bf16 %v1168_v42, %v1162_v41  ;;  %v1407_v41 = vld [vmem:[%s5582_s21 + $0x2310] sm:$0xff] }
 0x394   : > { %4620 = vmatprep.subr.bf16.mxu1 %v4619_v45  ;;  %2849 = vmatprep.mubr.f32.mxu0 %v5163_v53  ;;  %v4445_v45 = vpack.c.bf16 %v1155_v38, %v1149_v37  ;;  %v4639_v48 = vpack.c.bf16 %v1360_v44, %v1354_v43  ;;  %v1209_v38 = vld [vmem:[%s5582_s21 + $0x1ce0] sm:$0xff]  ;;  %v1222_v42 = vld [vmem:[%s5582_s21 + $0x1d48] sm:$0xff]  ;;  %v1228_v43 = vld [vmem:[%s5582_s21 + $0x1d78] sm:$0xff] }
 0x395   : > { %3170 = vmatprep.mubr.f32.mxu1 %v5163_v53  ;;  %v1174_v53 = vld [vmem:[%s5582_s21 + $0x1bc8] sm:$0xff] }
 0x396   : > { %v1414_v44 = vld [vmem:[%s5582_s21 + $0x2348] sm:$0xff] }
 0x39a   : > { %4430 = vmatpush1.bf16.xpose.msra.mxu0 %v4429_v57  ;;  %v1372_v57 = vld [vmem:[%s5582_s21 + $0x21f8] sm:$0xff] }
 0x39b   : > { %4622 = vmatpush1.bf16.xpose.msra.mxu1 %v4621_v58  ;;  %4432 = vmatprep.subr.bf16.mxu0 %v4431_v59  ;;  %v4449_v58 = vpack.c.bf16 %v1167_v50, %v1161_v49  ;;  %v4641_v59 = vpack.c.bf16 %v1359_v52, %v1353_v51  ;;  %v4643_v10 = vpack.c.bf16 %v1372_v57, %v1366_v55  ;;  %v1221_v50 = vld [vmem:[%s5582_s21 + $0x1d40] sm:$0xff]  ;;  %v1227_v51 = vld [vmem:[%s5582_s21 + $0x1d70] sm:$0xff]  ;;  %v1240_v55 = vld [vmem:[%s5582_s21 + $0x1dd8] sm:$0xff] }
 0x39c   : > { %4624 = vmatprep.subr.bf16.mxu1 %v4623_v60  ;;  %v4451_v60 = vpack.c.bf16 %v1180_v54, %v1174_v53  ;;  %v1413_v52 = vld [vmem:[%s5582_s21 + $0x2340] sm:$0xff]  ;;  %v1419_v53 = vld [vmem:[%s5582_s21 + $0x2370] sm:$0xff]  ;;  %v1234_v54 = vld [vmem:[%s5582_s21 + $0x1da8] sm:$0xff] }
 0x39d   : > { %v1426_v57 = vld [vmem:[%s5582_s21 + $0x23a8] sm:$0xff] }
 0x3a2   : > { %4434 = vmatpush1.bf16.xpose.msra.mxu0 %v4433_v2  ;;  %v1384_v2 = vld [vmem:[%s5582_s21 + $0x2258] sm:$0xff] }
 0x3a3   : > { %4626 = vmatpush1.bf16.xpose.msra.mxu1 %v4625_v3  ;;  %4436 = vmatprep.subr.bf16.mxu0 %v4435_v6  ;;  %v4453_v3 = vpack.c.bf16 %v1179_v62, %v1173_v61  ;;  %v4645_v6 = vpack.c.bf16 %v1371_v12, %v1365_v11  ;;  %v4647_v9 = vpack.c.bf16 %v1384_v2, %v1378_v1  ;;  %v1233_v62 = vld [vmem:[%s5582_s21 + $0x1da0] sm:$0xff]  ;;  %v1239_v11 = vld [vmem:[%s5582_s21 + $0x1dd0] sm:$0xff]  ;;  %v1062_v1 = vld [vmem:[%s5582_s21 + $0x1848] sm:$0xff] }
 0x3a4   : > { %4628 = vmatprep.subr.bf16.mxu1 %v4627_v8  ;;  %v4455_v8 = vpack.c.bf16 %v1192_v13, %v1186_v0  ;;  %v1425_v12 = vld [vmem:[%s5582_s21 + $0x23a0] sm:$0xff]  ;;  %v1431_v0 = vld [vmem:[%s5582_s21 + $0x23d0] sm:$0xff]  ;;  %v1056_v13 = vld [vmem:[%s5582_s21 + $0x1818] sm:$0xff] }
 0x3a5   : > { %v1248_v2 = vld [vmem:[%s5582_s21 + $0x1e18] sm:$0xff] }
 0x3aa   : > { %4438 = vmatpush1.bf16.xpose.msra.mxu0 %v4437_v21  ;;  %v1396_v21 = vld [vmem:[%s5582_s21 + $0x22b8] sm:$0xff] }
 0x3ab   : > { %4630 = vmatpush1.bf16.xpose.msra.mxu1 %v4629_v22  ;;  %4440 = vmatprep.subr.bf16.mxu0 %v4439_v23  ;;  %v4457_v22 = vpack.c.bf16 %v1191_v15, %v1185_v14  ;;  %v4649_v23 = vpack.c.bf16 %v1383_v17, %v1377_v16  ;;  %v4651_v25 = vpack.c.bf16 %v1396_v21, %v1390_v20  ;;  %v1055_v15 = vld [vmem:[%s5582_s21 + $0x1810] sm:$0xff]  ;;  %v1061_v16 = vld [vmem:[%s5582_s21 + $0x1840] sm:$0xff]  ;;  %v1074_v20 = vld [vmem:[%s5582_s21 + $0x18a8] sm:$0xff] }
 0x3ac   : > { %4632 = vmatprep.subr.bf16.mxu1 %v4631_v24  ;;  %v4459_v24 = vpack.c.bf16 %v1204_v19, %v1198_v18  ;;  %v1247_v17 = vld [vmem:[%s5582_s21 + $0x1e10] sm:$0xff]  ;;  %v1253_v18 = vld [vmem:[%s5582_s21 + $0x1e40] sm:$0xff]  ;;  %v1068_v19 = vld [vmem:[%s5582_s21 + $0x1878] sm:$0xff] }
 0x3ad   : > { %v1260_v21 = vld [vmem:[%s5582_s21 + $0x1e78] sm:$0xff] }
 0x3b2   : > { %4442 = vmatpush1.bf16.xpose.msra.mxu0 %v4441_v33  ;;  %v1408_v33 = vld [vmem:[%s5582_s21 + $0x2318] sm:$0xff] }
 0x3b3   : > { %4634 = vmatpush1.bf16.xpose.msra.mxu1 %v4633_v34  ;;  %4444 = vmatprep.subr.bf16.mxu0 %v4443_v35  ;;  %v4461_v34 = vpack.c.bf16 %v1203_v27, %v1197_v26  ;;  %v4653_v35 = vpack.c.bf16 %v1395_v29, %v1389_v28  ;;  %v4655_v37 = vpack.c.bf16 %v1408_v33, %v1402_v32  ;;  %v5164_v27 = vld [vmem:[#allocation2] sm:$0xff]  ;;  %v1073_v29 = vld [vmem:[%s5582_s21 + $0x18a0] sm:$0xff]  ;;  %v1080_v32 = vld [vmem:[%s5582_s21 + $0x18d8] sm:$0xff] }
 0x3b4   : > { %4636 = vmatprep.subr.bf16.mxu1 %v4635_v36  ;;  %v4463_v36 = vpack.c.bf16 %v1216_v31, %v1210_v30  ;;  %v1067_v28 = vld [vmem:[%s5582_s21 + $0x1870] sm:$0xff]  ;;  %v1265_v31 = vld [vmem:[%s5582_s21 + $0x1ea0] sm:$0xff]  ;;  %v1086_v33 = vld [vmem:[%s5582_s21 + $0x1908] sm:$0xff] }
 0x3b5   : > { %v1259_v30 = vld [vmem:[%s5582_s21 + $0x1e70] sm:$0xff] }
 0x3ba   : > { %4446 = vmatpush1.bf16.xpose.msra.mxu0 %v4445_v45  ;;  %v1420_v45 = vld [vmem:[%s5582_s21 + $0x2378] sm:$0xff] }
 0x3bb   : > { %4638 = vmatpush1.bf16.xpose.msra.mxu1 %v4637_v46  ;;  %4448 = vmatprep.subr.bf16.mxu0 %v4447_v47  ;;  %v4465_v46 = vpack.c.bf16 %v1215_v39, %v1209_v38  ;;  %v4657_v47 = vpack.c.bf16 %v1407_v41, %v1401_v40  ;;  %v4659_v49 = vpack.c.bf16 %v1420_v45, %v1414_v44  ;;  %v5167_v39 = vld [vmem:[#allocation2 + $0x68] sm:$0xff]  ;;  %v1079_v44 = vld [vmem:[%s5582_s21 + $0x18d0] sm:$0xff]  ;;  %v1085_v45 = vld [vmem:[%s5582_s21 + $0x1900] sm:$0xff] }
 0x3bc   : > { %4640 = vmatprep.subr.bf16.mxu1 %v4639_v48  ;;  %v4467_v48 = vpack.c.bf16 %v1228_v43, %v1222_v42  ;;  %v4481_v38 = vpack.c.bf16 %v1073_v29, %v1067_v28  ;;  %v4673_v40 = vpack.c.bf16 %v1265_v31, %v1259_v30  ;;  %v4483_v41 = vpack.c.bf16 %v1086_v33, %v1080_v32  ;;  %v5168_v43 = vld [vmem:[#allocation2 + $0x60] sm:$0xff]  ;;  %v1121_v31 = vld [vmem:[%s5582_s21 + $0x1a20] sm:$0xff] }
 0x3bd   : > { %v1115_v30 = vld [vmem:[%s5582_s21 + $0x19f0] sm:$0xff]  ;;  %v1313_v33 = vld [vmem:[%s5582_s21 + $0x2020] sm:$0xff] }
 0x3be   : > { %v1307_v32 = vld [vmem:[%s5582_s21 + $0x1ff0] sm:$0xff] }
 0x3c2   : > { %4450 = vmatpush1.bf16.xpose.msra.mxu0 %v4449_v58  ;;  %v1432_v58 = vld [vmem:[%s5582_s21 + $0x23d8] sm:$0xff] }
 0x3c3   : > { %4642 = vmatpush1.bf16.xpose.msra.mxu1 %v4641_v59  ;;  %4452 = vmatprep.subr.bf16.mxu0 %v4451_v60  ;;  %v4469_v59 = vpack.c.bf16 %v1227_v51, %v1221_v50  ;;  %v4661_v60 = vpack.c.bf16 %v1419_v53, %v1413_v52  ;;  %v4663_v61 = vpack.c.bf16 %v1432_v58, %v1426_v57  ;;  %v5169_v50 = vld [vmem:[#allocation2 + $0x98] sm:$0xff]  ;;  %v1284_v51 = vld [vmem:[%s5582_s21 + $0x1f38] sm:$0xff]  ;;  %v5170_v53 = vld [vmem:[#allocation2 + $0x90] sm:$0xff] }
 0x3c4   : > { %4644 = vmatprep.subr.bf16.mxu1 %v4643_v10  ;;  %v4471_v10 = vpack.c.bf16 %v1240_v55, %v1234_v54  ;;  %v1290_v52 = vld [vmem:[%s5582_s21 + $0x1f68] sm:$0xff]  ;;  %v4485_v54 = vpack.c.bf16 %v1085_v45, %v1079_v44  ;;  %v5171_v55 = vld [vmem:[#allocation2 + $0xc8] sm:$0xff]  ;;  %v1319_v44 = vld [vmem:[%s5582_s21 + $0x2050] sm:$0xff] }
 0x3c5   : > { %v1325_v45 = vld [vmem:[%s5582_s21 + $0x2080] sm:$0xff] }
 0x3ca   : > { %4454 = vmatpush1.bf16.xpose.msra.mxu0 %v4453_v3  ;;  %v1254_v3 = vld [vmem:[%s5582_s21 + $0x1e48] sm:$0xff] }
 0x3cb   : > { %4646 = vmatpush1.bf16.xpose.msra.mxu1 %v4645_v6  ;;  %4456 = vmatprep.subr.bf16.mxu0 %v4455_v8  ;;  %v4473_v6 = vpack.c.bf16 %v1239_v11, %v1233_v62  ;;  %v4665_v8 = vpack.c.bf16 %v1431_v0, %v1425_v12  ;;  %v4667_v14 = vpack.c.bf16 %v1254_v3, %v1248_v2  ;;  %v1283_v62 = vld [vmem:[%s5582_s21 + $0x1f30] sm:$0xff]  ;;  %v1289_v11 = vld [vmem:[%s5582_s21 + $0x1f60] sm:$0xff]  ;;  %v1104_v12 = vld [vmem:[%s5582_s21 + $0x1998] sm:$0xff] }
 0x3cc   : > { %4648 = vmatprep.subr.bf16.mxu1 %v4647_v9  ;;  %v4475_v9 = vpack.c.bf16 %v1062_v1, %v1056_v13  ;;  %v1110_v0 = vld [vmem:[%s5582_s21 + $0x19c8] sm:$0xff]  ;;  %v1296_v1 = vld [vmem:[%s5582_s21 + $0x1f98] sm:$0xff]  ;;  %v5174_v3 = vld [vmem:[#allocation2 + $0xf0] sm:$0xff] }
 0x3cd   : > { %v5173_v13 = vld [vmem:[#allocation2 + $0xf8] sm:$0xff] }
 0x3ce   : > { %v1302_v2 = vld [vmem:[%s5582_s21 + $0x1fc8] sm:$0xff] }
 0x3d2   : > { %4458 = vmatpush1.bf16.xpose.msra.mxu0 %v4457_v22  ;;  %v1266_v22 = vld [vmem:[%s5582_s21 + $0x1ea8] sm:$0xff] }
 0x3d3   : > { %4650 = vmatpush1.bf16.xpose.msra.mxu1 %v4649_v23  ;;  %4460 = vmatprep.subr.bf16.mxu0 %v4459_v24  ;;  %v4477_v23 = vpack.c.bf16 %v1061_v16, %v1055_v15  ;;  %v4669_v24 = vpack.c.bf16 %v1253_v18, %v1247_v17  ;;  %v4671_v26 = vpack.c.bf16 %v1266_v22, %v1260_v21  ;;  %v5176_v16 = vld [vmem:[#allocation2 + $0x120] sm:$0x1]  ;;  %v1109_v18 = vld [vmem:[%s5582_s21 + $0x19c0] sm:$0xff]  ;;  %v1116_v21 = vld [vmem:[%s5582_s21 + $0x19f8] sm:$0xff] }
 0x3d4   : > { %4652 = vmatprep.subr.bf16.mxu1 %v4651_v25  ;;  %v4479_v25 = vpack.c.bf16 %v1074_v20, %v1068_v19  ;;  %v4683_v15 = vpack.c.bf16 %v1302_v2, %v1296_v1  ;;  %v1103_v17 = vld [vmem:[%s5582_s21 + $0x1990] sm:$0xff]  ;;  %v1301_v20 = vld [vmem:[%s5582_s21 + $0x1fc0] sm:$0xff]  ;;  %v1122_v22 = vld [vmem:[%s5582_s21 + $0x1a28] sm:$0xff] }
 0x3d5   : > { %v1295_v19 = vld [vmem:[%s5582_s21 + $0x1f90] sm:$0xff]  ;;  %v4495_v28 = vpack.c.bf16 %v1122_v22, %v1116_v21  ;;  %v1157_v1 = vld [vmem:[%s5582_s21 + $0x1b40] sm:$0xff] }
 0x3d6   : > { %v1343_v2 = vld [vmem:[%s5582_s21 + $0x2110] sm:$0xff]  ;;  %v1361_v22 = vld [vmem:[%s5582_s21 + $0x21a0] sm:$0xff] }
 0x3d7   : > { %v1355_v21 = vld [vmem:[%s5582_s21 + $0x2170] sm:$0xff] }
 0x3da   : > { %4462 = vmatpush1.bf16.xpose.msra.mxu0 %v4461_v34  ;;  %v5165_v34 = vld [vmem:[#allocation2 + $0x38] sm:$0xff] }
 0x3db   : > { %4654 = vmatpush1.bf16.xpose.msra.mxu1 %v4653_v35  ;;  %4464 = vmatprep.subr.bf16.mxu0 %v4463_v36  ;;  %v1272_v35 = vld [vmem:[%s5582_s21 + $0x1ed8] sm:$0xff]  ;;  %v1278_v36 = vld [vmem:[%s5582_s21 + $0x1f08] sm:$0xff] }
 0x3dc   : > { %4656 = vmatprep.subr.bf16.mxu1 %v4655_v37  ;;  %v5166_v37 = vld [vmem:[#allocation2 + $0x30] sm:$0xff]  ;;  %v4675_v42 = vpack.c.bf16 %v1278_v36, %v1272_v35  ;;  %v1134_v35 = vld [vmem:[%s5582_s21 + $0x1a88] sm:$0xff]  ;;  %v1320_v36 = vld [vmem:[%s5582_s21 + $0x2058] sm:$0xff] }
 0x3e2   : > { %4466 = vmatpush1.bf16.xpose.msra.mxu0 %v4465_v46  ;;  %v1271_v46 = vld [vmem:[%s5582_s21 + $0x1ed0] sm:$0xff] }
 0x3e3   : > { %4658 = vmatpush1.bf16.xpose.msra.mxu1 %v4657_v47  ;;  %4468 = vmatprep.subr.bf16.mxu0 %v4467_v48  ;;  %v1277_v47 = vld [vmem:[%s5582_s21 + $0x1f00] sm:$0xff]  ;;  %v1092_v48 = vld [vmem:[%s5582_s21 + $0x1938] sm:$0xff] }
 0x3e4   : > { %4660 = vmatprep.subr.bf16.mxu1 %v4659_v49  ;;  %v1098_v49 = vld [vmem:[%s5582_s21 + $0x1968] sm:$0xff]  ;;  %v4677_v57 = vpack.c.bf16 %v1277_v47, %v1271_v46  ;;  %v1140_v46 = vld [vmem:[%s5582_s21 + $0x1ab8] sm:$0xff] }
 0x3e5   : > { %v4487_v58 = vpack.c.bf16 %v1098_v49, %v1092_v48  ;;  %v1146_v47 = vld [vmem:[%s5582_s21 + $0x1ae8] sm:$0xff]  ;;  %v1332_v48 = vld [vmem:[%s5582_s21 + $0x20b8] sm:$0xff] }
 0x3e6   : > { %v1338_v49 = vld [vmem:[%s5582_s21 + $0x20e8] sm:$0xff] }
 0x3ea   : > { %4470 = vmatpush1.bf16.xpose.msra.mxu0 %v4469_v59  ;;  %v4679_v59 = vpack.c.bf16 %v1290_v52, %v1284_v51  ;;  %v4693_v51 = vpack.c.bf16 %v1325_v45, %v1319_v44  ;;  %v4503_v52 = vpack.c.bf16 %v1146_v47, %v1140_v46  ;;  %v1471_v44 = vsub.s32 7, %v6185_v56  ;;  %v5178_v47 = vld [vmem:[%s6196_s26] sm:$0xff] }
 0x3eb   : > { %4662 = vmatpush1.bf16.xpose.msra.mxu1 %v4661_v60  ;;  %4472 = vmatprep.subr.bf16.mxu0 %v4471_v10  ;;  %v5172_v60 = vld [vmem:[#allocation2 + $0xc0] sm:$0xff] }
 0x3ec   : > { %4664 = vmatprep.subr.bf16.mxu1 %v4663_v61  ;;  %v1091_v10 = vld [vmem:[%s5582_s21 + $0x1930] sm:$0xff]  ;;  %v1097_v61 = vld [vmem:[%s5582_s21 + $0x1960] sm:$0xff] }
 0x3f2   : > { %4474 = vmatpush1.bf16.xpose.msra.mxu0 %v4473_v6  ;;  %v4489_v6 = vpack.c.bf16 %v1097_v61, %v1091_v10  ;;  %v1344_v10 = vld [vmem:[%s5582_s21 + $0x2118] sm:$0xff]  ;;  %v1350_v61 = vld [vmem:[%s5582_s21 + $0x2148] sm:$0xff] }
 0x3f3   : > { %4666 = vmatpush1.bf16.xpose.msra.mxu1 %v4665_v8  ;;  %4476 = vmatprep.subr.bf16.mxu0 %v4475_v9  ;;  %v5175_v8 = vld [vmem:[#allocation2 + $0x128] sm:$0x1]  ;;  %v4681_v9 = vpack.c.bf16 %v1289_v11, %v1283_v62 }
 0x3f4   : > { %4668 = vmatprep.subr.bf16.mxu1 %v4667_v14  ;;  %v4491_v14 = vpack.c.bf16 %v1110_v0, %v1104_v12  ;;  %v4699_v0 = vpack.c.bf16 %v1350_v61, %v1344_v10 }
 0x3f9   : > { %2850 = vmatmul.mubr.f32.vlgmr.msra.gmra.mrb[28].mxu0 %v5164_v27 }
 0x3fa   : > { %4478 = vmatpush1.bf16.xpose.msra.mxu0 %v4477_v23  ;;  %3171 = vmatmul.mubr.f32.vlgmr.msra.gmra.mrb[28].mxu1 %v5164_v27  ;;  %v5177_v23 = vld [vmem:[#allocation2 + $0x18] sm:$0xff]  ;;  %v4685_v27 = vpack.c.bf16 %v1301_v20, %v1295_v19  ;;  %v1163_v19 = vld [vmem:[%s5582_s21 + $0x1b70] sm:$0xff]  ;;  %v1169_v20 = vld [vmem:[%s5582_s21 + $0x1ba0] sm:$0xff] }
 0x3fb   : > { %4670 = vmatpush1.bf16.xpose.msra.mxu1 %v4669_v24  ;;  %4480 = vmatprep.subr.bf16.mxu0 %v4479_v25  ;;  %v1308_v24 = vld [vmem:[%s5582_s21 + $0x1ff8] sm:$0xff]  ;;  %v1314_v25 = vld [vmem:[%s5582_s21 + $0x2028] sm:$0xff] }
 0x3fc   : > { %4672 = vmatprep.subr.bf16.mxu1 %v4671_v26  ;;  %2855 = vmatprep.mubr.f32.mxu0 %v5165_v34  ;;  %v4493_v26 = vpack.c.bf16 %v1109_v18, %v1103_v17  ;;  %v4687_v29 = vpack.c.bf16 %v1314_v25, %v1308_v24  ;;  %v1182_v24 = vld [vmem:[%s5582_s21 + $0x1c08] sm:$0xff]  ;;  %v1368_v25 = vld [vmem:[%s5582_s21 + $0x21d8] sm:$0xff] }
 0x3fd   : > { %3176 = vmatprep.mubr.f32.mxu1 %v5165_v34  ;;  %2856 = vmatmul.mubr.f32.gmra.mrb[30].mxu0 %v5166_v37  ;;  %v1128_v34 = vld [vmem:[%s5582_s21 + $0x1a58] sm:$0xff] }
 0x3fe   : > { %3177 = vmatmul.mubr.f32.gmra.mrb[30].mxu1 %v5166_v37  ;;  %2861 = vmatprep.mubr.f32.mxu0 %v5167_v39  ;;  %v1326_v37 = vld [vmem:[%s5582_s21 + $0x2088] sm:$0xff] }
 0x3ff   : > { %3182 = vmatprep.mubr.f32.mxu1 %v5167_v39  ;;  %v4689_v39 = vpack.c.bf16 %v1313_v33, %v1307_v32  ;;  %v1181_v32 = vld [vmem:[%s5582_s21 + $0x1c00] sm:$0xff]  ;;  %v1367_v33 = vld [vmem:[%s5582_s21 + $0x21d0] sm:$0xff] }
 0x401   : > { %2862 = vmatmul.mubr.f32.gmra.mrb[32].mxu0 %v5168_v43 }
 0x402   : > { %4482 = vmatpush1.bf16.xpose.msra.mxu0 %v4481_v38  ;;  %3183 = vmatmul.mubr.f32.gmra.mrb[32].mxu1 %v5168_v43  ;;  %v4497_v38 = vpack.c.bf16 %v1121_v31, %v1115_v30  ;;  %v1133_v43 = vld [vmem:[%s5582_s21 + $0x1a80] sm:$0xff]  ;;  %v1175_v31 = vld [vmem:[%s5582_s21 + $0x1bd0] sm:$0xff] }
 0x403   : > { %4674 = vmatpush1.bf16.xpose.msra.mxu1 %v4673_v40  ;;  %4484 = vmatprep.subr.bf16.mxu0 %v4483_v41  ;;  %v4499_v40 = vpack.c.bf16 %v1134_v35, %v1128_v34  ;;  %v4691_v41 = vpack.c.bf16 %v1326_v37, %v1320_v36  ;;  %v1373_v34 = vld [vmem:[%s5582_s21 + $0x2200] sm:$0xff]  ;;  %v1188_v35 = vld [vmem:[%s5582_s21 + $0x1c38] sm:$0xff]  ;;  %v1194_v36 = vld [vmem:[%s5582_s21 + $0x1c68] sm:$0xff]  ;;  %v1459_v37 = vsub.s32 4, %v6185_v56 }
 0x404   : > { %4676 = vmatprep.subr.bf16.mxu1 %v4675_v42  ;;  %2867 = vmatprep.mubr.f32.mxu0 %v5169_v50  ;;  %v1127_v42 = vld [vmem:[%s5582_s21 + $0x1a50] sm:$0xff]  ;;  %v4519_v45 = vpack.c.bf16 %v1194_v36, %v1188_v35 }
 0x405   : > { %3188 = vmatprep.mubr.f32.mxu1 %v5169_v50  ;;  %2868 = vmatmul.mubr.f32.gmra.mrb[34].mxu0 %v5170_v53  ;;  %v4501_v50 = vpack.c.bf16 %v1133_v43, %v1127_v42  ;;  %v1463_v42 = vsub.s32 5, %v6185_v56  ;;  %v4709_v43 = vpack.c.bf16 %v1373_v34, %v1367_v33 }
 0x406   : > { %3189 = vmatmul.mubr.f32.gmra.mrb[34].mxu1 %v5170_v53  ;;  %2873 = vmatprep.mubr.f32.mxu0 %v5171_v55  ;;  %v4695_v53 = vpack.c.bf16 %v1338_v49, %v1332_v48  ;;  %v6666_v48 = vrot.slane %v5178_v47, %v1459_v37 }
 0x407   : > { %3194 = vmatprep.mubr.f32.mxu1 %v5171_v55  ;;  %v1145_v55 = vld [vmem:[%s5582_s21 + $0x1ae0] sm:$0xff] }
 0x409   : > { %2874 = vmatmul.mubr.f32.gmra.mrb[36].mxu0 %v5172_v60 }
 0x40a   : > { %4486 = vmatpush1.bf16.xpose.msra.mxu0 %v4485_v54  ;;  %3195 = vmatmul.mubr.f32.gmra.mrb[36].mxu1 %v5172_v60  ;;  %v1139_v54 = vld [vmem:[%s5582_s21 + $0x1ab0] sm:$0xff]  ;;  %v1158_v60 = vld [vmem:[%s5582_s21 + $0x1b48] sm:$0xff] }
 0x40b   : > { %4678 = vmatpush1.bf16.xpose.msra.mxu1 %v4677_v57  ;;  %4488 = vmatprep.subr.bf16.mxu0 %v4487_v58  ;;  %v1331_v57 = vld [vmem:[%s5582_s21 + $0x20b0] sm:$0xff]  ;;  %v1337_v58 = vld [vmem:[%s5582_s21 + $0x20e0] sm:$0xff]  ;;  %v4505_v62 = vpack.c.bf16 %v1145_v55, %v1139_v54 }
 0x40c   : > { %4680 = vmatprep.subr.bf16.mxu1 %v4679_v59  ;;  %2879 = vmatprep.mubr.f32.mxu0 %v5173_v13  ;;  %v1152_v59 = vld [vmem:[%s5582_s21 + $0x1b18] sm:$0xff]  ;;  %v4697_v11 = vpack.c.bf16 %v1337_v58, %v1331_v57  ;;  %v1379_v54 = vld [vmem:[%s5582_s21 + $0x2230] sm:$0xff]  ;;  %v1385_v57 = vld [vmem:[%s5582_s21 + $0x2260] sm:$0xff] }
 0x40d   : > { %3200 = vmatprep.mubr.f32.mxu1 %v5173_v13  ;;  %2880 = vmatmul.mubr.f32.gmra.mrb[38].mxu0 %v5174_v3  ;;  %v4507_v12 = vpack.c.bf16 %v1158_v60, %v1152_v59  ;;  %v1151_v13 = vld [vmem:[%s5582_s21 + $0x1b10] sm:$0xff]  ;;  %v1200_v58 = vld [vmem:[%s5582_s21 + $0x1c98] sm:$0xff]  ;;  %v1206_v59 = vld [vmem:[%s5582_s21 + $0x1cc8] sm:$0xff] }
 0x40e   : > { %3201 = vmatmul.mubr.f32.gmra.mrb[38].mxu1 %v5174_v3  ;;  %2885 = vmatprep.mubr.f32.mxu0 %v5175_v8  ;;  %v1349_v3 = vld [vmem:[%s5582_s21 + $0x2140] sm:$0xff] }
 0x40f   : > { %3206 = vmatprep.mubr.f32.mxu1 %v5175_v8  ;;  %v1170_v8 = vld [vmem:[%s5582_s21 + $0x1ba8] sm:$0xff] }
 0x411   : > { %2886 = vmatmul.mubr.f32.gmra.mrb[40].mxu0 %v5176_v16 }
 0x412   : > { %4490 = vmatpush1.bf16.xpose.msra.mxu0 %v4489_v6  ;;  %3207 = vmatmul.mubr.f32.gmra.mrb[40].mxu1 %v5176_v16  ;;  %v1164_v6 = vld [vmem:[%s5582_s21 + $0x1b78] sm:$0xff]  ;;  %v4701_v16 = vpack.c.bf16 %v1349_v3, %v1343_v2  ;;  %v4713_v3 = vpack.c.bf16 %v1385_v57, %v1379_v54  ;;  %v1217_v54 = vld [vmem:[%s5582_s21 + $0x1d20] sm:$0xff] }
 0x413   : > { %4682 = vmatpush1.bf16.xpose.msra.mxu1 %v4681_v9  ;;  %4492 = vmatprep.subr.bf16.mxu0 %v4491_v14  ;;  %v1356_v9 = vld [vmem:[%s5582_s21 + $0x2178] sm:$0xff]  ;;  %v1362_v14 = vld [vmem:[%s5582_s21 + $0x21a8] sm:$0xff]  ;;  %v4511_v17 = vpack.c.bf16 %v1170_v8, %v1164_v6  ;;  %v4523_v6 = vpack.c.bf16 %v1206_v59, %v1200_v58  ;;  %v1409_v58 = vld [vmem:[%s5582_s21 + $0x2320] sm:$0xff] }
 0x414   : > { %4684 = vmatprep.subr.bf16.mxu1 %v4683_v15  ;;  %2956 = vmatprep.mubr.f32.mxu0 %v5177_v23  ;;  %v4509_v15 = vpack.c.bf16 %v1157_v1, %v1151_v13  ;;  %v4703_v18 = vpack.c.bf16 %v1362_v14, %v1356_v9  ;;  %v1224_v59 = vld [vmem:[%s5582_s21 + $0x1d58] sm:$0xff] }
 0x415   : > { %3277 = vmatprep.mubr.f32.mxu1 %v5177_v23  ;;  %v1176_v23 = vld [vmem:[%s5582_s21 + $0x1bd8] sm:$0xff] }
 0x41a   : > { %4494 = vmatpush1.bf16.xpose.msra.mxu0 %v4493_v26  ;;  %v1374_v26 = vld [vmem:[%s5582_s21 + $0x2208] sm:$0xff] }
 0x41b   : > { %4686 = vmatpush1.bf16.xpose.msra.mxu1 %v4685_v27  ;;  %4496 = vmatprep.subr.bf16.mxu0 %v4495_v28  ;;  %v4513_v27 = vpack.c.bf16 %v1169_v20, %v1163_v19  ;;  %v4705_v28 = vpack.c.bf16 %v1361_v22, %v1355_v21  ;;  %v4707_v30 = vpack.c.bf16 %v1374_v26, %v1368_v25  ;;  %v1199_v21 = vld [vmem:[%s5582_s21 + $0x1c90] sm:$0xff]  ;;  %v1205_v22 = vld [vmem:[%s5582_s21 + $0x1cc0] sm:$0xff]  ;;  %v1212_v26 = vld [vmem:[%s5582_s21 + $0x1cf8] sm:$0xff] }
 0x41c   : > { %4688 = vmatprep.subr.bf16.mxu1 %v4687_v29  ;;  %v4515_v29 = vpack.c.bf16 %v1182_v24, %v1176_v23  ;;  %v1391_v23 = vld [vmem:[%s5582_s21 + $0x2290] sm:$0xff]  ;;  %v1397_v25 = vld [vmem:[%s5582_s21 + $0x22c0] sm:$0xff]  ;;  %v4525_v36 = vpack.c.bf16 %v1205_v22, %v1199_v21 }
 0x41d   : > { %v1223_v22 = vld [vmem:[%s5582_s21 + $0x1d50] sm:$0xff] }
 0x422   : > { %4498 = vmatpush1.bf16.xpose.msra.mxu0 %v4497_v38  ;;  %v1380_v38 = vld [vmem:[%s5582_s21 + $0x2238] sm:$0xff] }
 0x423   : > { %4690 = vmatpush1.bf16.xpose.msra.mxu1 %v4689_v39  ;;  %4500 = vmatprep.subr.bf16.mxu0 %v4499_v40  ;;  %v1386_v39 = vld [vmem:[%s5582_s21 + $0x2268] sm:$0xff]  ;;  %v4517_v40 = vpack.c.bf16 %v1181_v32, %v1175_v31  ;;  %v1404_v31 = vld [vmem:[%s5582_s21 + $0x22f8] sm:$0xff] }
 0x424   : > { %4692 = vmatprep.subr.bf16.mxu1 %v4691_v41  ;;  %v1467_v41 = vsub.s32 6, %v6185_v56  ;;  %v4711_v46 = vpack.c.bf16 %v1386_v39, %v1380_v38  ;;  %v1410_v32 = vld [vmem:[%s5582_s21 + $0x2328] sm:$0xff]  ;;  %v4717_v38 = vpack.c.bf16 %v1397_v25, %v1391_v23  ;;  %v1229_v23 = vld [vmem:[%s5582_s21 + $0x1d80] sm:$0xff] }
 0x426   : > { %v6668_v49 = vrot.slane %v5178_v47, %v1467_v41  ;;  %v4719_v41 = vpack.c.bf16 %v1410_v32, %v1404_v31  ;;  %v1428_v32 = vld [vmem:[%s5582_s21 + $0x23b8] sm:$0xff] }
 0x42a   : > { %4502 = vmatpush1.bf16.xpose.msra.mxu0 %v4501_v50  ;;  %v6670_v50 = vrot.slane %v5178_v47, %v1463_v42 }
 0x42b   : > { %4694 = vmatpush1.bf16.xpose.msra.mxu1 %v4693_v51  ;;  %4504 = vmatprep.subr.bf16.mxu0 %v4503_v52  ;;  %v6672_v51 = vrot.slane %v5178_v47, %v1471_v44  ;;  %v1187_v52 = vld [vmem:[%s5582_s21 + $0x1c30] sm:$0xff] }
 0x42c   : > { %4696 = vmatprep.subr.bf16.mxu1 %v4695_v53  ;;  %v1193_v53 = vld [vmem:[%s5582_s21 + $0x1c60] sm:$0xff] }
 0x42d   : > { %v4521_v1 = vpack.c.bf16 %v1193_v53, %v1187_v52  ;;  %v1211_v53 = vld [vmem:[%s5582_s21 + $0x1cf0] sm:$0xff] }
 0x432   : > { %4506 = vmatpush1.bf16.xpose.msra.mxu0 %v4505_v62  ;;  %v1392_v62 = vld [vmem:[%s5582_s21 + $0x2298] sm:$0xff] }
 0x433   : > { %4698 = vmatpush1.bf16.xpose.msra.mxu1 %v4697_v11  ;;  %4508 = vmatprep.subr.bf16.mxu0 %v4507_v12  ;;  %v1398_v11 = vld [vmem:[%s5582_s21 + $0x22c8] sm:$0xff] }
 0x434   : > { %4700 = vmatprep.subr.bf16.mxu1 %v4699_v0  ;;  %v4715_v9 = vpack.c.bf16 %v1398_v11, %v1392_v62  ;;  %v1416_v11 = vld [vmem:[%s5582_s21 + $0x2358] sm:$0xff] }
 0x43a   : > { %4510 = vmatpush1.bf16.xpose.msra.mxu0 %v4509_v15 }
 0x43b   : > { %4702 = vmatpush1.bf16.xpose.msra.mxu1 %v4701_v16  ;;  %4512 = vmatprep.subr.bf16.mxu0 %v4511_v17 }
 0x43c   : > { %4704 = vmatprep.subr.bf16.mxu1 %v4703_v18 }
 0x442   : > { %4514 = vmatpush1.bf16.xpose.msra.mxu0 %v4513_v27  ;;  %v1218_v27 = vld [vmem:[%s5582_s21 + $0x1d28] sm:$0xff] }
 0x443   : > { %4706 = vmatpush1.bf16.xpose.msra.mxu1 %v4705_v28  ;;  %4516 = vmatprep.subr.bf16.mxu0 %v4515_v29  ;;  %v4527_v39 = vpack.c.bf16 %v1218_v27, %v1212_v26  ;;  %v1421_v26 = vld [vmem:[%s5582_s21 + $0x2380] sm:$0xff]  ;;  %v1236_v27 = vld [vmem:[%s5582_s21 + $0x1db8] sm:$0xff] }
 0x444   : > { %4708 = vmatprep.subr.bf16.mxu1 %v4707_v30 }
 0x44a   : > { %4518 = vmatpush1.bf16.xpose.msra.mxu0 %v4517_v40 }
 0x44b   : > { %4710 = vmatpush1.bf16.xpose.msra.mxu1 %v4709_v43  ;;  %4520 = vmatprep.subr.bf16.mxu0 %v4519_v45 }
 0x44c   : > { %v2423_v55 = vpop.f32.mrb[14].mxu0  ;;  %4712 = vmatprep.subr.bf16.mxu1 %v4711_v46 }
 0x44d   : > { %v4823_v60 = vadd.f32 %v2423_v55, %v6666_v48  ;;  %v2744_v10 = vpop.f32.mrb[14].mxu1  ;;  %v2425_v61 = vpop.f32.mrb[15].mxu0  ;;  %v1403_v55 = vld [vmem:[%s5582_s21 + $0x22f0] sm:$0xff] }
 0x44e   : > { %v4837_v12 = vadd.f32 %v2744_v10, %v6668_v49  ;;  %v4824_v0 = vadd.f32 %v2425_v61, %v6670_v50  ;;  %v2746_v13 = vpop.f32.mrb[15].mxu1 }
 0x44f   : > { %3431 = vst [vmem:[%s6230_s10 + $0x20] sm:$0xff] %v4823_v60  ;;  %v4838_v2 = vadd.f32 %v2746_v13, %v6672_v51  ;;  %v1230_v60 = vld [vmem:[%s5582_s21 + $0x1d88] sm:$0xff] }
 0x450   : > { %3433 = vst [vmem:[%s6230_s10 + $0x30] sm:$0xff] %v4837_v12  ;;  %3432 = vst [vmem:[%s6230_s10 + $0x28] sm:$0xff] %v4824_v0  ;;  %v2429_v8 = vpop.f32.mrb[16].mxu0  ;;  %v1422_v12 = vld [vmem:[%s5582_s21 + $0x2388] sm:$0xff] }
 0x451   : > { %3434 = vst [vmem:[%s6230_s10 + $0x38] sm:$0xff] %v4838_v2  ;;  %v4825_v14 = vadd.f32 %v2429_v8, %v6666_v48  ;;  %v2750_v15 = vpop.f32.mrb[16].mxu1  ;;  %v2431_v16 = vpop.f32.mrb[17].mxu0  ;;  %v4529_v2 = vpack.c.bf16 %v1217_v54, %v1211_v53  ;;  %v4531_v8 = vpack.c.bf16 %v1230_v60, %v1224_v59  ;;  %v1057_v54 = vld [vmem:[%s5582_s21 + $0x1820] sm:$0xff]  ;;  %v1070_v59 = vld [vmem:[%s5582_s21 + $0x1888] sm:$0xff]  ;;  %v1076_v60 = vld [vmem:[%s5582_s21 + $0x18b8] sm:$0xff] }
 0x452   : > { %v4839_v17 = vadd.f32 %v2750_v15, %v6668_v49  ;;  %v4826_v18 = vadd.f32 %v2431_v16, %v6670_v50  ;;  %v2752_v19 = vpop.f32.mrb[17].mxu1  ;;  %4522 = vmatpush1.bf16.xpose.msra.mxu0 %v4521_v1 }
 0x453   : > { %3443 = vst [vmem:[%s6230_s10 + $0x80] sm:$0xff] %v4825_v14  ;;  %v4840_v20 = vadd.f32 %v2752_v19, %v6672_v51  ;;  %4714 = vmatpush1.bf16.xpose.msra.mxu1 %v4713_v3  ;;  %4524 = vmatprep.subr.bf16.mxu0 %v4523_v6  ;;  %v4721_v6 = vpack.c.bf16 %v1409_v58, %v1403_v55  ;;  %v1063_v55 = vld [vmem:[%s5582_s21 + $0x1850] sm:$0xff] }
 0x454   : > { %3445 = vst [vmem:[%s6230_s10 + $0x90] sm:$0xff] %v4839_v17  ;;  %3444 = vst [vmem:[%s6230_s10 + $0x88] sm:$0xff] %v4826_v18  ;;  %v2435_v24 = vpop.f32.mrb[18].mxu0  ;;  %4716 = vmatprep.subr.bf16.mxu1 %v4715_v9  ;;  %v4723_v14 = vpack.c.bf16 %v1422_v12, %v1416_v11  ;;  %v1255_v58 = vld [vmem:[%s5582_s21 + $0x1e50] sm:$0xff]  ;;  %v4543_v12 = vpack.c.bf16 %v1076_v60, %v1070_v59  ;;  %v1297_v59 = vld [vmem:[%s5582_s21 + $0x1fa0] sm:$0xff] }
 0x455   : > { %3446 = vst [vmem:[%s6230_s10 + $0x98] sm:$0xff] %v4840_v20  ;;  %v4827_v28 = vadd.f32 %v2435_v24, %v6666_v48  ;;  %v2756_v29 = vpop.f32.mrb[18].mxu1  ;;  %v2437_v30 = vpop.f32.mrb[19].mxu0  ;;  %v1415_v24 = vld [vmem:[%s5582_s21 + $0x2350] sm:$0xff] }
 0x456   : > { %v4841_v33 = vadd.f32 %v2756_v29, %v6668_v49  ;;  %v4828_v34 = vadd.f32 %v2437_v30, %v6670_v50  ;;  %v2758_v35 = vpop.f32.mrb[19].mxu1  ;;  %v1303_v60 = vld [vmem:[%s5582_s21 + $0x1fd0] sm:$0xff] }
 0x457   : > { %3455 = vst [vmem:[%s6230_s10 + $0xe0] sm:$0xff] %v4827_v28  ;;  %v4842_v37 = vadd.f32 %v2758_v35, %v6672_v51  ;;  %v1242_v28 = vld [vmem:[%s5582_s21 + $0x1de8] sm:$0xff] }
 0x458   : > { %3457 = vst [vmem:[%s6230_s10 + $0xf0] sm:$0xff] %v4841_v33  ;;  %3456 = vst [vmem:[%s6230_s10 + $0xe8] sm:$0xff] %v4828_v34  ;;  %v2441_v40 = vpop.f32.mrb[20].mxu0  ;;  %v1434_v33 = vld [vmem:[%s5582_s21 + $0x23e8] sm:$0xff] }
 0x459   : > { %3458 = vst [vmem:[%s6230_s10 + $0xf8] sm:$0xff] %v4842_v37  ;;  %v4829_v42 = vadd.f32 %v2441_v40, %v6666_v48  ;;  %v2762_v43 = vpop.f32.mrb[20].mxu1  ;;  %v2443_v44 = vpop.f32.mrb[21].mxu0  ;;  %v4533_v37 = vpack.c.bf16 %v1229_v23, %v1223_v22  ;;  %v4727_v40 = vpack.c.bf16 %v1434_v33, %v1428_v32  ;;  %v5183_v23 = vld [vmem:[#allocation2 + $0x70] sm:$0xff]  ;;  %v1292_v32 = vld [vmem:[%s5582_s21 + $0x1f78] sm:$0xff]  ;;  %v5185_v33 = vld [vmem:[#allocation2 + $0xa0] sm:$0xff] }
 0x45a   : > { %v4843_v45 = vadd.f32 %v2762_v43, %v6668_v49  ;;  %v4830_v46 = vadd.f32 %v2443_v44, %v6670_v50  ;;  %v2764_v47 = vpop.f32.mrb[21].mxu1  ;;  %4526 = vmatpush1.bf16.xpose.msra.mxu0 %v4525_v36  ;;  %v1064_v43 = vld [vmem:[%s5582_s21 + $0x1858] sm:$0xff]  ;;  %v1250_v44 = vld [vmem:[%s5582_s21 + $0x1e28] sm:$0xff] }
 0x45b   : > { %3467 = vst [vmem:[%s6230_s10 + $0x140] sm:$0xff] %v4829_v42  ;;  %v4844_v52 = vadd.f32 %v2764_v47, %v6672_v51  ;;  %4718 = vmatpush1.bf16.xpose.msra.mxu1 %v4717_v38  ;;  %4528 = vmatprep.subr.bf16.mxu0 %v4527_v39  ;;  %v4535_v39 = vpack.c.bf16 %v1242_v28, %v1236_v27  ;;  %v1058_v42 = vld [vmem:[%s5582_s21 + $0x1828] sm:$0xff]  ;;  %v1279_v27 = vld [vmem:[%s5582_s21 + $0x1f10] sm:$0xff] }
 0x45c   : > { %3469 = vst [vmem:[%s6230_s10 + $0x150] sm:$0xff] %v4843_v45  ;;  %3468 = vst [vmem:[%s6230_s10 + $0x148] sm:$0xff] %v4830_v46  ;;  %v2447_v57 = vpop.f32.mrb[22].mxu0  ;;  %4720 = vmatprep.subr.bf16.mxu1 %v4719_v41  ;;  %v1427_v41 = vld [vmem:[%s5582_s21 + $0x23b0] sm:$0xff]  ;;  %v1256_v45 = vld [vmem:[%s5582_s21 + $0x1e58] sm:$0xff] }
 0x45d   : > { %3470 = vst [vmem:[%s6230_s10 + $0x158] sm:$0xff] %v4844_v52  ;;  %v4831_v10 = vadd.f32 %v2447_v57, %v6666_v48  ;;  %v2768_v61 = vpop.f32.mrb[22].mxu1  ;;  %v2449_v62 = vpop.f32.mrb[23].mxu0  ;;  %v4539_v52 = vpack.c.bf16 %v1064_v43, %v1058_v42  ;;  %v4731_v53 = vpack.c.bf16 %v1256_v45, %v1250_v44  ;;  %v1249_v57 = vld [vmem:[%s5582_s21 + $0x1e20] sm:$0xff]  ;;  %v1094_v28 = vld [vmem:[%s5582_s21 + $0x1948] sm:$0xff]  ;;  %v5188_v42 = vld [vmem:[#allocation2 + $0x108] sm:$0xff] }
 0x45e   : > { %v4845_v0 = vadd.f32 %v2768_v61, %v6668_v49  ;;  %v4832_v13 = vadd.f32 %v2449_v62, %v6670_v50  ;;  %v2770_v1 = vpop.f32.mrb[23].mxu1  ;;  %v1268_v61 = vld [vmem:[%s5582_s21 + $0x1eb8] sm:$0xff]  ;;  %v4541_v62 = vpack.c.bf16 %v1063_v55, %v1057_v54  ;;  %v4733_v11 = vpack.c.bf16 %v1255_v58, %v1249_v57  ;;  %v1298_v43 = vld [vmem:[%s5582_s21 + $0x1fa8] sm:$0xff]  ;;  %v5189_v45 = vld [vmem:[#allocation2 + $0x100] sm:$0xff] }
 0x45f   : > { %3479 = vst [vmem:[%s6230_s10 + $0x1a0] sm:$0xff] %v4831_v10  ;;  %v4846_v3 = vadd.f32 %v2770_v1, %v6672_v51  ;;  %v1262_v10 = vld [vmem:[%s5582_s21 + $0x1e88] sm:$0xff]  ;;  %v1069_v1 = vld [vmem:[%s5582_s21 + $0x1880] sm:$0xff]  ;;  %v1304_v44 = vld [vmem:[%s5582_s21 + $0x1fd8] sm:$0xff] }
 0x460   : > { %3481 = vst [vmem:[%s6230_s10 + $0x1b0] sm:$0xff] %v4845_v0  ;;  %3480 = vst [vmem:[%s6230_s10 + $0x1a8] sm:$0xff] %v4832_v13  ;;  %v2453_v9 = vpop.f32.mrb[24].mxu0  ;;  %v4735_v0 = vpack.c.bf16 %v1268_v61, %v1262_v10  ;;  %v5179_v13 = vld [vmem:[#allocation2 + $0x10] sm:$0xff]  ;;  %v4747_v54 = vpack.c.bf16 %v1304_v44, %v1298_v43  ;;  %v1111_v58 = vld [vmem:[%s5582_s21 + $0x19d0] sm:$0xff] }
 0x461   : > { %3482 = vst [vmem:[%s6230_s10 + $0x1b8] sm:$0xff] %v4846_v3  ;;  %v4833_v15 = vadd.f32 %v2453_v9, %v6666_v48  ;;  %v2774_v16 = vpop.f32.mrb[24].mxu1  ;;  %v2455_v17 = vpop.f32.mrb[25].mxu0  ;;  %v1261_v3 = vld [vmem:[%s5582_s21 + $0x1e80] sm:$0xff]  ;;  %v1088_v9 = vld [vmem:[%s5582_s21 + $0x1918] sm:$0xff]  ;;  %v1118_v10 = vld [vmem:[%s5582_s21 + $0x1a08] sm:$0xff] }
 0x462   : > { %v4847_v18 = vadd.f32 %v2774_v16, %v6668_v49  ;;  %v4834_v19 = vadd.f32 %v2455_v17, %v6670_v50  ;;  %v2776_v20 = vpop.f32.mrb[25].mxu1  ;;  %4530 = vmatpush1.bf16.xpose.msra.mxu0 %v4529_v2  ;;  %v1075_v2 = vld [vmem:[%s5582_s21 + $0x18b0] sm:$0xff]  ;;  %v1280_v16 = vld [vmem:[%s5582_s21 + $0x1f18] sm:$0xff]  ;;  %v5191_v55 = vld [vmem:[#allocation2 + $0x130] sm:$0x1] }
 0x463   : > { %3491 = vst [vmem:[%s6230_s10 + $0x200] sm:$0xff] %v4833_v15  ;;  %v4848_v21 = vadd.f32 %v2776_v20, %v6672_v51  ;;  %4722 = vmatpush1.bf16.xpose.msra.mxu1 %v4721_v6  ;;  %4532 = vmatprep.subr.bf16.mxu0 %v4531_v8  ;;  %v1267_v6 = vld [vmem:[%s5582_s21 + $0x1eb0] sm:$0xff]  ;;  %v1082_v8 = vld [vmem:[%s5582_s21 + $0x18e8] sm:$0xff]  ;;  %v1105_v57 = vld [vmem:[%s5582_s21 + $0x19a0] sm:$0xff] }
 0x464   : > { %3493 = vst [vmem:[%s6230_s10 + $0x210] sm:$0xff] %v4847_v18  ;;  %3492 = vst [vmem:[%s6230_s10 + $0x208] sm:$0xff] %v4834_v19  ;;  %v2459_v25 = vpop.f32.mrb[26].mxu0  ;;  %4724 = vmatprep.subr.bf16.mxu1 %v4723_v14  ;;  %v5180_v14 = vld [vmem:[#allocation2 + $0x48] sm:$0xff]  ;;  %v1274_v15 = vld [vmem:[%s5582_s21 + $0x1ee8] sm:$0xff]  ;;  %v4545_v18 = vpack.c.bf16 %v1075_v2, %v1069_v1  ;;  %v4737_v20 = vpack.c.bf16 %v1267_v6, %v1261_v3 }
 0x465   : > { %3494 = vst [vmem:[%s6230_s10 + $0x218] sm:$0xff] %v4848_v21  ;;  %v4835_v29 = vadd.f32 %v2459_v25, %v6666_v48  ;;  %v2780_v30 = vpop.f32.mrb[26].mxu1  ;;  %v2461_v31 = vpop.f32.mrb[27].mxu0  ;;  %v4725_v48 = vpack.c.bf16 %v1421_v26, %v1415_v24  ;;  %v5181_v17 = vld [vmem:[#allocation2 + $0x40] sm:$0xff]  ;;  %v5182_v19 = vld [vmem:[#allocation2 + $0x78] sm:$0xff]  ;;  %v4547_v21 = vpack.c.bf16 %v1088_v9, %v1082_v8  ;;  %v4739_v22 = vpack.c.bf16 %v1280_v16, %v1274_v15  ;;  %v1081_v24 = vld [vmem:[%s5582_s21 + $0x18e0] sm:$0xff] }
 0x466   : > { %v4849_v34 = vadd.f32 %v2780_v30, %v6668_v49  ;;  %v4836_v35 = vadd.f32 %v2461_v31, %v6670_v50  ;;  %v2782_v36 = vpop.f32.mrb[27].mxu1  ;;  %v1235_v49 = vld [vmem:[%s5582_s21 + $0x1db0] sm:$0xff]  ;;  %v1241_v50 = vld [vmem:[%s5582_s21 + $0x1de0] sm:$0xff]  ;;  %v5184_v30 = vld [vmem:[#allocation2 + $0xa8] sm:$0xff] }
 0x467   : > { %3503 = vst [vmem:[%s6230_s10 + $0x260] sm:$0x1] %v4835_v29  ;;  %v4850_v38 = vadd.f32 %v2782_v36, %v6672_v51  ;;  %v1433_v51 = vld [vmem:[%s5582_s21 + $0x23e0] sm:$0xff]  ;;  %v4537_v46 = vpack.c.bf16 %v1241_v50, %v1235_v49  ;;  %v1087_v25 = vld [vmem:[%s5582_s21 + $0x1910] sm:$0xff]  ;;  %v1100_v29 = vld [vmem:[%s5582_s21 + $0x1978] sm:$0xff] }
 0x468   : > { %3505 = vst [vmem:[%s6230_s10 + $0x270] sm:$0x1] %v4849_v34  ;;  %3504 = vst [vmem:[%s6230_s10 + $0x268] sm:$0x1] %v4836_v35  ;;  %v4729_v47 = vpack.c.bf16 %v1433_v51, %v1427_v41  ;;  %v1273_v26 = vld [vmem:[%s5582_s21 + $0x1ee0] sm:$0xff]  ;;  %v1286_v31 = vld [vmem:[%s5582_s21 + $0x1f48] sm:$0xff]  ;;  %v4549_v34 = vpack.c.bf16 %v1087_v25, %v1081_v24 }
 0x469   : > { %3506 = vst [vmem:[%s6230_s10 + $0x278] sm:$0x1] %v4850_v38  ;;  %v5186_v35 = vld [vmem:[#allocation2 + $0xd8] sm:$0xff]  ;;  %v4741_v36 = vpack.c.bf16 %v1279_v27, %v1273_v26  ;;  %v4743_v38 = vpack.c.bf16 %v1292_v32, %v1286_v31  ;;  %v1285_v49 = vld [vmem:[%s5582_s21 + $0x1f40] sm:$0xff]  ;;  %v1291_v50 = vld [vmem:[%s5582_s21 + $0x1f70] sm:$0xff] }
 0x46a   : > { %4534 = vmatpush1.bf16.xpose.msra.mxu0 %v4533_v37  ;;  %v4551_v37 = vpack.c.bf16 %v1100_v29, %v1094_v28  ;;  %v1106_v41 = vld [vmem:[%s5582_s21 + $0x19a8] sm:$0xff]  ;;  %v1112_v51 = vld [vmem:[%s5582_s21 + $0x19d8] sm:$0xff]  ;;  %v1117_v3 = vld [vmem:[%s5582_s21 + $0x1a00] sm:$0xff] }
 0x46b   : > { %4726 = vmatpush1.bf16.xpose.msra.mxu1 %v4725_v48  ;;  %4536 = vmatprep.subr.bf16.mxu0 %v4535_v39  ;;  %v5187_v48 = vld [vmem:[#allocation2 + $0xd0] sm:$0xff]  ;;  %v1124_v61 = vld [vmem:[%s5582_s21 + $0x1a38] sm:$0xff]  ;;  %v1123_v6 = vld [vmem:[%s5582_s21 + $0x1a30] sm:$0xff] }
 0x46c   : > { %4728 = vmatprep.subr.bf16.mxu1 %v4727_v40  ;;  %v1093_v39 = vld [vmem:[%s5582_s21 + $0x1940] sm:$0xff]  ;;  %v1099_v40 = vld [vmem:[%s5582_s21 + $0x1970] sm:$0xff]  ;;  %v4559_v1 = vpack.c.bf16 %v1124_v61, %v1118_v10  ;;  %v1136_v15 = vld [vmem:[%s5582_s21 + $0x1a98] sm:$0xff] }
 0x46d   : > { %v1309_v8 = vld [vmem:[%s5582_s21 + $0x2000] sm:$0xff]  ;;  %v1315_v9 = vld [vmem:[%s5582_s21 + $0x2030] sm:$0xff]  ;;  %v1322_v16 = vld [vmem:[%s5582_s21 + $0x2068] sm:$0xff] }
 0x46e   : > { %v1321_v24 = vld [vmem:[%s5582_s21 + $0x2060] sm:$0xff]  ;;  %v1327_v25 = vld [vmem:[%s5582_s21 + $0x2090] sm:$0xff]  ;;  %v1142_v26 = vld [vmem:[%s5582_s21 + $0x1ac8] sm:$0xff] }
 0x46f   : > { %v1148_v27 = vld [vmem:[%s5582_s21 + $0x1af8] sm:$0xff]  ;;  %v1334_v28 = vld [vmem:[%s5582_s21 + $0x20c8] sm:$0xff]  ;;  %v4757_v31 = vpack.c.bf16 %v1327_v25, %v1321_v24  ;;  %v1159_v43 = vld [vmem:[%s5582_s21 + $0x1b50] sm:$0xff] }
 0x470   : > { %v1340_v29 = vld [vmem:[%s5582_s21 + $0x20f8] sm:$0xff]  ;;  %v4567_v32 = vpack.c.bf16 %v1148_v27, %v1142_v26  ;;  %v1345_v44 = vld [vmem:[%s5582_s21 + $0x2120] sm:$0xff]  ;;  %v1363_v61 = vld [vmem:[%s5582_s21 + $0x21b0] sm:$0xff] }
 0x471   : > { %v1357_v10 = vld [vmem:[%s5582_s21 + $0x2180] sm:$0xff]  ;;  %v1195_v24 = vld [vmem:[%s5582_s21 + $0x1c70] sm:$0xff]  ;;  %v1202_v27 = vld [vmem:[%s5582_s21 + $0x1ca8] sm:$0xff] }
 0x472   : > { %4538 = vmatpush1.bf16.xpose.msra.mxu0 %v4537_v46  ;;  %v4553_v46 = vpack.c.bf16 %v1099_v40, %v1093_v39  ;;  %v1346_v39 = vld [vmem:[%s5582_s21 + $0x2128] sm:$0xff]  ;;  %v1352_v40 = vld [vmem:[%s5582_s21 + $0x2158] sm:$0xff]  ;;  %v1381_v25 = vld [vmem:[%s5582_s21 + $0x2240] sm:$0xff] }
 0x473   : > { %4730 = vmatpush1.bf16.xpose.msra.mxu1 %v4729_v47  ;;  %4540 = vmatprep.subr.bf16.mxu0 %v4539_v52  ;;  %v5190_v47 = vld [vmem:[#allocation2 + $0x138] sm:$0x1]  ;;  %v4745_v52 = vpack.c.bf16 %v1291_v50, %v1285_v49  ;;  %v1387_v26 = vld [vmem:[%s5582_s21 + $0x2270] sm:$0xff] }
 0x474   : > { %4732 = vmatprep.subr.bf16.mxu1 %v4731_v53  ;;  %v4555_v53 = vpack.c.bf16 %v1112_v51, %v1106_v41  ;;  %v4763_v51 = vpack.c.bf16 %v1352_v40, %v1346_v39  ;;  %v1220_v39 = vld [vmem:[%s5582_s21 + $0x1d38] sm:$0xff]  ;;  %v1406_v40 = vld [vmem:[%s5582_s21 + $0x2308] sm:$0xff] }
 0x479   : > { %2957 = vmatmul.mubr.f32.vlgmr.msra.gmra.mrb[28].mxu0 %v5179_v13 }
 0x47a   : > { %4542 = vmatpush1.bf16.xpose.msra.mxu0 %v4541_v62  ;;  %3278 = vmatmul.mubr.f32.vlgmr.msra.gmra.mrb[28].mxu1 %v5179_v13  ;;  %v5192_v62 = vld [vmem:[#allocation2 + $0x28] sm:$0xff]  ;;  %v4749_v13 = vpack.c.bf16 %v1303_v60, %v1297_v59  ;;  %v1165_v59 = vld [vmem:[%s5582_s21 + $0x1b80] sm:$0xff]  ;;  %v1171_v60 = vld [vmem:[%s5582_s21 + $0x1bb0] sm:$0xff] }
 0x47b   : > { %4734 = vmatpush1.bf16.xpose.msra.mxu1 %v4733_v11  ;;  %4544 = vmatprep.subr.bf16.mxu0 %v4543_v12  ;;  %v1310_v11 = vld [vmem:[%s5582_s21 + $0x2008] sm:$0xff]  ;;  %v1316_v12 = vld [vmem:[%s5582_s21 + $0x2038] sm:$0xff] }
 0x47c   : > { %4736 = vmatprep.subr.bf16.mxu1 %v4735_v0  ;;  %2962 = vmatprep.mubr.f32.mxu0 %v5180_v14  ;;  %v4557_v0 = vpack.c.bf16 %v1111_v58, %v1105_v57  ;;  %v4751_v2 = vpack.c.bf16 %v1316_v12, %v1310_v11  ;;  %v1184_v11 = vld [vmem:[%s5582_s21 + $0x1c18] sm:$0xff]  ;;  %v1370_v12 = vld [vmem:[%s5582_s21 + $0x21e8] sm:$0xff] }
 0x47d   : > { %3283 = vmatprep.mubr.f32.mxu1 %v5180_v14  ;;  %2963 = vmatmul.mubr.f32.gmra.mrb[30].mxu0 %v5181_v17  ;;  %v1130_v14 = vld [vmem:[%s5582_s21 + $0x1a68] sm:$0xff] }
 0x47e   : > { %3284 = vmatmul.mubr.f32.gmra.mrb[30].mxu1 %v5181_v17  ;;  %2968 = vmatprep.mubr.f32.mxu0 %v5182_v19  ;;  %v1328_v17 = vld [vmem:[%s5582_s21 + $0x2098] sm:$0xff] }
 0x47f   : > { %3289 = vmatprep.mubr.f32.mxu1 %v5182_v19  ;;  %v4753_v19 = vpack.c.bf16 %v1315_v9, %v1309_v8  ;;  %v1183_v8 = vld [vmem:[%s5582_s21 + $0x1c10] sm:$0xff]  ;;  %v1369_v9 = vld [vmem:[%s5582_s21 + $0x21e0] sm:$0xff] }
 0x481   : > { %2969 = vmatmul.mubr.f32.gmra.mrb[32].mxu0 %v5183_v23 }
 0x482   : > { %4546 = vmatpush1.bf16.xpose.msra.mxu0 %v4545_v18  ;;  %3290 = vmatmul.mubr.f32.gmra.mrb[32].mxu1 %v5183_v23  ;;  %v4561_v18 = vpack.c.bf16 %v1123_v6, %v1117_v3  ;;  %v1135_v23 = vld [vmem:[%s5582_s21 + $0x1a90] sm:$0xff]  ;;  %v1177_v6 = vld [vmem:[%s5582_s21 + $0x1be0] sm:$0xff] }
 0x483   : > { %4738 = vmatpush1.bf16.xpose.msra.mxu1 %v4737_v20  ;;  %4548 = vmatprep.subr.bf16.mxu0 %v4547_v21  ;;  %v4563_v20 = vpack.c.bf16 %v1136_v15, %v1130_v14  ;;  %v4755_v21 = vpack.c.bf16 %v1328_v17, %v1322_v16  ;;  %v1375_v14 = vld [vmem:[%s5582_s21 + $0x2210] sm:$0xff]  ;;  %v1190_v15 = vld [vmem:[%s5582_s21 + $0x1c48] sm:$0xff]  ;;  %v1196_v16 = vld [vmem:[%s5582_s21 + $0x1c78] sm:$0xff] }
 0x484   : > { %4740 = vmatprep.subr.bf16.mxu1 %v4739_v22  ;;  %2974 = vmatprep.mubr.f32.mxu0 %v5184_v30  ;;  %v1129_v22 = vld [vmem:[%s5582_s21 + $0x1a60] sm:$0xff]  ;;  %v1382_v17 = vld [vmem:[%s5582_s21 + $0x2248] sm:$0xff] }
 0x485   : > { %3295 = vmatprep.mubr.f32.mxu1 %v5184_v30  ;;  %2975 = vmatmul.mubr.f32.gmra.mrb[34].mxu0 %v5185_v33  ;;  %v4565_v30 = vpack.c.bf16 %v1135_v23, %v1129_v22  ;;  %v1189_v23 = vld [vmem:[%s5582_s21 + $0x1c40] sm:$0xff] }
 0x486   : > { %3296 = vmatmul.mubr.f32.gmra.mrb[34].mxu1 %v5185_v33  ;;  %2980 = vmatprep.mubr.f32.mxu0 %v5186_v35  ;;  %v4759_v33 = vpack.c.bf16 %v1340_v29, %v1334_v28  ;;  %v1208_v28 = vld [vmem:[%s5582_s21 + $0x1cd8] sm:$0xff]  ;;  %v1394_v29 = vld [vmem:[%s5582_s21 + $0x22a8] sm:$0xff] }
 0x487   : > { %3301 = vmatprep.mubr.f32.mxu1 %v5186_v35  ;;  %v1147_v35 = vld [vmem:[%s5582_s21 + $0x1af0] sm:$0xff] }
 0x489   : > { %2981 = vmatmul.mubr.f32.gmra.mrb[36].mxu0 %v5187_v48 }
 0x48a   : > { %4550 = vmatpush1.bf16.xpose.msra.mxu0 %v4549_v34  ;;  %3302 = vmatmul.mubr.f32.gmra.mrb[36].mxu1 %v5187_v48  ;;  %v1141_v34 = vld [vmem:[%s5582_s21 + $0x1ac0] sm:$0xff]  ;;  %v1160_v48 = vld [vmem:[%s5582_s21 + $0x1b58] sm:$0xff] }
 0x48b   : > { %4742 = vmatpush1.bf16.xpose.msra.mxu1 %v4741_v36  ;;  %4552 = vmatprep.subr.bf16.mxu0 %v4551_v37  ;;  %v1333_v36 = vld [vmem:[%s5582_s21 + $0x20c0] sm:$0xff]  ;;  %v1339_v37 = vld [vmem:[%s5582_s21 + $0x20f0] sm:$0xff]  ;;  %v4569_v49 = vpack.c.bf16 %v1147_v35, %v1141_v34 }
 0x48c   : > { %4744 = vmatprep.subr.bf16.mxu1 %v4743_v38  ;;  %2986 = vmatprep.mubr.f32.mxu0 %v5188_v42  ;;  %v1154_v38 = vld [vmem:[%s5582_s21 + $0x1b28] sm:$0xff]  ;;  %v4761_v50 = vpack.c.bf16 %v1339_v37, %v1333_v36  ;;  %v1201_v35 = vld [vmem:[%s5582_s21 + $0x1ca0] sm:$0xff]  ;;  %v1207_v36 = vld [vmem:[%s5582_s21 + $0x1cd0] sm:$0xff] }
 0x48d   : > { %3307 = vmatprep.mubr.f32.mxu1 %v5188_v42  ;;  %2987 = vmatmul.mubr.f32.gmra.mrb[38].mxu0 %v5189_v45  ;;  %v4571_v41 = vpack.c.bf16 %v1160_v48, %v1154_v38  ;;  %v1153_v42 = vld [vmem:[%s5582_s21 + $0x1b20] sm:$0xff]  ;;  %v1399_v38 = vld [vmem:[%s5582_s21 + $0x22d0] sm:$0xff]  ;;  %v1214_v48 = vld [vmem:[%s5582_s21 + $0x1d08] sm:$0xff] }
 0x48e   : > { %3308 = vmatmul.mubr.f32.gmra.mrb[38].mxu1 %v5189_v45  ;;  %2992 = vmatprep.mubr.f32.mxu0 %v5190_v47  ;;  %v1351_v45 = vld [vmem:[%s5582_s21 + $0x2150] sm:$0xff]  ;;  %v1393_v37 = vld [vmem:[%s5582_s21 + $0x22a0] sm:$0xff] }
 0x48f   : > { %3313 = vmatprep.mubr.f32.mxu1 %v5190_v47  ;;  %v1172_v47 = vld [vmem:[%s5582_s21 + $0x1bb8] sm:$0xff] }
 0x491   : > { %2993 = vmatmul.mubr.f32.gmra.mrb[40].mxu0 %v5191_v55 }
 0x492   : > { %4554 = vmatpush1.bf16.xpose.msra.mxu0 %v4553_v46  ;;  %3314 = vmatmul.mubr.f32.gmra.mrb[40].mxu1 %v5191_v55  ;;  %v1166_v46 = vld [vmem:[%s5582_s21 + $0x1b88] sm:$0xff]  ;;  %v4765_v55 = vpack.c.bf16 %v1351_v45, %v1345_v44  ;;  %v1219_v44 = vld [vmem:[%s5582_s21 + $0x1d30] sm:$0xff]  ;;  %v1405_v45 = vld [vmem:[%s5582_s21 + $0x2300] sm:$0xff] }
 0x493   : > { %4746 = vmatpush1.bf16.xpose.msra.mxu1 %v4745_v52  ;;  %4556 = vmatprep.subr.bf16.mxu0 %v4555_v53  ;;  %v1358_v52 = vld [vmem:[%s5582_s21 + $0x2188] sm:$0xff]  ;;  %v1364_v53 = vld [vmem:[%s5582_s21 + $0x21b8] sm:$0xff]  ;;  %v4575_v57 = vpack.c.bf16 %v1172_v47, %v1166_v46  ;;  %v1411_v46 = vld [vmem:[%s5582_s21 + $0x2330] sm:$0xff] }
 0x494   : > { %4748 = vmatprep.subr.bf16.mxu1 %v4747_v54  ;;  %3063 = vmatprep.mubr.f32.mxu0 %v5192_v62  ;;  %v4573_v54 = vpack.c.bf16 %v1159_v43, %v1153_v42  ;;  %v4767_v58 = vpack.c.bf16 %v1364_v53, %v1358_v52  ;;  %v1213_v43 = vld [vmem:[%s5582_s21 + $0x1d00] sm:$0xff]  ;;  %v1226_v47 = vld [vmem:[%s5582_s21 + $0x1d68] sm:$0xff]  ;;  %v1232_v52 = vld [vmem:[%s5582_s21 + $0x1d98] sm:$0xff] }
 0x495   : > { %3384 = vmatprep.mubr.f32.mxu1 %v5192_v62  ;;  %v1178_v62 = vld [vmem:[%s5582_s21 + $0x1be8] sm:$0xff] }
 0x496   : > { %v1418_v53 = vld [vmem:[%s5582_s21 + $0x2368] sm:$0xff] }
 0x49a   : > { %4558 = vmatpush1.bf16.xpose.msra.mxu0 %v4557_v0  ;;  %v1376_v0 = vld [vmem:[%s5582_s21 + $0x2218] sm:$0xff] }
 0x49b   : > { %4750 = vmatpush1.bf16.xpose.msra.mxu1 %v4749_v13  ;;  %4560 = vmatprep.subr.bf16.mxu0 %v4559_v1  ;;  %v4577_v13 = vpack.c.bf16 %v1171_v60, %v1165_v59  ;;  %v4769_v1 = vpack.c.bf16 %v1363_v61, %v1357_v10  ;;  %v4771_v3 = vpack.c.bf16 %v1376_v0, %v1370_v12  ;;  %v1225_v60 = vld [vmem:[%s5582_s21 + $0x1d60] sm:$0xff]  ;;  %v1231_v10 = vld [vmem:[%s5582_s21 + $0x1d90] sm:$0xff]  ;;  %v1244_v12 = vld [vmem:[%s5582_s21 + $0x1df8] sm:$0xff] }
 0x49c   : > { %4752 = vmatprep.subr.bf16.mxu1 %v4751_v2  ;;  %v4579_v2 = vpack.c.bf16 %v1184_v11, %v1178_v62  ;;  %v1417_v61 = vld [vmem:[%s5582_s21 + $0x2360] sm:$0xff]  ;;  %v1423_v62 = vld [vmem:[%s5582_s21 + $0x2390] sm:$0xff]  ;;  %v1238_v11 = vld [vmem:[%s5582_s21 + $0x1dc8] sm:$0xff] }
 0x49d   : > { %v1430_v0 = vld [vmem:[%s5582_s21 + $0x23c8] sm:$0xff] }
 0x4a2   : > { %4562 = vmatpush1.bf16.xpose.msra.mxu0 %v4561_v18  ;;  %v1388_v18 = vld [vmem:[%s5582_s21 + $0x2278] sm:$0xff] }
 0x4a3   : > { %4754 = vmatpush1.bf16.xpose.msra.mxu1 %v4753_v19  ;;  %4564 = vmatprep.subr.bf16.mxu0 %v4563_v20  ;;  %v4581_v19 = vpack.c.bf16 %v1183_v8, %v1177_v6  ;;  %v4773_v20 = vpack.c.bf16 %v1375_v14, %v1369_v9  ;;  %v4775_v22 = vpack.c.bf16 %v1388_v18, %v1382_v17  ;;  %v1237_v8 = vld [vmem:[%s5582_s21 + $0x1dc0] sm:$0xff]  ;;  %v1243_v9 = vld [vmem:[%s5582_s21 + $0x1df0] sm:$0xff] }
 0x4a4   : > { %4756 = vmatprep.subr.bf16.mxu1 %v4755_v21  ;;  %v4583_v21 = vpack.c.bf16 %v1196_v16, %v1190_v15  ;;  %v1429_v14 = vld [vmem:[%s5582_s21 + $0x23c0] sm:$0xff]  ;;  %v1435_v15 = vld [vmem:[%s5582_s21 + $0x23f0] sm:$0xff]  ;;  %v4601_v16 = vpack.c.bf16 %v1243_v9, %v1237_v8 }
 0x4a5   : > { %v4793_v17 = vpack.c.bf16 %v1435_v15, %v1429_v14  ;;  %v5193_v18 = vld [vmem:[#allocation2 + $0x20] sm:$0xff] }
 0x4aa   : > { %4566 = vmatpush1.bf16.xpose.msra.mxu0 %v4565_v30  ;;  %v1400_v30 = vld [vmem:[%s5582_s21 + $0x22d8] sm:$0xff] }
 0x4ab   : > { %4758 = vmatpush1.bf16.xpose.msra.mxu1 %v4757_v31  ;;  %4568 = vmatprep.subr.bf16.mxu0 %v4567_v32  ;;  %v4585_v31 = vpack.c.bf16 %v1195_v24, %v1189_v23  ;;  %v4777_v32 = vpack.c.bf16 %v1387_v26, %v1381_v25  ;;  %v4779_v34 = vpack.c.bf16 %v1400_v30, %v1394_v29  ;;  %v5198_v23 = vld [vmem:[#allocation2 + $0xb8] sm:$0xff]  ;;  %v5199_v24 = vld [vmem:[#allocation2 + $0xb0] sm:$0xff]  ;;  %v5200_v25 = vld [vmem:[#allocation2 + $0xe8] sm:$0xff] }
 0x4ac   : > { %4760 = vmatprep.subr.bf16.mxu1 %v4759_v33  ;;  %v4587_v33 = vpack.c.bf16 %v1208_v28, %v1202_v27  ;;  %v5201_v26 = vld [vmem:[#allocation2 + $0xe0] sm:$0xff]  ;;  %v5202_v27 = vld [vmem:[#allocation2 + $0x118] sm:$0xff]  ;;  %v5203_v28 = vld [vmem:[#allocation2 + $0x110] sm:$0xff] }
 0x4ad   : > { %v5204_v29 = vld [vmem:[#allocation2 + $0x148] sm:$0x1]  ;;  %v5205_v30 = vld [vmem:[#allocation2 + $0x140] sm:$0x1] }
 0x4b2   : > { %4570 = vmatpush1.bf16.xpose.msra.mxu0 %v4569_v49  ;;  %v1412_v49 = vld [vmem:[%s5582_s21 + $0x2338] sm:$0xff] }
 0x4b3   : > { %4762 = vmatpush1.bf16.xpose.msra.mxu1 %v4761_v50  ;;  %4572 = vmatprep.subr.bf16.mxu0 %v4571_v41  ;;  %v4589_v50 = vpack.c.bf16 %v1207_v36, %v1201_v35  ;;  %v4781_v41 = vpack.c.bf16 %v1399_v38, %v1393_v37  ;;  %v4783_v42 = vpack.c.bf16 %v1412_v49, %v1406_v40 }
 0x4b4   : > { %4764 = vmatprep.subr.bf16.mxu1 %v4763_v51  ;;  %v4591_v51 = vpack.c.bf16 %v1220_v39, %v1214_v48 }
 0x4ba   : > { %4574 = vmatpush1.bf16.xpose.msra.mxu0 %v4573_v54  ;;  %v1424_v54 = vld [vmem:[%s5582_s21 + $0x2398] sm:$0xff] }
 0x4bb   : > { %4766 = vmatpush1.bf16.xpose.msra.mxu1 %v4765_v55  ;;  %4576 = vmatprep.subr.bf16.mxu0 %v4575_v57  ;;  %v4593_v55 = vpack.c.bf16 %v1219_v44, %v1213_v43  ;;  %v4785_v57 = vpack.c.bf16 %v1411_v46, %v1405_v45  ;;  %v4787_v59 = vpack.c.bf16 %v1424_v54, %v1418_v53 }
 0x4bc   : > { %4768 = vmatprep.subr.bf16.mxu1 %v4767_v58  ;;  %v4595_v58 = vpack.c.bf16 %v1232_v52, %v1226_v47 }
 0x4c2   : > { %4578 = vmatpush1.bf16.xpose.msra.mxu0 %v4577_v13  ;;  %v1436_v13 = vld [vmem:[%s5582_s21 + $0x23f8] sm:$0xff] }
 0x4c3   : > { %4770 = vmatpush1.bf16.xpose.msra.mxu1 %v4769_v1  ;;  %4580 = vmatprep.subr.bf16.mxu0 %v4579_v2  ;;  %v4597_v1 = vpack.c.bf16 %v1231_v10, %v1225_v60  ;;  %v4789_v2 = vpack.c.bf16 %v1423_v62, %v1417_v61  ;;  %v4791_v6 = vpack.c.bf16 %v1436_v13, %v1430_v0 }
 0x4c4   : > { %4772 = vmatprep.subr.bf16.mxu1 %v4771_v3  ;;  %v4599_v3 = vpack.c.bf16 %v1244_v12, %v1238_v11 }
 0x4ca   : > { %4582 = vmatpush1.bf16.xpose.msra.mxu0 %v4581_v19  ;;  %v5194_v19 = vld [vmem:[#allocation2 + $0x58] sm:$0xff] }
 0x4cb   : > { %4774 = vmatpush1.bf16.xpose.msra.mxu1 %v4773_v20  ;;  %4584 = vmatprep.subr.bf16.mxu0 %v4583_v21  ;;  %v5195_v20 = vld [vmem:[#allocation2 + $0x50] sm:$0xff]  ;;  %v5196_v21 = vld [vmem:[#allocation2 + $0x88] sm:$0xff] }
 0x4cc   : > { %4776 = vmatprep.subr.bf16.mxu1 %v4775_v22  ;;  %v5197_v22 = vld [vmem:[#allocation2 + $0x80] sm:$0xff] }
 0x4d2   : > { %4586 = vmatpush1.bf16.xpose.msra.mxu0 %v4585_v31  ;;  %v1438_v31 = vld [vmem:[%s6196_s26 + $0x8] sm:$0xf] }
 0x4d3   : > { %4778 = vmatpush1.bf16.xpose.msra.mxu1 %v4777_v32  ;;  %4588 = vmatprep.subr.bf16.mxu0 %v4587_v33  ;;  %v6897_v32 = vrot.slane %v1438_v31, %v1443_v63  ;;  %v6901_v33 = vrot.slane %v1438_v31, %v1451_v4  ;;  %v6909_v35 = vrot.slane %v1438_v31, %v1455_v7 }
 0x4d4   : > { %4780 = vmatprep.subr.bf16.mxu1 %v4779_v34  ;;  %v6905_v34 = vrot.slane %v1438_v31, %v1447_v5 }
 0x4da   : > { %4590 = vmatpush1.bf16.xpose.msra.mxu0 %v4589_v50 }
 0x4db   : > { %4782 = vmatpush1.bf16.xpose.msra.mxu1 %v4781_v41  ;;  %4592 = vmatprep.subr.bf16.mxu0 %v4591_v51 }
 0x4dc   : > { %4784 = vmatprep.subr.bf16.mxu1 %v4783_v42 }
 0x4e2   : > { %4594 = vmatpush1.bf16.xpose.msra.mxu0 %v4593_v55 }
 0x4e3   : > { %4786 = vmatpush1.bf16.xpose.msra.mxu1 %v4785_v57  ;;  %4596 = vmatprep.subr.bf16.mxu0 %v4595_v58 }
 0x4e4   : > { %4788 = vmatprep.subr.bf16.mxu1 %v4787_v59 }
 0x4ea   : > { %4598 = vmatpush1.bf16.xpose.msra.mxu0 %v4597_v1 }
 0x4eb   : > { %4790 = vmatpush1.bf16.xpose.msra.mxu1 %v4789_v2  ;;  %4600 = vmatprep.subr.bf16.mxu0 %v4599_v3 }
 0x4ec   : > { %4792 = vmatprep.subr.bf16.mxu1 %v4791_v6 }
 0x4f2   : > { %4602 = vmatpush1.bf16.xpose.msra.mxu0 %v4601_v16 }
 0x4f3   : > { %4794 = vmatpush1.bf16.xpose.msra.mxu1 %v4793_v17 }
 0x4f9   : > { %3064 = vmatmul.mubr.f32.vlgmr.msra.gmra.mrb[28].mxu0 %v5193_v18 }
 0x4fa   : > { %3385 = vmatmul.mubr.f32.vlgmr.msra.gmra.mrb[28].mxu1 %v5193_v18  ;;  %3069 = vmatprep.mubr.f32.mxu0 %v5194_v19 }
 0x4fb   : > { %3390 = vmatprep.mubr.f32.mxu1 %v5194_v19 }
 0x4fd   : > { %3070 = vmatmul.mubr.f32.gmra.mrb[30].mxu0 %v5195_v20 }
 0x4fe   : > { %3391 = vmatmul.mubr.f32.gmra.mrb[30].mxu1 %v5195_v20  ;;  %3075 = vmatprep.mubr.f32.mxu0 %v5196_v21 }
 0x4ff   : > { %3396 = vmatprep.mubr.f32.mxu1 %v5196_v21 }
 0x501   : > { %3076 = vmatmul.mubr.f32.gmra.mrb[32].mxu0 %v5197_v22 }
 0x502   : > { %3397 = vmatmul.mubr.f32.gmra.mrb[32].mxu1 %v5197_v22  ;;  %3081 = vmatprep.mubr.f32.mxu0 %v5198_v23 }
 0x503   : > { %3402 = vmatprep.mubr.f32.mxu1 %v5198_v23 }
 0x505   : > { %3082 = vmatmul.mubr.f32.gmra.mrb[34].mxu0 %v5199_v24 }
 0x506   : > { %3403 = vmatmul.mubr.f32.gmra.mrb[34].mxu1 %v5199_v24  ;;  %3087 = vmatprep.mubr.f32.mxu0 %v5200_v25 }
 0x507   : > { %3408 = vmatprep.mubr.f32.mxu1 %v5200_v25 }
 0x509   : > { %3088 = vmatmul.mubr.f32.gmra.mrb[36].mxu0 %v5201_v26 }
 0x50a   : > { %3409 = vmatmul.mubr.f32.gmra.mrb[36].mxu1 %v5201_v26  ;;  %3093 = vmatprep.mubr.f32.mxu0 %v5202_v27 }
 0x50b   : > { %3414 = vmatprep.mubr.f32.mxu1 %v5202_v27 }
 0x50d   : > { %3094 = vmatmul.mubr.f32.gmra.mrb[38].mxu0 %v5203_v28 }
 0x50e   : > { %3415 = vmatmul.mubr.f32.gmra.mrb[38].mxu1 %v5203_v28  ;;  %3099 = vmatprep.mubr.f32.mxu0 %v5204_v29 }
 0x50f   : > { %3420 = vmatprep.mubr.f32.mxu1 %v5204_v29 }
 0x511   : > { %3100 = vmatmul.mubr.f32.gmra.mrb[40].mxu0 %v5205_v30 }
 0x512   : > { %3421 = vmatmul.mubr.f32.gmra.mrb[40].mxu1 %v5205_v30 }
 0x5cc   : > { %v3065_v36 = vpop.f32.mrb[28].mxu0 }
 0x5cd   : > { %v4851_v37 = vadd.f32 %v3065_v36, %v6897_v32  ;;  %v3386_v38 = vpop.f32.mrb[28].mxu1  ;;  %v3067_v48 = vpop.f32.mrb[29].mxu0 }
 0x5ce   : > { %v4865_v63 = vadd.f32 %v3386_v38, %v6901_v33  ;;  %v4852_v39 = vadd.f32 %v3067_v48, %v6905_v34  ;;  %v3388_v4 = vpop.f32.mrb[29].mxu1 }
 0x5cf   : > { %3435 = vst [vmem:[%s6230_s10 + $0x40] sm:$0xff] %v4851_v37  ;;  %v4866_v5 = vadd.f32 %v3388_v4, %v6909_v35 }
 0x5d0   : > { %3437 = vst [vmem:[%s6230_s10 + $0x50] sm:$0xff] %v4865_v63  ;;  %3436 = vst [vmem:[%s6230_s10 + $0x48] sm:$0xff] %v4852_v39  ;;  %v3071_v56 = vpop.f32.mrb[30].mxu0 }
 0x5d1   : > { %3438 = vst [vmem:[%s6230_s10 + $0x58] sm:$0xff] %v4866_v5  ;;  %v4853_v7 = vadd.f32 %v3071_v56, %v6897_v32  ;;  %v3392_v40 = vpop.f32.mrb[30].mxu1  ;;  %v3073_v49 = vpop.f32.mrb[31].mxu0 }
 0x5d2   : > { %v4867_v50 = vadd.f32 %v3392_v40, %v6901_v33  ;;  %v4854_v41 = vadd.f32 %v3073_v49, %v6905_v34  ;;  %v3394_v51 = vpop.f32.mrb[31].mxu1 }
 0x5d3   : > { %3447 = vst [vmem:[%s6230_s10 + $0xa0] sm:$0xff] %v4853_v7  ;;  %v4868_v42 = vadd.f32 %v3394_v51, %v6909_v35 }
 0x5d4   : > { %3449 = vst [vmem:[%s6230_s10 + $0xb0] sm:$0xff] %v4867_v50  ;;  %3448 = vst [vmem:[%s6230_s10 + $0xa8] sm:$0xff] %v4854_v41  ;;  %v3077_v43 = vpop.f32.mrb[32].mxu0 }
 0x5d5   : > { %3450 = vst [vmem:[%s6230_s10 + $0xb8] sm:$0xff] %v4868_v42  ;;  %v4855_v44 = vadd.f32 %v3077_v43, %v6897_v32  ;;  %v3398_v45 = vpop.f32.mrb[32].mxu1  ;;  %v3079_v46 = vpop.f32.mrb[33].mxu0 }
 0x5d6   : > { %v4869_v47 = vadd.f32 %v3398_v45, %v6901_v33  ;;  %v4856_v52 = vadd.f32 %v3079_v46, %v6905_v34  ;;  %v3400_v53 = vpop.f32.mrb[33].mxu1 }
 0x5d7   : > { %3459 = vst [vmem:[%s6230_s10 + $0x100] sm:$0xff] %v4855_v44  ;;  %v4870_v54 = vadd.f32 %v3400_v53, %v6909_v35 }
 0x5d8   : > { %3461 = vst [vmem:[%s6230_s10 + $0x110] sm:$0xff] %v4869_v47  ;;  %3460 = vst [vmem:[%s6230_s10 + $0x108] sm:$0xff] %v4856_v52  ;;  %v3083_v55 = vpop.f32.mrb[34].mxu0 }
 0x5d9   : > { %3462 = vst [vmem:[%s6230_s10 + $0x118] sm:$0xff] %v4870_v54  ;;  %v4857_v57 = vadd.f32 %v3083_v55, %v6897_v32  ;;  %v3404_v58 = vpop.f32.mrb[34].mxu1  ;;  %v3085_v59 = vpop.f32.mrb[35].mxu0 }
 0x5da   : > { %v4871_v60 = vadd.f32 %v3404_v58, %v6901_v33  ;;  %v4858_v10 = vadd.f32 %v3085_v59, %v6905_v34  ;;  %v3406_v61 = vpop.f32.mrb[35].mxu1 }
 0x5db   : > { %3471 = vst [vmem:[%s6230_s10 + $0x160] sm:$0xff] %v4857_v57  ;;  %v4872_v62 = vadd.f32 %v3406_v61, %v6909_v35 }
 0x5dc   : > { %3473 = vst [vmem:[%s6230_s10 + $0x170] sm:$0xff] %v4871_v60  ;;  %3472 = vst [vmem:[%s6230_s10 + $0x168] sm:$0xff] %v4858_v10  ;;  %v3089_v11 = vpop.f32.mrb[36].mxu0 }
 0x5dd   : > { %3474 = vst [vmem:[%s6230_s10 + $0x178] sm:$0xff] %v4872_v62  ;;  %v4859_v12 = vadd.f32 %v3089_v11, %v6897_v32  ;;  %v3410_v0 = vpop.f32.mrb[36].mxu1  ;;  %v3091_v13 = vpop.f32.mrb[37].mxu0 }
 0x5de   : > { %v4873_v1 = vadd.f32 %v3410_v0, %v6901_v33  ;;  %v4860_v2 = vadd.f32 %v3091_v13, %v6905_v34  ;;  %v3412_v3 = vpop.f32.mrb[37].mxu1 }
 0x5df   : > { %3483 = vst [vmem:[%s6230_s10 + $0x1c0] sm:$0xff] %v4859_v12  ;;  %v4874_v6 = vadd.f32 %v3412_v3, %v6909_v35 }
 0x5e0   : > { %3485 = vst [vmem:[%s6230_s10 + $0x1d0] sm:$0xff] %v4873_v1  ;;  %3484 = vst [vmem:[%s6230_s10 + $0x1c8] sm:$0xff] %v4860_v2  ;;  %v3095_v8 = vpop.f32.mrb[38].mxu0 }
 0x5e1   : > { %3486 = vst [vmem:[%s6230_s10 + $0x1d8] sm:$0xff] %v4874_v6  ;;  %v4861_v9 = vadd.f32 %v3095_v8, %v6897_v32  ;;  %v3416_v14 = vpop.f32.mrb[38].mxu1  ;;  %v3097_v15 = vpop.f32.mrb[39].mxu0 }
 0x5e2   : > { %v4875_v16 = vadd.f32 %v3416_v14, %v6901_v33  ;;  %v4862_v17 = vadd.f32 %v3097_v15, %v6905_v34  ;;  %v3418_v18 = vpop.f32.mrb[39].mxu1 }
 0x5e3   : > { %3495 = vst [vmem:[%s6230_s10 + $0x220] sm:$0xff] %v4861_v9  ;;  %v4876_v19 = vadd.f32 %v3418_v18, %v6909_v35 }
 0x5e4   : > { %3497 = vst [vmem:[%s6230_s10 + $0x230] sm:$0xff] %v4875_v16  ;;  %3496 = vst [vmem:[%s6230_s10 + $0x228] sm:$0xff] %v4862_v17  ;;  %v3101_v20 = vpop.f32.mrb[40].mxu0 }
 0x5e5   : > { %3498 = vst [vmem:[%s6230_s10 + $0x238] sm:$0xff] %v4876_v19  ;;  %v4863_v21 = vadd.f32 %v3101_v20, %v6897_v32  ;;  %v3422_v22 = vpop.f32.mrb[40].mxu1  ;;  %v3103_v23 = vpop.f32.mrb[41].mxu0 }
 0x5e6   : > { %v4877_v24 = vadd.f32 %v3422_v22, %v6901_v33  ;;  %v4864_v25 = vadd.f32 %v3103_v23, %v6905_v34  ;;  %v3424_v26 = vpop.f32.mrb[41].mxu1 }
 0x5e7   : > { %3507 = vst [vmem:[%s6230_s10 + $0x280] sm:$0x1] %v4863_v21  ;;  %v4878_v27 = vadd.f32 %v3424_v26, %v6909_v35 }
 0x5e8   : > { %3509 = vst [vmem:[%s6230_s10 + $0x290] sm:$0x1] %v4877_v24  ;;  %3508 = vst [vmem:[%s6230_s10 + $0x288] sm:$0x1] %v4864_v25 }
 0x5e9   : > { %3510 = vst [vmem:[%s6230_s10 + $0x298] sm:$0x1] %v4878_v27 }
 0x5ea   : > { %5307 = shalt.err (!%p5304_p7)
}
 0x5eb   : > { %s5308_s11 = scalar_lea.hbm %s6965_s7, 10752  ;;  %s5312_s21 = scalar_lea.hbm %s7021_s3, 21504 }
 0x5ec   : > { %p5309_p9 = scmp.ne.s32.totalorder %s6965_s7, %s5308_s11  ;;  %p5313_p4 = scmp.lt.u32.totalorder %s6965_s7, %s7021_s3 }
 0x5ed   : > { %p5314_p1 = scmp.lt.u32.totalorder %s5312_s21, %s5308_s11  ;;  %p5316_p2 = scmp.lt.u32.totalorder %s5308_s11, %s6965_s7 }
 0x5ee   : > { %p5310_p12 = pnand %p5309_p9, %p7046_p5 }
 0x5ef   : > { %p5315_p10 = por %p5314_p1, %p5313_p4 }
 0x5f0   : > { %p5311_p6 = pneg %p5310_p12 }
 0x5f1   : > { %p5317_p13 = por %p5316_p2, %p5315_p10 }
 0x5f3   : > { %p5318_p11 = pnand %p5317_p13, %p5311_p6 }
 0x5f5   : > { %5321 = shalt.err (!%p5318_p11)
}
 0x5f6   : > { %s5372_s4 = smov 1536   ;;  %s5373_s10 = smov 3072  }
 0x5f7   : > { %s5374_s18 = smov 96  }
 0x5f8   : > { %5061 = dma.vmem_to_hbm [thread:$0]  (%p7046_p5), %s6969_s8, 10752, %s6965_s7, %s3512_s9, %s5372_s4, %s5373_s10, %s5374_s18  }
 0x5f9 PF: > { %s3540_s24 = sand.u32 1, %s5352_s12   ;;  %p7047_p0 = scmp.ne.s32.totalorder %s7034_s28, 0 }
 0x5fa   : > { %p7048_p8 = scmp.ge.s32.totalorder %s5364_s15, 2  ;;  %s3541_s5 = scalar_lea.sflag [#allocation4], %s3540_s24 }
 0x5fc   : > { %p5075_p3 = pnand %p7048_p8, %p7047_p0 }
 0x5fe   : > { %5347 = dma.done.wait (!%p5075_p3), %s3541_s5, 10752  }
 0x5ff   : > { %5349 = vsyncadd (!%p5075_p3), %s3541_s5, 4294956544  ;;  %p17_p7 = scmp.ge.s32.totalorder %s5416_s16, 4   ;;  %s7049_s12 = smov %s5356_s13 }
 0x600   : > { %s7050_s13 = smov %s5360_s14  ;;  %s7051_s14 = smov %s5425_s19 }
 0x601   : > { %s7052_s15 = smov %s5416_s16  ;;  %19 = sbr.rel (!%p17_p7) target bundleno = 6 (0x6), region = 93 }
 0x608   :  { %3546 = vsyncpa [#allocation3], 1 }
 0x609   :  { %3548 = vsyncpa [#allocation3 + $0x1], 1 }
 0x60a   :  { %3549 = vsyncpa [#allocation6], 1 }
 0x60b   :  { %3551 = vsyncpa [#allocation6 + $0x1], 1 }
 0x60c   :  { %3552 = vsyncpa [#allocation4], 1 }
 0x60d   :  { %3554 = vsyncpa [#allocation4 + $0x1], 1 }

</bundles_post_ra>
